<compile_context>
chip_gen: v7x
topology: tpu7x:2x2x1
jax: 0.10.0
libtpu: 0.0.40
codegen_flags: <defaults>
</compile_context>

<pallas_src>
import jax
import jax.numpy as jnp
from jax import lax
from jax.experimental import pallas as pl
from jax.experimental.pallas import tpu as pltpu


def _round_up(x, m):
    return (x + m - 1) // m * m


def _bigru_kernel(emb_ref, len_ref, wih_ref, bih_ref,
                  whh_f_ref, bhh_f_ref, whh_r_ref, bhh_r_ref,
                  out_f_ref, out_b_ref, hid_ref, gx_ref):
    """Bidirectional GRU over a padded batch with packed-sequence masking.

    emb_ref  : (T*Bp, Ep) bf16   time-major embedded tokens, flattened
    len_ref  : (Bp, 1)    i32    valid lengths (0 for padded batch rows)
    wih_ref  : (Ep, 6*Hp) bf16   input weights [fwd r|z|n | bwd r|z|n]
    bih_ref  : (1, 6*Hp)  f32    input biases (folded into the big GEMM)
    whh_*    : (Hp, 3*Hp) bf16   recurrent weights, gates fused [r|z|n]
    bhh_*    : (1, 3*Hp)  f32    recurrent biases
    out_f/out_b : (T, Bp, Hp) f32  per-direction outputs (zero at pads)
    hid_ref  : (2, Bp, Hp) f32   [0]=final fwd state, [1]=final bwd state
    gx_ref   : (T*Bp, 6*Hp) f32  VMEM scratch for the hoisted input GEMM
    """
    T, Bp, Hp = out_f_ref.shape
    H3 = 3 * Hp

    # ---- (1) hoisted input-path GEMM: one big MXU matmul for every timestep
    #      and both directions, with the input biases folded in.
    gx_ref[...] = (jnp.dot(emb_ref[...], wih_ref[...],
                           preferred_element_type=jnp.float32)
                   + bih_ref[...])

    # ---- hoisted loop invariants (weights, broadcast biases, lengths).
    whh_f = whh_f_ref[...]
    whh_r = whh_r_ref[...]
    bhh_f = jnp.broadcast_to(bhh_f_ref[...], (Bp, H3))
    bhh_r = jnp.broadcast_to(bhh_r_ref[...], (Bp, H3))
    lengths = len_ref[...]                                   # (Bp, 1) int32

    def cell(gx_t, h, whh, bhh):
        # single fused 3-gate recurrent matmul; gate slices are lane-aligned.
        gh = jnp.dot(h.astype(jnp.bfloat16), whh,
                     preferred_element_type=jnp.float32) + bhh
        r = jax.nn.sigmoid(gx_t[:, :Hp] + gh[:, :Hp])
        z = jax.nn.sigmoid(gx_t[:, Hp:2 * Hp] + gh[:, Hp:2 * Hp])
        n = jnp.tanh(gx_t[:, 2 * Hp:] + r * gh[:, 2 * Hp:])
        return (1.0 - z) * n + z * h

    h0 = jnp.zeros((Bp, Hp), jnp.float32)

    # ---- (2) interleaved fwd/bwd recurrence: iteration i runs the forward
    #      cell at t=i and the backward cell at t=T-1-i so the two
    #      independent chains overlap inside a single (unrolled) loop.
    #      Padded steps (t >= len) do not advance the state and emit zeros.
    def step(i, carry):
        h_f, h_b = carry
        tf = i
        tb = T - 1 - i

        row_f = pl.multiple_of(tf * Bp, Bp)
        gx_f = gx_ref[pl.ds(row_f, Bp), :H3]
        hf_new = cell(gx_f, h_f, whh_f, bhh_f)
        mask_f = tf < lengths
        out_f_ref[tf] = jnp.where(mask_f, hf_new, 0.0)
        h_f = jnp.where(mask_f, hf_new, h_f)

        row_b = pl.multiple_of(tb * Bp, Bp)
        gx_b = gx_ref[pl.ds(row_b, Bp), H3:]
        hb_new = cell(gx_b, h_b, whh_r, bhh_r)
        mask_b = tb < lengths
        out_b_ref[tb] = jnp.where(mask_b, hb_new, 0.0)
        h_b = jnp.where(mask_b, hb_new, h_b)

        return (h_f, h_b)

    h_f, h_b = lax.fori_loop(0, T, step, (h0, h0),
                             unroll=True if T <= 32 else False)
    hid_ref[0] = h_f
    hid_ref[1] = h_b


# ------------------------------- parameters ---------------------------------
def init_params(key, input_size, embed_size, hidden_size):
    keys = jax.random.split(key, 9)
    bound = 1.0 / float(hidden_size) ** 0.5

    def u(kk, shape):
        return jax.random.uniform(kk, shape, jnp.float32, -bound, bound)

    return dict(
        embedding=jax.random.normal(keys[0], (input_size, embed_size),
                                    jnp.float32),
        # gate order along axis 0: [r, z, n] (same as PyTorch GRU chunks)
        wih_f=u(keys[1], (3, embed_size, hidden_size)),
        whh_f=u(keys[2], (3, hidden_size, hidden_size)),
        bih_f=u(keys[3], (3, 1, hidden_size)),
        bhh_f=u(keys[4], (3, 1, hidden_size)),
        wih_r=u(keys[5], (3, embed_size, hidden_size)),
        whh_r=u(keys[6], (3, hidden_size, hidden_size)),
        bih_r=u(keys[7], (3, 1, hidden_size)),
        bhh_r=u(keys[8], (3, 1, hidden_size)),
    )


def _pack_weights(params, Ep, Hp):
    """Pack per-gate weights into the fused, tile-padded, bf16 layout."""
    def pad_to(w, rows, cols):
        return jnp.zeros((rows, cols), w.dtype).at[:w.shape[0], :w.shape[1]].set(w)

    wih_blocks, bih_blocks = [], []
    for d in ("f", "r"):                     # forward, then reverse direction
        for g in range(3):                   # gate order r, z, n
            wih_blocks.append(pad_to(params[f"wih_{d}"][g], Ep, Hp))
            bih_blocks.append(pad_to(params[f"bih_{d}"][g], 1, Hp))
    wih = jnp.concatenate(wih_blocks, axis=1).astype(jnp.bfloat16)   # (Ep, 6Hp)
    bih = jnp.concatenate(bih_blocks, axis=1).astype(jnp.float32)    # (1, 6Hp)

    def pack_hh(d):
        wb = [pad_to(params[f"whh_{d}"][g], Hp, Hp) for g in range(3)]
        bb = [pad_to(params[f"bhh_{d}"][g], 1, Hp) for g in range(3)]
        return (jnp.concatenate(wb, axis=1).astype(jnp.bfloat16),    # (Hp, 3Hp)
                jnp.concatenate(bb, axis=1).astype(jnp.float32))     # (1, 3Hp)

    whh_f, bhh_f = pack_hh("f")
    whh_r, bhh_r = pack_hh("r")
    return wih, bih, whh_f, bhh_f, whh_r, bhh_r


# --------------------------------- forward ----------------------------------
def encoder_rnn_forward(input_seqs, input_lengths, params):
    """input_seqs: (B, T) int32 token ids; input_lengths: host list, sorted desc."""
    emb_table = params["embedding"]
    B, T = input_seqs.shape
    E = emb_table.shape[1]
    H = params["whh_f"].shape[-1]

    # tile-padded extents: sublanes (8) for batch, lanes (128) for E / H
    Bp = _round_up(B, 8)
    Hp = _round_up(H, 128)
    Ep = _round_up(E, 128)

    # glue: permute(1,0) + embedding lookup  -> (T, B, E), padded + bf16
    seq_tb = jnp.transpose(input_seqs, (1, 0))
    embedded = jnp.take(emb_table, seq_tb, axis=0)                 # (T, B, E) f32
    embedded = jnp.pad(embedded, ((0, 0), (0, Bp - B), (0, Ep - E)))
    emb_flat = embedded.astype(jnp.bfloat16).reshape(T * Bp, Ep)   # MXU-ready

    lengths = jnp.zeros((Bp, 1), jnp.int32).at[:B, 0].set(
        jnp.asarray(input_lengths, jnp.int32))

    wih, bih, whh_f, bhh_f, whh_r, bhh_r = _pack_weights(params, Ep, Hp)

    vmem = pl.BlockSpec(memory_space=pltpu.MemorySpace.VMEM)
    # TODO(synk): for production T/B, add a T-chunked grid (BlockSpec index
    # maps on emb/out, h carried in VMEM scratch) so the sequence streams
    # through VMEM instead of being fully resident.
    out_f, out_b, hidden = pl.pallas_call(
        _bigru_kernel,
        out_shape=(jax.ShapeDtypeStruct((T, Bp, Hp), jnp.float32),
                   jax.ShapeDtypeStruct((T, Bp, Hp), jnp.float32),
                   jax.ShapeDtypeStruct((2, Bp, Hp), jnp.float32)),
        in_specs=[vmem] * 8,
        out_specs=(vmem, vmem, vmem),
        scratch_shapes=[pltpu.VMEM((T * Bp, 6 * Hp), jnp.float32)],
        compiler_params=pltpu.CompilerParams(
            vmem_limit_bytes=32 * 1024 * 1024),
    )(emb_flat, lengths, wih, bih, whh_f, bhh_f, whh_r, bhh_r)

    # pad_packed_sequence trims the time axis to the longest length in batch;
    # fwd + bwd halves are summed (outputs[..., :H] + outputs[..., H:]).
    t_out = int(max(input_lengths))
    outputs = (out_f + out_b)[:t_out, :B, :H]
    hidden = hidden[:, :B, :H]
    return outputs, hidden


# ----------------------------- pure-JAX reference ---------------------------
def _ref_gru_dir(emb, lengths, wih, whh, bih, bhh, reverse):
    T, B, _ = emb.shape
    H = whh.shape[1]
    h = jnp.zeros((B, H), jnp.float32)
    outs = [None] * T
    ts = range(T - 1, -1, -1) if reverse else range(T)
    for t in ts:
        x = emb[t]
        r = jax.nn.sigmoid(x @ wih[0] + bih[0] + h @ whh[0] + bhh[0])
        z = jax.nn.sigmoid(x @ wih[1] + bih[1] + h @ whh[1] + bhh[1])
        n = jnp.tanh(x @ wih[2] + bih[2] + r * (h @ whh[2] + bhh[2]))
        h_new = (1.0 - z) * n + z * h
        mask = t < lengths
        outs[t] = jnp.where(mask, h_new, 0.0)
        h = jnp.where(mask, h_new, h)
    return jnp.stack(outs, 0), h


def reference_forward(input_seqs, input_lengths, params):
    emb = jnp.take(params["embedding"],
                   jnp.transpose(input_seqs, (1, 0)), axis=0)
    B = input_seqs.shape[0]
    lengths = jnp.asarray(input_lengths, jnp.int32).reshape(B, 1)
    of, hf = _ref_gru_dir(emb, lengths, params["wih_f"], params["whh_f"],
                          params["bih_f"], params["bhh_f"], reverse=False)
    ob, hb = _ref_gru_dir(emb, lengths, params["wih_r"], params["whh_r"],
                          params["bih_r"], params["bhh_r"], reverse=True)
    t_out = int(max(input_lengths))
    return (of + ob)[:t_out], jnp.stack([hf, hb], 0)


if __name__ == "__main__":
    key = jax.random.PRNGKey(0)
    input_size, embed_size, hidden_size = 50, 16, 32
    B, T = 2, 8

    k_tok, k_par = jax.random.split(key)
    params = init_params(k_par, input_size, embed_size, hidden_size)
    input_seqs = jax.random.randint(k_tok, (B, T), 0, input_size, jnp.int32)
    input_lengths = [8, 5]   # sorted descending, as pack_padded_sequence requires

    outputs, hidden = encoder_rnn_forward(input_seqs, input_lengths, params)
    jax.block_until_ready((outputs, hidden))

    ref_out, ref_hid = reference_forward(input_seqs, input_lengths, params)
    assert outputs.shape == (max(input_lengths), B, hidden_size)
    assert hidden.shape == (2, B, hidden_size)
    # bf16 matmul operands (f32 accumulation/gate math) -> relaxed tolerance
    assert jnp.allclose(outputs, ref_out, atol=2e-2), "outputs mismatch"
    assert jnp.allclose(hidden, ref_hid, atol=2e-2), "hidden mismatch"
    print("KERNEL_OK")
</pallas_src>

<mosaic_0001>
module attributes {stable_mosaic.version = 11 : i64} {
  func.func @_bigru_kernel(%arg0: memref<64x128xbf16, #tpu.memory_space<vmem>>, %arg1: memref<8x1xi32, #tpu.memory_space<vmem>>, %arg2: memref<128x768xbf16, #tpu.memory_space<vmem>>, %arg3: memref<1x768xf32, #tpu.memory_space<vmem>>, %arg4: memref<128x384xbf16, #tpu.memory_space<vmem>>, %arg5: memref<1x384xf32, #tpu.memory_space<vmem>>, %arg6: memref<128x384xbf16, #tpu.memory_space<vmem>>, %arg7: memref<1x384xf32, #tpu.memory_space<vmem>>, %arg8: memref<8x8x128xf32, #tpu.memory_space<vmem>>, %arg9: memref<8x8x128xf32, #tpu.memory_space<vmem>>, %arg10: memref<2x8x128xf32, #tpu.memory_space<vmem>>, %arg11: memref<64x768xf32, #tpu.memory_space<vmem>>) attributes {dimension_semantics = [], scalar_prefetch = 0 : i64, scratch_operands = 1 : i64, tpu.core_type = #tpu.core_type<tc>} {
    %c0 = arith.constant 0 : index
    %c0_0 = arith.constant 0 : index
    %0 = vector.load %arg0[%c0, %c0_0] : memref<64x128xbf16, #tpu.memory_space<vmem>>, vector<64x128xbf16>
    %c0_1 = arith.constant 0 : index
    %c0_2 = arith.constant 0 : index
    %1 = vector.load %arg2[%c0_1, %c0_2] : memref<128x768xbf16, #tpu.memory_space<vmem>>, vector<128x768xbf16>
    %cst = arith.constant dense<0.000000e+00> : vector<64x768xf32>
    %2 = tpu.matmul %0, %1, %cst {dimension_numbers = #tpu.dot_dimension_numbers<[1], [0], [0], [1], [0, 0, 1, 1], [], []>} : vector<64x128xbf16>, vector<128x768xbf16>, vector<64x768xf32> -> vector<64x768xf32>
    %c0_3 = arith.constant 0 : index
    %c0_4 = arith.constant 0 : index
    %3 = vector.load %arg3[%c0_3, %c0_4] : memref<1x768xf32, #tpu.memory_space<vmem>>, vector<1x768xf32>
    %4 = vector.broadcast %3 : vector<1x768xf32> to vector<64x768xf32>
    %5 = arith.addf %2, %4 : vector<64x768xf32>
    %c0_5 = arith.constant 0 : index
    %c0_6 = arith.constant 0 : index
    %6 = vector.load %arg11[%c0_5, %c0_6] : memref<64x768xf32, #tpu.memory_space<vmem>>, vector<64x768xf32>
    tpu.vector_store %arg11[%c0_5, %c0_6], %5 {strides = array<i32>} : memref<64x768xf32, #tpu.memory_space<vmem>>, vector<64x768xf32>,
    %c0_7 = arith.constant 0 : index
    %c0_8 = arith.constant 0 : index
    %7 = vector.load %arg4[%c0_7, %c0_8] : memref<128x384xbf16, #tpu.memory_space<vmem>>, vector<128x384xbf16>
    %c0_9 = arith.constant 0 : index
    %c0_10 = arith.constant 0 : index
    %8 = vector.load %arg6[%c0_9, %c0_10] : memref<128x384xbf16, #tpu.memory_space<vmem>>, vector<128x384xbf16>
    %c0_11 = arith.constant 0 : index
    %c0_12 = arith.constant 0 : index
    %9 = vector.load %arg5[%c0_11, %c0_12] : memref<1x384xf32, #tpu.memory_space<vmem>>, vector<1x384xf32>
    %10 = vector.shape_cast %9 : vector<1x384xf32> to vector<1x384xf32>
    %11 = vector.broadcast %10 : vector<1x384xf32> to vector<8x384xf32>
    %c0_13 = arith.constant 0 : index
    %c0_14 = arith.constant 0 : index
    %12 = vector.load %arg7[%c0_13, %c0_14] : memref<1x384xf32, #tpu.memory_space<vmem>>, vector<1x384xf32>
    %13 = vector.shape_cast %12 : vector<1x384xf32> to vector<1x384xf32>
    %14 = vector.broadcast %13 : vector<1x384xf32> to vector<8x384xf32>
    %c0_15 = arith.constant 0 : index
    %c0_16 = arith.constant 0 : index
    %15 = vector.load %arg1[%c0_15, %c0_16] : memref<8x1xi32, #tpu.memory_space<vmem>>, vector<8x1xi32>
    %cst_17 = arith.constant 0.000000e+00 : f32
    %16 = vector.broadcast %cst_17 : f32 to vector<8x128xf32>
    %c0_i32 = arith.constant 0 : i32
    %c7_i32 = arith.constant 7 : i32
    %17 = arith.subi %c7_i32, %c0_i32 : i32
    %c8_i32 = arith.constant 8 : i32
    %18 = arith.muli %c0_i32, %c8_i32 : i32
    %19 = tpu.assume_multiple %18, 8 : i32
    %20 = arith.index_cast %19 : i32 to index
    %c0_18 = arith.constant 0 : index
    %21 = vector.load %arg11[%20, %c0_18] : memref<64x768xf32, #tpu.memory_space<vmem>>, vector<8x384xf32>
    %22 = arith.truncf %16 : vector<8x128xf32> to vector<8x128xbf16>
    %cst_19 = arith.constant dense<0.000000e+00> : vector<8x384xf32>
    %23 = tpu.matmul %22, %7, %cst_19 {dimension_numbers = #tpu.dot_dimension_numbers<[1], [0], [0], [1], [0, 0, 1, 1], [], []>} : vector<8x128xbf16>, vector<128x384xbf16>, vector<8x384xf32> -> vector<8x384xf32>
    %24 = arith.addf %23, %11 : vector<8x384xf32>
    %25 = vector.extract_strided_slice %21 {offsets = [0, 0], sizes = [8, 128], strides = [1, 1]} : vector<8x384xf32> to vector<8x128xf32>
    %26 = vector.extract_strided_slice %24 {offsets = [0, 0], sizes = [8, 128], strides = [1, 1]} : vector<8x384xf32> to vector<8x128xf32>
    %27 = arith.addf %25, %26 : vector<8x128xf32>
    %28 = arith.negf %27 : vector<8x128xf32>
    %29 = math.exp %28 : vector<8x128xf32>
    %cst_20 = arith.constant 1.000000e+00 : f32
    %30 = vector.broadcast %cst_20 : f32 to vector<8x128xf32>
    %31 = arith.addf %30, %29 : vector<8x128xf32>
    %32 = arith.divf %30, %31 : vector<8x128xf32>
    %33 = vector.extract_strided_slice %21 {offsets = [0, 128], sizes = [8, 128], strides = [1, 1]} : vector<8x384xf32> to vector<8x128xf32>
    %34 = vector.extract_strided_slice %24 {offsets = [0, 128], sizes = [8, 128], strides = [1, 1]} : vector<8x384xf32> to vector<8x128xf32>
    %35 = arith.addf %33, %34 : vector<8x128xf32>
    %36 = arith.negf %35 : vector<8x128xf32>
    %37 = math.exp %36 : vector<8x128xf32>
    %cst_21 = arith.constant 1.000000e+00 : f32
    %38 = vector.broadcast %cst_21 : f32 to vector<8x128xf32>
    %39 = arith.addf %38, %37 : vector<8x128xf32>
    %40 = arith.divf %38, %39 : vector<8x128xf32>
    %41 = vector.extract_strided_slice %21 {offsets = [0, 256], sizes = [8, 128], strides = [1, 1]} : vector<8x384xf32> to vector<8x128xf32>
    %42 = vector.extract_strided_slice %24 {offsets = [0, 256], sizes = [8, 128], strides = [1, 1]} : vector<8x384xf32> to vector<8x128xf32>
    %43 = arith.mulf %32, %42 : vector<8x128xf32>
    %44 = arith.addf %41, %43 : vector<8x128xf32>
    %45 = math.tanh %44 : vector<8x128xf32>
    %cst_22 = arith.constant 1.000000e+00 : f32
    %46 = vector.broadcast %cst_22 : f32 to vector<8x128xf32>
    %47 = arith.subf %46, %40 : vector<8x128xf32>
    %48 = arith.mulf %47, %45 : vector<8x128xf32>
    %49 = arith.mulf %40, %16 : vector<8x128xf32>
    %50 = arith.addf %48, %49 : vector<8x128xf32>
    %51 = vector.broadcast %c0_i32 : i32 to vector<8x1xi32>
    %52 = arith.cmpi slt, %51, %15 : vector<8x1xi32>
    %cst_23 = arith.constant 0.000000e+00 : f32
    %53 = vector.shape_cast %52 : vector<8x1xi1> to vector<8x1xi1>
    %54 = vector.broadcast %53 : vector<8x1xi1> to vector<8x128xi1>
    %55 = vector.broadcast %cst_23 : f32 to vector<8x128xf32>
    %56 = arith.select %54, %50, %55 : vector<8x128xi1>, vector<8x128xf32>
    %57 = arith.index_cast %c0_i32 : i32 to index
    %c0_24 = arith.constant 0 : index
    %c0_25 = arith.constant 0 : index
    %58 = vector.load %arg8[%57, %c0_24, %c0_25] : memref<8x8x128xf32, #tpu.memory_space<vmem>>, vector<1x8x128xf32>
    %59 = vector.shape_cast %58 : vector<1x8x128xf32> to vector<8x128xf32>
    %60 = vector.shape_cast %56 : vector<8x128xf32> to vector<1x8x128xf32>
    tpu.vector_store %arg8[%57, %c0_24, %c0_25], %60 {strides = array<i32>} : memref<8x8x128xf32, #tpu.memory_space<vmem>>, vector<1x8x128xf32>,
    %61 = vector.shape_cast %52 : vector<8x1xi1> to vector<8x1xi1>
    %62 = vector.broadcast %61 : vector<8x1xi1> to vector<8x128xi1>
    %63 = arith.select %62, %50, %16 : vector<8x128xi1>, vector<8x128xf32>
    %c8_i32_26 = arith.constant 8 : i32
    %64 = arith.muli %17, %c8_i32_26 : i32
    %65 = tpu.assume_multiple %64, 8 : i32
    %66 = arith.index_cast %65 : i32 to index
    %c384 = arith.constant 384 : index
    %67 = vector.load %arg11[%66, %c384] : memref<64x768xf32, #tpu.memory_space<vmem>>, vector<8x384xf32>
    %68 = arith.truncf %16 : vector<8x128xf32> to vector<8x128xbf16>
    %cst_27 = arith.constant dense<0.000000e+00> : vector<8x384xf32>
    %69 = tpu.matmul %68, %8, %cst_27 {dimension_numbers = #tpu.dot_dimension_numbers<[1], [0], [0], [1], [0, 0, 1, 1], [], []>} : vector<8x128xbf16>, vector<128x384xbf16>, vector<8x384xf32> -> vector<8x384xf32>
    %70 = arith.addf %69, %14 : vector<8x384xf32>
    %71 = vector.extract_strided_slice %67 {offsets = [0, 0], sizes = [8, 128], strides = [1, 1]} : vector<8x384xf32> to vector<8x128xf32>
    %72 = vector.extract_strided_slice %70 {offsets = [0, 0], sizes = [8, 128], strides = [1, 1]} : vector<8x384xf32> to vector<8x128xf32>
    %73 = arith.addf %71, %72 : vector<8x128xf32>
    %74 = arith.negf %73 : vector<8x128xf32>
    %75 = math.exp %74 : vector<8x128xf32>
    %cst_28 = arith.constant 1.000000e+00 : f32
    %76 = vector.broadcast %cst_28 : f32 to vector<8x128xf32>
    %77 = arith.addf %76, %75 : vector<8x128xf32>
    %78 = arith.divf %76, %77 : vector<8x128xf32>
    %79 = vector.extract_strided_slice %67 {offsets = [0, 128], sizes = [8, 128], strides = [1, 1]} : vector<8x384xf32> to vector<8x128xf32>
    %80 = vector.extract_strided_slice %70 {offsets = [0, 128], sizes = [8, 128], strides = [1, 1]} : vector<8x384xf32> to vector<8x128xf32>
    %81 = arith.addf %79, %80 : vector<8x128xf32>
    %82 = arith.negf %81 : vector<8x128xf32>
    %83 = math.exp %82 : vector<8x128xf32>
    %cst_29 = arith.constant 1.000000e+00 : f32
    %84 = vector.broadcast %cst_29 : f32 to vector<8x128xf32>
    %85 = arith.addf %84, %83 : vector<8x128xf32>
    %86 = arith.divf %84, %85 : vector<8x128xf32>
    %87 = vector.extract_strided_slice %67 {offsets = [0, 256], sizes = [8, 128], strides = [1, 1]} : vector<8x384xf32> to vector<8x128xf32>
    %88 = vector.extract_strided_slice %70 {offsets = [0, 256], sizes = [8, 128], strides = [1, 1]} : vector<8x384xf32> to vector<8x128xf32>
    %89 = arith.mulf %78, %88 : vector<8x128xf32>
    %90 = arith.addf %87, %89 : vector<8x128xf32>
    %91 = math.tanh %90 : vector<8x128xf32>
    %cst_30 = arith.constant 1.000000e+00 : f32
    %92 = vector.broadcast %cst_30 : f32 to vector<8x128xf32>
    %93 = arith.subf %92, %86 : vector<8x128xf32>
    %94 = arith.mulf %93, %91 : vector<8x128xf32>
    %95 = arith.mulf %86, %16 : vector<8x128xf32>
    %96 = arith.addf %94, %95 : vector<8x128xf32>
    %97 = vector.broadcast %17 : i32 to vector<8x1xi32>
    %98 = arith.cmpi slt, %97, %15 : vector<8x1xi32>
    %cst_31 = arith.constant 0.000000e+00 : f32
    %99 = vector.shape_cast %98 : vector<8x1xi1> to vector<8x1xi1>
    %100 = vector.broadcast %99 : vector<8x1xi1> to vector<8x128xi1>
    %101 = vector.broadcast %cst_31 : f32 to vector<8x128xf32>
    %102 = arith.select %100, %96, %101 : vector<8x128xi1>, vector<8x128xf32>
    %103 = arith.index_cast %17 : i32 to index
    %c0_32 = arith.constant 0 : index
    %c0_33 = arith.constant 0 : index
    %104 = vector.load %arg9[%103, %c0_32, %c0_33] : memref<8x8x128xf32, #tpu.memory_space<vmem>>, vector<1x8x128xf32>
    %105 = vector.shape_cast %104 : vector<1x8x128xf32> to vector<8x128xf32>
    %106 = vector.shape_cast %102 : vector<8x128xf32> to vector<1x8x128xf32>
    tpu.vector_store %arg9[%103, %c0_32, %c0_33], %106 {strides = array<i32>} : memref<8x8x128xf32, #tpu.memory_space<vmem>>, vector<1x8x128xf32>,
    %107 = vector.shape_cast %98 : vector<8x1xi1> to vector<8x1xi1>
    %108 = vector.broadcast %107 : vector<8x1xi1> to vector<8x128xi1>
    %109 = arith.select %108, %96, %16 : vector<8x128xi1>, vector<8x128xf32>
    %c1_i32 = arith.constant 1 : i32
    %c7_i32_34 = arith.constant 7 : i32
    %110 = arith.subi %c7_i32_34, %c1_i32 : i32
    %c8_i32_35 = arith.constant 8 : i32
    %111 = arith.muli %c1_i32, %c8_i32_35 : i32
    %112 = tpu.assume_multiple %111, 8 : i32
    %113 = arith.index_cast %112 : i32 to index
    %c0_36 = arith.constant 0 : index
    %114 = vector.load %arg11[%113, %c0_36] : memref<64x768xf32, #tpu.memory_space<vmem>>, vector<8x384xf32>
    %115 = arith.truncf %63 : vector<8x128xf32> to vector<8x128xbf16>
    %cst_37 = arith.constant dense<0.000000e+00> : vector<8x384xf32>
    %116 = tpu.matmul %115, %7, %cst_37 {dimension_numbers = #tpu.dot_dimension_numbers<[1], [0], [0], [1], [0, 0, 1, 1], [], []>} : vector<8x128xbf16>, vector<128x384xbf16>, vector<8x384xf32> -> vector<8x384xf32>
    %117 = arith.addf %116, %11 : vector<8x384xf32>
    %118 = vector.extract_strided_slice %114 {offsets = [0, 0], sizes = [8, 128], strides = [1, 1]} : vector<8x384xf32> to vector<8x128xf32>
    %119 = vector.extract_strided_slice %117 {offsets = [0, 0], sizes = [8, 128], strides = [1, 1]} : vector<8x384xf32> to vector<8x128xf32>
    %120 = arith.addf %118, %119 : vector<8x128xf32>
    %121 = arith.negf %120 : vector<8x128xf32>
    %122 = math.exp %121 : vector<8x128xf32>
    %cst_38 = arith.constant 1.000000e+00 : f32
    %123 = vector.broadcast %cst_38 : f32 to vector<8x128xf32>
    %124 = arith.addf %123, %122 : vector<8x128xf32>
    %125 = arith.divf %123, %124 : vector<8x128xf32>
    %126 = vector.extract_strided_slice %114 {offsets = [0, 128], sizes = [8, 128], strides = [1, 1]} : vector<8x384xf32> to vector<8x128xf32>
    %127 = vector.extract_strided_slice %117 {offsets = [0, 128], sizes = [8, 128], strides = [1, 1]} : vector<8x384xf32> to vector<8x128xf32>
    %128 = arith.addf %126, %127 : vector<8x128xf32>
    %129 = arith.negf %128 : vector<8x128xf32>
    %130 = math.exp %129 : vector<8x128xf32>
    %cst_39 = arith.constant 1.000000e+00 : f32
    %131 = vector.broadcast %cst_39 : f32 to vector<8x128xf32>
    %132 = arith.addf %131, %130 : vector<8x128xf32>
    %133 = arith.divf %131, %132 : vector<8x128xf32>
    %134 = vector.extract_strided_slice %114 {offsets = [0, 256], sizes = [8, 128], strides = [1, 1]} : vector<8x384xf32> to vector<8x128xf32>
    %135 = vector.extract_strided_slice %117 {offsets = [0, 256], sizes = [8, 128], strides = [1, 1]} : vector<8x384xf32> to vector<8x128xf32>
    %136 = arith.mulf %125, %135 : vector<8x128xf32>
    %137 = arith.addf %134, %136 : vector<8x128xf32>
    %138 = math.tanh %137 : vector<8x128xf32>
    %cst_40 = arith.constant 1.000000e+00 : f32
    %139 = vector.broadcast %cst_40 : f32 to vector<8x128xf32>
    %140 = arith.subf %139, %133 : vector<8x128xf32>
    %141 = arith.mulf %140, %138 : vector<8x128xf32>
    %142 = arith.mulf %133, %63 : vector<8x128xf32>
    %143 = arith.addf %141, %142 : vector<8x128xf32>
    %144 = vector.broadcast %c1_i32 : i32 to vector<8x1xi32>
    %145 = arith.cmpi slt, %144, %15 : vector<8x1xi32>
    %cst_41 = arith.constant 0.000000e+00 : f32
    %146 = vector.shape_cast %145 : vector<8x1xi1> to vector<8x1xi1>
    %147 = vector.broadcast %146 : vector<8x1xi1> to vector<8x128xi1>
    %148 = vector.broadcast %cst_41 : f32 to vector<8x128xf32>
    %149 = arith.select %147, %143, %148 : vector<8x128xi1>, vector<8x128xf32>
    %150 = arith.index_cast %c1_i32 : i32 to index
    %c0_42 = arith.constant 0 : index
    %c0_43 = arith.constant 0 : index
    %151 = vector.load %arg8[%150, %c0_42, %c0_43] : memref<8x8x128xf32, #tpu.memory_space<vmem>>, vector<1x8x128xf32>
    %152 = vector.shape_cast %151 : vector<1x8x128xf32> to vector<8x128xf32>
    %153 = vector.shape_cast %149 : vector<8x128xf32> to vector<1x8x128xf32>
    tpu.vector_store %arg8[%150, %c0_42, %c0_43], %153 {strides = array<i32>} : memref<8x8x128xf32, #tpu.memory_space<vmem>>, vector<1x8x128xf32>,
    %154 = vector.shape_cast %145 : vector<8x1xi1> to vector<8x1xi1>
    %155 = vector.broadcast %154 : vector<8x1xi1> to vector<8x128xi1>
    %156 = arith.select %155, %143, %63 : vector<8x128xi1>, vector<8x128xf32>
    %c8_i32_44 = arith.constant 8 : i32
    %157 = arith.muli %110, %c8_i32_44 : i32
    %158 = tpu.assume_multiple %157, 8 : i32
    %159 = arith.index_cast %158 : i32 to index
    %c384_45 = arith.constant 384 : index
    %160 = vector.load %arg11[%159, %c384_45] : memref<64x768xf32, #tpu.memory_space<vmem>>, vector<8x384xf32>
    %161 = arith.truncf %109 : vector<8x128xf32> to vector<8x128xbf16>
    %cst_46 = arith.constant dense<0.000000e+00> : vector<8x384xf32>
    %162 = tpu.matmul %161, %8, %cst_46 {dimension_numbers = #tpu.dot_dimension_numbers<[1], [0], [0], [1], [0, 0, 1, 1], [], []>} : vector<8x128xbf16>, vector<128x384xbf16>, vector<8x384xf32> -> vector<8x384xf32>
    %163 = arith.addf %162, %14 : vector<8x384xf32>
    %164 = vector.extract_strided_slice %160 {offsets = [0, 0], sizes = [8, 128], strides = [1, 1]} : vector<8x384xf32> to vector<8x128xf32>
    %165 = vector.extract_strided_slice %163 {offsets = [0, 0], sizes = [8, 128], strides = [1, 1]} : vector<8x384xf32> to vector<8x128xf32>
    %166 = arith.addf %164, %165 : vector<8x128xf32>
    %167 = arith.negf %166 : vector<8x128xf32>
    %168 = math.exp %167 : vector<8x128xf32>
    %cst_47 = arith.constant 1.000000e+00 : f32
    %169 = vector.broadcast %cst_47 : f32 to vector<8x128xf32>
    %170 = arith.addf %169, %168 : vector<8x128xf32>
    %171 = arith.divf %169, %170 : vector<8x128xf32>
    %172 = vector.extract_strided_slice %160 {offsets = [0, 128], sizes = [8, 128], strides = [1, 1]} : vector<8x384xf32> to vector<8x128xf32>
    %173 = vector.extract_strided_slice %163 {offsets = [0, 128], sizes = [8, 128], strides = [1, 1]} : vector<8x384xf32> to vector<8x128xf32>
    %174 = arith.addf %172, %173 : vector<8x128xf32>
    %175 = arith.negf %174 : vector<8x128xf32>
    %176 = math.exp %175 : vector<8x128xf32>
    %cst_48 = arith.constant 1.000000e+00 : f32
    %177 = vector.broadcast %cst_48 : f32 to vector<8x128xf32>
    %178 = arith.addf %177, %176 : vector<8x128xf32>
    %179 = arith.divf %177, %178 : vector<8x128xf32>
    %180 = vector.extract_strided_slice %160 {offsets = [0, 256], sizes = [8, 128], strides = [1, 1]} : vector<8x384xf32> to vector<8x128xf32>
    %181 = vector.extract_strided_slice %163 {offsets = [0, 256], sizes = [8, 128], strides = [1, 1]} : vector<8x384xf32> to vector<8x128xf32>
    %182 = arith.mulf %171, %181 : vector<8x128xf32>
    %183 = arith.addf %180, %182 : vector<8x128xf32>
    %184 = math.tanh %183 : vector<8x128xf32>
    %cst_49 = arith.constant 1.000000e+00 : f32
    %185 = vector.broadcast %cst_49 : f32 to vector<8x128xf32>
    %186 = arith.subf %185, %179 : vector<8x128xf32>
    %187 = arith.mulf %186, %184 : vector<8x128xf32>
    %188 = arith.mulf %179, %109 : vector<8x128xf32>
    %189 = arith.addf %187, %188 : vector<8x128xf32>
    %190 = vector.broadcast %110 : i32 to vector<8x1xi32>
    %191 = arith.cmpi slt, %190, %15 : vector<8x1xi32>
    %cst_50 = arith.constant 0.000000e+00 : f32
    %192 = vector.shape_cast %191 : vector<8x1xi1> to vector<8x1xi1>
    %193 = vector.broadcast %192 : vector<8x1xi1> to vector<8x128xi1>
    %194 = vector.broadcast %cst_50 : f32 to vector<8x128xf32>
    %195 = arith.select %193, %189, %194 : vector<8x128xi1>, vector<8x128xf32>
    %196 = arith.index_cast %110 : i32 to index
    %c0_51 = arith.constant 0 : index
    %c0_52 = arith.constant 0 : index
    %197 = vector.load %arg9[%196, %c0_51, %c0_52] : memref<8x8x128xf32, #tpu.memory_space<vmem>>, vector<1x8x128xf32>
    %198 = vector.shape_cast %197 : vector<1x8x128xf32> to vector<8x128xf32>
    %199 = vector.shape_cast %195 : vector<8x128xf32> to vector<1x8x128xf32>
    tpu.vector_store %arg9[%196, %c0_51, %c0_52], %199 {strides = array<i32>} : memref<8x8x128xf32, #tpu.memory_space<vmem>>, vector<1x8x128xf32>,
    %200 = vector.shape_cast %191 : vector<8x1xi1> to vector<8x1xi1>
    %201 = vector.broadcast %200 : vector<8x1xi1> to vector<8x128xi1>
    %202 = arith.select %201, %189, %109 : vector<8x128xi1>, vector<8x128xf32>
    %c2_i32 = arith.constant 2 : i32
    %c7_i32_53 = arith.constant 7 : i32
    %203 = arith.subi %c7_i32_53, %c2_i32 : i32
    %c8_i32_54 = arith.constant 8 : i32
    %204 = arith.muli %c2_i32, %c8_i32_54 : i32
    %205 = tpu.assume_multiple %204, 8 : i32
    %206 = arith.index_cast %205 : i32 to index
    %c0_55 = arith.constant 0 : index
    %207 = vector.load %arg11[%206, %c0_55] : memref<64x768xf32, #tpu.memory_space<vmem>>, vector<8x384xf32>
    %208 = arith.truncf %156 : vector<8x128xf32> to vector<8x128xbf16>
    %cst_56 = arith.constant dense<0.000000e+00> : vector<8x384xf32>
    %209 = tpu.matmul %208, %7, %cst_56 {dimension_numbers = #tpu.dot_dimension_numbers<[1], [0], [0], [1], [0, 0, 1, 1], [], []>} : vector<8x128xbf16>, vector<128x384xbf16>, vector<8x384xf32> -> vector<8x384xf32>
    %210 = arith.addf %209, %11 : vector<8x384xf32>
    %211 = vector.extract_strided_slice %207 {offsets = [0, 0], sizes = [8, 128], strides = [1, 1]} : vector<8x384xf32> to vector<8x128xf32>
    %212 = vector.extract_strided_slice %210 {offsets = [0, 0], sizes = [8, 128], strides = [1, 1]} : vector<8x384xf32> to vector<8x128xf32>
    %213 = arith.addf %211, %212 : vector<8x128xf32>
    %214 = arith.negf %213 : vector<8x128xf32>
    %215 = math.exp %214 : vector<8x128xf32>
    %cst_57 = arith.constant 1.000000e+00 : f32
    %216 = vector.broadcast %cst_57 : f32 to vector<8x128xf32>
    %217 = arith.addf %216, %215 : vector<8x128xf32>
    %218 = arith.divf %216, %217 : vector<8x128xf32>
    %219 = vector.extract_strided_slice %207 {offsets = [0, 128], sizes = [8, 128], strides = [1, 1]} : vector<8x384xf32> to vector<8x128xf32>
    %220 = vector.extract_strided_slice %210 {offsets = [0, 128], sizes = [8, 128], strides = [1, 1]} : vector<8x384xf32> to vector<8x128xf32>
    %221 = arith.addf %219, %220 : vector<8x128xf32>
    %222 = arith.negf %221 : vector<8x128xf32>
    %223 = math.exp %222 : vector<8x128xf32>
    %cst_58 = arith.constant 1.000000e+00 : f32
    %224 = vector.broadcast %cst_58 : f32 to vector<8x128xf32>
    %225 = arith.addf %224, %223 : vector<8x128xf32>
    %226 = arith.divf %224, %225 : vector<8x128xf32>
    %227 = vector.extract_strided_slice %207 {offsets = [0, 256], sizes = [8, 128], strides = [1, 1]} : vector<8x384xf32> to vector<8x128xf32>
    %228 = vector.extract_strided_slice %210 {offsets = [0, 256], sizes = [8, 128], strides = [1, 1]} : vector<8x384xf32> to vector<8x128xf32>
    %229 = arith.mulf %218, %228 : vector<8x128xf32>
    %230 = arith.addf %227, %229 : vector<8x128xf32>
    %231 = math.tanh %230 : vector<8x128xf32>
    %cst_59 = arith.constant 1.000000e+00 : f32
    %232 = vector.broadcast %cst_59 : f32 to vector<8x128xf32>
    %233 = arith.subf %232, %226 : vector<8x128xf32>
    %234 = arith.mulf %233, %231 : vector<8x128xf32>
    %235 = arith.mulf %226, %156 : vector<8x128xf32>
    %236 = arith.addf %234, %235 : vector<8x128xf32>
    %237 = vector.broadcast %c2_i32 : i32 to vector<8x1xi32>
    %238 = arith.cmpi slt, %237, %15 : vector<8x1xi32>
    %cst_60 = arith.constant 0.000000e+00 : f32
    %239 = vector.shape_cast %238 : vector<8x1xi1> to vector<8x1xi1>
    %240 = vector.broadcast %239 : vector<8x1xi1> to vector<8x128xi1>
    %241 = vector.broadcast %cst_60 : f32 to vector<8x128xf32>
    %242 = arith.select %240, %236, %241 : vector<8x128xi1>, vector<8x128xf32>
    %243 = arith.index_cast %c2_i32 : i32 to index
    %c0_61 = arith.constant 0 : index
    %c0_62 = arith.constant 0 : index
    %244 = vector.load %arg8[%243, %c0_61, %c0_62] : memref<8x8x128xf32, #tpu.memory_space<vmem>>, vector<1x8x128xf32>
    %245 = vector.shape_cast %244 : vector<1x8x128xf32> to vector<8x128xf32>
    %246 = vector.shape_cast %242 : vector<8x128xf32> to vector<1x8x128xf32>
    tpu.vector_store %arg8[%243, %c0_61, %c0_62], %246 {strides = array<i32>} : memref<8x8x128xf32, #tpu.memory_space<vmem>>, vector<1x8x128xf32>,
    %247 = vector.shape_cast %238 : vector<8x1xi1> to vector<8x1xi1>
    %248 = vector.broadcast %247 : vector<8x1xi1> to vector<8x128xi1>
    %249 = arith.select %248, %236, %156 : vector<8x128xi1>, vector<8x128xf32>
    %c8_i32_63 = arith.constant 8 : i32
    %250 = arith.muli %203, %c8_i32_63 : i32
    %251 = tpu.assume_multiple %250, 8 : i32
    %252 = arith.index_cast %251 : i32 to index
    %c384_64 = arith.constant 384 : index
    %253 = vector.load %arg11[%252, %c384_64] : memref<64x768xf32, #tpu.memory_space<vmem>>, vector<8x384xf32>
    %254 = arith.truncf %202 : vector<8x128xf32> to vector<8x128xbf16>
    %cst_65 = arith.constant dense<0.000000e+00> : vector<8x384xf32>
    %255 = tpu.matmul %254, %8, %cst_65 {dimension_numbers = #tpu.dot_dimension_numbers<[1], [0], [0], [1], [0, 0, 1, 1], [], []>} : vector<8x128xbf16>, vector<128x384xbf16>, vector<8x384xf32> -> vector<8x384xf32>
    %256 = arith.addf %255, %14 : vector<8x384xf32>
    %257 = vector.extract_strided_slice %253 {offsets = [0, 0], sizes = [8, 128], strides = [1, 1]} : vector<8x384xf32> to vector<8x128xf32>
    %258 = vector.extract_strided_slice %256 {offsets = [0, 0], sizes = [8, 128], strides = [1, 1]} : vector<8x384xf32> to vector<8x128xf32>
    %259 = arith.addf %257, %258 : vector<8x128xf32>
    %260 = arith.negf %259 : vector<8x128xf32>
    %261 = math.exp %260 : vector<8x128xf32>
    %cst_66 = arith.constant 1.000000e+00 : f32
    %262 = vector.broadcast %cst_66 : f32 to vector<8x128xf32>
    %263 = arith.addf %262, %261 : vector<8x128xf32>
    %264 = arith.divf %262, %263 : vector<8x128xf32>
    %265 = vector.extract_strided_slice %253 {offsets = [0, 128], sizes = [8, 128], strides = [1, 1]} : vector<8x384xf32> to vector<8x128xf32>
    %266 = vector.extract_strided_slice %256 {offsets = [0, 128], sizes = [8, 128], strides = [1, 1]} : vector<8x384xf32> to vector<8x128xf32>
    %267 = arith.addf %265, %266 : vector<8x128xf32>
    %268 = arith.negf %267 : vector<8x128xf32>
    %269 = math.exp %268 : vector<8x128xf32>
    %cst_67 = arith.constant 1.000000e+00 : f32
    %270 = vector.broadcast %cst_67 : f32 to vector<8x128xf32>
    %271 = arith.addf %270, %269 : vector<8x128xf32>
    %272 = arith.divf %270, %271 : vector<8x128xf32>
    %273 = vector.extract_strided_slice %253 {offsets = [0, 256], sizes = [8, 128], strides = [1, 1]} : vector<8x384xf32> to vector<8x128xf32>
    %274 = vector.extract_strided_slice %256 {offsets = [0, 256], sizes = [8, 128], strides = [1, 1]} : vector<8x384xf32> to vector<8x128xf32>
    %275 = arith.mulf %264, %274 : vector<8x128xf32>
    %276 = arith.addf %273, %275 : vector<8x128xf32>
    %277 = math.tanh %276 : vector<8x128xf32>
    %cst_68 = arith.constant 1.000000e+00 : f32
    %278 = vector.broadcast %cst_68 : f32 to vector<8x128xf32>
    %279 = arith.subf %278, %272 : vector<8x128xf32>
    %280 = arith.mulf %279, %277 : vector<8x128xf32>
    %281 = arith.mulf %272, %202 : vector<8x128xf32>
    %282 = arith.addf %280, %281 : vector<8x128xf32>
    %283 = vector.broadcast %203 : i32 to vector<8x1xi32>
    %284 = arith.cmpi slt, %283, %15 : vector<8x1xi32>
    %cst_69 = arith.constant 0.000000e+00 : f32
    %285 = vector.shape_cast %284 : vector<8x1xi1> to vector<8x1xi1>
    %286 = vector.broadcast %285 : vector<8x1xi1> to vector<8x128xi1>
    %287 = vector.broadcast %cst_69 : f32 to vector<8x128xf32>
    %288 = arith.select %286, %282, %287 : vector<8x128xi1>, vector<8x128xf32>
    %289 = arith.index_cast %203 : i32 to index
    %c0_70 = arith.constant 0 : index
    %c0_71 = arith.constant 0 : index
    %290 = vector.load %arg9[%289, %c0_70, %c0_71] : memref<8x8x128xf32, #tpu.memory_space<vmem>>, vector<1x8x128xf32>
    %291 = vector.shape_cast %290 : vector<1x8x128xf32> to vector<8x128xf32>
    %292 = vector.shape_cast %288 : vector<8x128xf32> to vector<1x8x128xf32>
    tpu.vector_store %arg9[%289, %c0_70, %c0_71], %292 {strides = array<i32>} : memref<8x8x128xf32, #tpu.memory_space<vmem>>, vector<1x8x128xf32>,
    %293 = vector.shape_cast %284 : vector<8x1xi1> to vector<8x1xi1>
    %294 = vector.broadcast %293 : vector<8x1xi1> to vector<8x128xi1>
    %295 = arith.select %294, %282, %202 : vector<8x128xi1>, vector<8x128xf32>
    %c3_i32 = arith.constant 3 : i32
    %c7_i32_72 = arith.constant 7 : i32
    %296 = arith.subi %c7_i32_72, %c3_i32 : i32
    %c8_i32_73 = arith.constant 8 : i32
    %297 = arith.muli %c3_i32, %c8_i32_73 : i32
    %298 = tpu.assume_multiple %297, 8 : i32
    %299 = arith.index_cast %298 : i32 to index
    %c0_74 = arith.constant 0 : index
    %300 = vector.load %arg11[%299, %c0_74] : memref<64x768xf32, #tpu.memory_space<vmem>>, vector<8x384xf32>
    %301 = arith.truncf %249 : vector<8x128xf32> to vector<8x128xbf16>
    %cst_75 = arith.constant dense<0.000000e+00> : vector<8x384xf32>
    %302 = tpu.matmul %301, %7, %cst_75 {dimension_numbers = #tpu.dot_dimension_numbers<[1], [0], [0], [1], [0, 0, 1, 1], [], []>} : vector<8x128xbf16>, vector<128x384xbf16>, vector<8x384xf32> -> vector<8x384xf32>
    %303 = arith.addf %302, %11 : vector<8x384xf32>
    %304 = vector.extract_strided_slice %300 {offsets = [0, 0], sizes = [8, 128], strides = [1, 1]} : vector<8x384xf32> to vector<8x128xf32>
    %305 = vector.extract_strided_slice %303 {offsets = [0, 0], sizes = [8, 128], strides = [1, 1]} : vector<8x384xf32> to vector<8x128xf32>
    %306 = arith.addf %304, %305 : vector<8x128xf32>
    %307 = arith.negf %306 : vector<8x128xf32>
    %308 = math.exp %307 : vector<8x128xf32>
    %cst_76 = arith.constant 1.000000e+00 : f32
    %309 = vector.broadcast %cst_76 : f32 to vector<8x128xf32>
    %310 = arith.addf %309, %308 : vector<8x128xf32>
    %311 = arith.divf %309, %310 : vector<8x128xf32>
    %312 = vector.extract_strided_slice %300 {offsets = [0, 128], sizes = [8, 128], strides = [1, 1]} : vector<8x384xf32> to vector<8x128xf32>
    %313 = vector.extract_strided_slice %303 {offsets = [0, 128], sizes = [8, 128], strides = [1, 1]} : vector<8x384xf32> to vector<8x128xf32>
    %314 = arith.addf %312, %313 : vector<8x128xf32>
    %315 = arith.negf %314 : vector<8x128xf32>
    %316 = math.exp %315 : vector<8x128xf32>
    %cst_77 = arith.constant 1.000000e+00 : f32
    %317 = vector.broadcast %cst_77 : f32 to vector<8x128xf32>
    %318 = arith.addf %317, %316 : vector<8x128xf32>
    %319 = arith.divf %317, %318 : vector<8x128xf32>
    %320 = vector.extract_strided_slice %300 {offsets = [0, 256], sizes = [8, 128], strides = [1, 1]} : vector<8x384xf32> to vector<8x128xf32>
    %321 = vector.extract_strided_slice %303 {offsets = [0, 256], sizes = [8, 128], strides = [1, 1]} : vector<8x384xf32> to vector<8x128xf32>
    %322 = arith.mulf %311, %321 : vector<8x128xf32>
    %323 = arith.addf %320, %322 : vector<8x128xf32>
    %324 = math.tanh %323 : vector<8x128xf32>
    %cst_78 = arith.constant 1.000000e+00 : f32
    %325 = vector.broadcast %cst_78 : f32 to vector<8x128xf32>
    %326 = arith.subf %325, %319 : vector<8x128xf32>
    %327 = arith.mulf %326, %324 : vector<8x128xf32>
    %328 = arith.mulf %319, %249 : vector<8x128xf32>
    %329 = arith.addf %327, %328 : vector<8x128xf32>
    %330 = vector.broadcast %c3_i32 : i32 to vector<8x1xi32>
    %331 = arith.cmpi slt, %330, %15 : vector<8x1xi32>
    %cst_79 = arith.constant 0.000000e+00 : f32
    %332 = vector.shape_cast %331 : vector<8x1xi1> to vector<8x1xi1>
    %333 = vector.broadcast %332 : vector<8x1xi1> to vector<8x128xi1>
    %334 = vector.broadcast %cst_79 : f32 to vector<8x128xf32>
    %335 = arith.select %333, %329, %334 : vector<8x128xi1>, vector<8x128xf32>
    %336 = arith.index_cast %c3_i32 : i32 to index
    %c0_80 = arith.constant 0 : index
    %c0_81 = arith.constant 0 : index
    %337 = vector.load %arg8[%336, %c0_80, %c0_81] : memref<8x8x128xf32, #tpu.memory_space<vmem>>, vector<1x8x128xf32>
    %338 = vector.shape_cast %337 : vector<1x8x128xf32> to vector<8x128xf32>
    %339 = vector.shape_cast %335 : vector<8x128xf32> to vector<1x8x128xf32>
    tpu.vector_store %arg8[%336, %c0_80, %c0_81], %339 {strides = array<i32>} : memref<8x8x128xf32, #tpu.memory_space<vmem>>, vector<1x8x128xf32>,
    %340 = vector.shape_cast %331 : vector<8x1xi1> to vector<8x1xi1>
    %341 = vector.broadcast %340 : vector<8x1xi1> to vector<8x128xi1>
    %342 = arith.select %341, %329, %249 : vector<8x128xi1>, vector<8x128xf32>
    %c8_i32_82 = arith.constant 8 : i32
    %343 = arith.muli %296, %c8_i32_82 : i32
    %344 = tpu.assume_multiple %343, 8 : i32
    %345 = arith.index_cast %344 : i32 to index
    %c384_83 = arith.constant 384 : index
    %346 = vector.load %arg11[%345, %c384_83] : memref<64x768xf32, #tpu.memory_space<vmem>>, vector<8x384xf32>
    %347 = arith.truncf %295 : vector<8x128xf32> to vector<8x128xbf16>
    %cst_84 = arith.constant dense<0.000000e+00> : vector<8x384xf32>
    %348 = tpu.matmul %347, %8, %cst_84 {dimension_numbers = #tpu.dot_dimension_numbers<[1], [0], [0], [1], [0, 0, 1, 1], [], []>} : vector<8x128xbf16>, vector<128x384xbf16>, vector<8x384xf32> -> vector<8x384xf32>
    %349 = arith.addf %348, %14 : vector<8x384xf32>
    %350 = vector.extract_strided_slice %346 {offsets = [0, 0], sizes = [8, 128], strides = [1, 1]} : vector<8x384xf32> to vector<8x128xf32>
    %351 = vector.extract_strided_slice %349 {offsets = [0, 0], sizes = [8, 128], strides = [1, 1]} : vector<8x384xf32> to vector<8x128xf32>
    %352 = arith.addf %350, %351 : vector<8x128xf32>
    %353 = arith.negf %352 : vector<8x128xf32>
    %354 = math.exp %353 : vector<8x128xf32>
    %cst_85 = arith.constant 1.000000e+00 : f32
    %355 = vector.broadcast %cst_85 : f32 to vector<8x128xf32>
    %356 = arith.addf %355, %354 : vector<8x128xf32>
    %357 = arith.divf %355, %356 : vector<8x128xf32>
    %358 = vector.extract_strided_slice %346 {offsets = [0, 128], sizes = [8, 128], strides = [1, 1]} : vector<8x384xf32> to vector<8x128xf32>
    %359 = vector.extract_strided_slice %349 {offsets = [0, 128], sizes = [8, 128], strides = [1, 1]} : vector<8x384xf32> to vector<8x128xf32>
    %360 = arith.addf %358, %359 : vector<8x128xf32>
    %361 = arith.negf %360 : vector<8x128xf32>
    %362 = math.exp %361 : vector<8x128xf32>
    %cst_86 = arith.constant 1.000000e+00 : f32
    %363 = vector.broadcast %cst_86 : f32 to vector<8x128xf32>
    %364 = arith.addf %363, %362 : vector<8x128xf32>
    %365 = arith.divf %363, %364 : vector<8x128xf32>
    %366 = vector.extract_strided_slice %346 {offsets = [0, 256], sizes = [8, 128], strides = [1, 1]} : vector<8x384xf32> to vector<8x128xf32>
    %367 = vector.extract_strided_slice %349 {offsets = [0, 256], sizes = [8, 128], strides = [1, 1]} : vector<8x384xf32> to vector<8x128xf32>
    %368 = arith.mulf %357, %367 : vector<8x128xf32>
    %369 = arith.addf %366, %368 : vector<8x128xf32>
    %370 = math.tanh %369 : vector<8x128xf32>
    %cst_87 = arith.constant 1.000000e+00 : f32
    %371 = vector.broadcast %cst_87 : f32 to vector<8x128xf32>
    %372 = arith.subf %371, %365 : vector<8x128xf32>
    %373 = arith.mulf %372, %370 : vector<8x128xf32>
    %374 = arith.mulf %365, %295 : vector<8x128xf32>
    %375 = arith.addf %373, %374 : vector<8x128xf32>
    %376 = vector.broadcast %296 : i32 to vector<8x1xi32>
    %377 = arith.cmpi slt, %376, %15 : vector<8x1xi32>
    %cst_88 = arith.constant 0.000000e+00 : f32
    %378 = vector.shape_cast %377 : vector<8x1xi1> to vector<8x1xi1>
    %379 = vector.broadcast %378 : vector<8x1xi1> to vector<8x128xi1>
    %380 = vector.broadcast %cst_88 : f32 to vector<8x128xf32>
    %381 = arith.select %379, %375, %380 : vector<8x128xi1>, vector<8x128xf32>
    %382 = arith.index_cast %296 : i32 to index
    %c0_89 = arith.constant 0 : index
    %c0_90 = arith.constant 0 : index
    %383 = vector.load %arg9[%382, %c0_89, %c0_90] : memref<8x8x128xf32, #tpu.memory_space<vmem>>, vector<1x8x128xf32>
    %384 = vector.shape_cast %383 : vector<1x8x128xf32> to vector<8x128xf32>
    %385 = vector.shape_cast %381 : vector<8x128xf32> to vector<1x8x128xf32>
    tpu.vector_store %arg9[%382, %c0_89, %c0_90], %385 {strides = array<i32>} : memref<8x8x128xf32, #tpu.memory_space<vmem>>, vector<1x8x128xf32>,
    %386 = vector.shape_cast %377 : vector<8x1xi1> to vector<8x1xi1>
    %387 = vector.broadcast %386 : vector<8x1xi1> to vector<8x128xi1>
    %388 = arith.select %387, %375, %295 : vector<8x128xi1>, vector<8x128xf32>
    %c4_i32 = arith.constant 4 : i32
    %c7_i32_91 = arith.constant 7 : i32
    %389 = arith.subi %c7_i32_91, %c4_i32 : i32
    %c8_i32_92 = arith.constant 8 : i32
    %390 = arith.muli %c4_i32, %c8_i32_92 : i32
    %391 = tpu.assume_multiple %390, 8 : i32
    %392 = arith.index_cast %391 : i32 to index
    %c0_93 = arith.constant 0 : index
    %393 = vector.load %arg11[%392, %c0_93] : memref<64x768xf32, #tpu.memory_space<vmem>>, vector<8x384xf32>
    %394 = arith.truncf %342 : vector<8x128xf32> to vector<8x128xbf16>
    %cst_94 = arith.constant dense<0.000000e+00> : vector<8x384xf32>
    %395 = tpu.matmul %394, %7, %cst_94 {dimension_numbers = #tpu.dot_dimension_numbers<[1], [0], [0], [1], [0, 0, 1, 1], [], []>} : vector<8x128xbf16>, vector<128x384xbf16>, vector<8x384xf32> -> vector<8x384xf32>
    %396 = arith.addf %395, %11 : vector<8x384xf32>
    %397 = vector.extract_strided_slice %393 {offsets = [0, 0], sizes = [8, 128], strides = [1, 1]} : vector<8x384xf32> to vector<8x128xf32>
    %398 = vector.extract_strided_slice %396 {offsets = [0, 0], sizes = [8, 128], strides = [1, 1]} : vector<8x384xf32> to vector<8x128xf32>
    %399 = arith.addf %397, %398 : vector<8x128xf32>
    %400 = arith.negf %399 : vector<8x128xf32>
    %401 = math.exp %400 : vector<8x128xf32>
    %cst_95 = arith.constant 1.000000e+00 : f32
    %402 = vector.broadcast %cst_95 : f32 to vector<8x128xf32>
    %403 = arith.addf %402, %401 : vector<8x128xf32>
    %404 = arith.divf %402, %403 : vector<8x128xf32>
    %405 = vector.extract_strided_slice %393 {offsets = [0, 128], sizes = [8, 128], strides = [1, 1]} : vector<8x384xf32> to vector<8x128xf32>
    %406 = vector.extract_strided_slice %396 {offsets = [0, 128], sizes = [8, 128], strides = [1, 1]} : vector<8x384xf32> to vector<8x128xf32>
    %407 = arith.addf %405, %406 : vector<8x128xf32>
    %408 = arith.negf %407 : vector<8x128xf32>
    %409 = math.exp %408 : vector<8x128xf32>
    %cst_96 = arith.constant 1.000000e+00 : f32
    %410 = vector.broadcast %cst_96 : f32 to vector<8x128xf32>
    %411 = arith.addf %410, %409 : vector<8x128xf32>
    %412 = arith.divf %410, %411 : vector<8x128xf32>
    %413 = vector.extract_strided_slice %393 {offsets = [0, 256], sizes = [8, 128], strides = [1, 1]} : vector<8x384xf32> to vector<8x128xf32>
    %414 = vector.extract_strided_slice %396 {offsets = [0, 256], sizes = [8, 128], strides = [1, 1]} : vector<8x384xf32> to vector<8x128xf32>
    %415 = arith.mulf %404, %414 : vector<8x128xf32>
    %416 = arith.addf %413, %415 : vector<8x128xf32>
    %417 = math.tanh %416 : vector<8x128xf32>
    %cst_97 = arith.constant 1.000000e+00 : f32
    %418 = vector.broadcast %cst_97 : f32 to vector<8x128xf32>
    %419 = arith.subf %418, %412 : vector<8x128xf32>
    %420 = arith.mulf %419, %417 : vector<8x128xf32>
    %421 = arith.mulf %412, %342 : vector<8x128xf32>
    %422 = arith.addf %420, %421 : vector<8x128xf32>
    %423 = vector.broadcast %c4_i32 : i32 to vector<8x1xi32>
    %424 = arith.cmpi slt, %423, %15 : vector<8x1xi32>
    %cst_98 = arith.constant 0.000000e+00 : f32
    %425 = vector.shape_cast %424 : vector<8x1xi1> to vector<8x1xi1>
    %426 = vector.broadcast %425 : vector<8x1xi1> to vector<8x128xi1>
    %427 = vector.broadcast %cst_98 : f32 to vector<8x128xf32>
    %428 = arith.select %426, %422, %427 : vector<8x128xi1>, vector<8x128xf32>
    %429 = arith.index_cast %c4_i32 : i32 to index
    %c0_99 = arith.constant 0 : index
    %c0_100 = arith.constant 0 : index
    %430 = vector.load %arg8[%429, %c0_99, %c0_100] : memref<8x8x128xf32, #tpu.memory_space<vmem>>, vector<1x8x128xf32>
    %431 = vector.shape_cast %430 : vector<1x8x128xf32> to vector<8x128xf32>
    %432 = vector.shape_cast %428 : vector<8x128xf32> to vector<1x8x128xf32>
    tpu.vector_store %arg8[%429, %c0_99, %c0_100], %432 {strides = array<i32>} : memref<8x8x128xf32, #tpu.memory_space<vmem>>, vector<1x8x128xf32>,
    %433 = vector.shape_cast %424 : vector<8x1xi1> to vector<8x1xi1>
    %434 = vector.broadcast %433 : vector<8x1xi1> to vector<8x128xi1>
    %435 = arith.select %434, %422, %342 : vector<8x128xi1>, vector<8x128xf32>
    %c8_i32_101 = arith.constant 8 : i32
    %436 = arith.muli %389, %c8_i32_101 : i32
    %437 = tpu.assume_multiple %436, 8 : i32
    %438 = arith.index_cast %437 : i32 to index
    %c384_102 = arith.constant 384 : index
    %439 = vector.load %arg11[%438, %c384_102] : memref<64x768xf32, #tpu.memory_space<vmem>>, vector<8x384xf32>
    %440 = arith.truncf %388 : vector<8x128xf32> to vector<8x128xbf16>
    %cst_103 = arith.constant dense<0.000000e+00> : vector<8x384xf32>
    %441 = tpu.matmul %440, %8, %cst_103 {dimension_numbers = #tpu.dot_dimension_numbers<[1], [0], [0], [1], [0, 0, 1, 1], [], []>} : vector<8x128xbf16>, vector<128x384xbf16>, vector<8x384xf32> -> vector<8x384xf32>
    %442 = arith.addf %441, %14 : vector<8x384xf32>
    %443 = vector.extract_strided_slice %439 {offsets = [0, 0], sizes = [8, 128], strides = [1, 1]} : vector<8x384xf32> to vector<8x128xf32>
    %444 = vector.extract_strided_slice %442 {offsets = [0, 0], sizes = [8, 128], strides = [1, 1]} : vector<8x384xf32> to vector<8x128xf32>
    %445 = arith.addf %443, %444 : vector<8x128xf32>
    %446 = arith.negf %445 : vector<8x128xf32>
    %447 = math.exp %446 : vector<8x128xf32>
    %cst_104 = arith.constant 1.000000e+00 : f32
    %448 = vector.broadcast %cst_104 : f32 to vector<8x128xf32>
    %449 = arith.addf %448, %447 : vector<8x128xf32>
    %450 = arith.divf %448, %449 : vector<8x128xf32>
    %451 = vector.extract_strided_slice %439 {offsets = [0, 128], sizes = [8, 128], strides = [1, 1]} : vector<8x384xf32> to vector<8x128xf32>
    %452 = vector.extract_strided_slice %442 {offsets = [0, 128], sizes = [8, 128], strides = [1, 1]} : vector<8x384xf32> to vector<8x128xf32>
    %453 = arith.addf %451, %452 : vector<8x128xf32>
    %454 = arith.negf %453 : vector<8x128xf32>
    %455 = math.exp %454 : vector<8x128xf32>
    %cst_105 = arith.constant 1.000000e+00 : f32
    %456 = vector.broadcast %cst_105 : f32 to vector<8x128xf32>
    %457 = arith.addf %456, %455 : vector<8x128xf32>
    %458 = arith.divf %456, %457 : vector<8x128xf32>
    %459 = vector.extract_strided_slice %439 {offsets = [0, 256], sizes = [8, 128], strides = [1, 1]} : vector<8x384xf32> to vector<8x128xf32>
    %460 = vector.extract_strided_slice %442 {offsets = [0, 256], sizes = [8, 128], strides = [1, 1]} : vector<8x384xf32> to vector<8x128xf32>
    %461 = arith.mulf %450, %460 : vector<8x128xf32>
    %462 = arith.addf %459, %461 : vector<8x128xf32>
    %463 = math.tanh %462 : vector<8x128xf32>
    %cst_106 = arith.constant 1.000000e+00 : f32
    %464 = vector.broadcast %cst_106 : f32 to vector<8x128xf32>
    %465 = arith.subf %464, %458 : vector<8x128xf32>
    %466 = arith.mulf %465, %463 : vector<8x128xf32>
    %467 = arith.mulf %458, %388 : vector<8x128xf32>
    %468 = arith.addf %466, %467 : vector<8x128xf32>
    %469 = vector.broadcast %389 : i32 to vector<8x1xi32>
    %470 = arith.cmpi slt, %469, %15 : vector<8x1xi32>
    %cst_107 = arith.constant 0.000000e+00 : f32
    %471 = vector.shape_cast %470 : vector<8x1xi1> to vector<8x1xi1>
    %472 = vector.broadcast %471 : vector<8x1xi1> to vector<8x128xi1>
    %473 = vector.broadcast %cst_107 : f32 to vector<8x128xf32>
    %474 = arith.select %472, %468, %473 : vector<8x128xi1>, vector<8x128xf32>
    %475 = arith.index_cast %389 : i32 to index
    %c0_108 = arith.constant 0 : index
    %c0_109 = arith.constant 0 : index
    %476 = vector.load %arg9[%475, %c0_108, %c0_109] : memref<8x8x128xf32, #tpu.memory_space<vmem>>, vector<1x8x128xf32>
    %477 = vector.shape_cast %476 : vector<1x8x128xf32> to vector<8x128xf32>
    %478 = vector.shape_cast %474 : vector<8x128xf32> to vector<1x8x128xf32>
    tpu.vector_store %arg9[%475, %c0_108, %c0_109], %478 {strides = array<i32>} : memref<8x8x128xf32, #tpu.memory_space<vmem>>, vector<1x8x128xf32>,
    %479 = vector.shape_cast %470 : vector<8x1xi1> to vector<8x1xi1>
    %480 = vector.broadcast %479 : vector<8x1xi1> to vector<8x128xi1>
    %481 = arith.select %480, %468, %388 : vector<8x128xi1>, vector<8x128xf32>
    %c5_i32 = arith.constant 5 : i32
    %c7_i32_110 = arith.constant 7 : i32
    %482 = arith.subi %c7_i32_110, %c5_i32 : i32
    %c8_i32_111 = arith.constant 8 : i32
    %483 = arith.muli %c5_i32, %c8_i32_111 : i32
    %484 = tpu.assume_multiple %483, 8 : i32
    %485 = arith.index_cast %484 : i32 to index
    %c0_112 = arith.constant 0 : index
    %486 = vector.load %arg11[%485, %c0_112] : memref<64x768xf32, #tpu.memory_space<vmem>>, vector<8x384xf32>
    %487 = arith.truncf %435 : vector<8x128xf32> to vector<8x128xbf16>
    %cst_113 = arith.constant dense<0.000000e+00> : vector<8x384xf32>
    %488 = tpu.matmul %487, %7, %cst_113 {dimension_numbers = #tpu.dot_dimension_numbers<[1], [0], [0], [1], [0, 0, 1, 1], [], []>} : vector<8x128xbf16>, vector<128x384xbf16>, vector<8x384xf32> -> vector<8x384xf32>
    %489 = arith.addf %488, %11 : vector<8x384xf32>
    %490 = vector.extract_strided_slice %486 {offsets = [0, 0], sizes = [8, 128], strides = [1, 1]} : vector<8x384xf32> to vector<8x128xf32>
    %491 = vector.extract_strided_slice %489 {offsets = [0, 0], sizes = [8, 128], strides = [1, 1]} : vector<8x384xf32> to vector<8x128xf32>
    %492 = arith.addf %490, %491 : vector<8x128xf32>
    %493 = arith.negf %492 : vector<8x128xf32>
    %494 = math.exp %493 : vector<8x128xf32>
    %cst_114 = arith.constant 1.000000e+00 : f32
    %495 = vector.broadcast %cst_114 : f32 to vector<8x128xf32>
    %496 = arith.addf %495, %494 : vector<8x128xf32>
    %497 = arith.divf %495, %496 : vector<8x128xf32>
    %498 = vector.extract_strided_slice %486 {offsets = [0, 128], sizes = [8, 128], strides = [1, 1]} : vector<8x384xf32> to vector<8x128xf32>
    %499 = vector.extract_strided_slice %489 {offsets = [0, 128], sizes = [8, 128], strides = [1, 1]} : vector<8x384xf32> to vector<8x128xf32>
    %500 = arith.addf %498, %499 : vector<8x128xf32>
    %501 = arith.negf %500 : vector<8x128xf32>
    %502 = math.exp %501 : vector<8x128xf32>
    %cst_115 = arith.constant 1.000000e+00 : f32
    %503 = vector.broadcast %cst_115 : f32 to vector<8x128xf32>
    %504 = arith.addf %503, %502 : vector<8x128xf32>
    %505 = arith.divf %503, %504 : vector<8x128xf32>
    %506 = vector.extract_strided_slice %486 {offsets = [0, 256], sizes = [8, 128], strides = [1, 1]} : vector<8x384xf32> to vector<8x128xf32>
    %507 = vector.extract_strided_slice %489 {offsets = [0, 256], sizes = [8, 128], strides = [1, 1]} : vector<8x384xf32> to vector<8x128xf32>
    %508 = arith.mulf %497, %507 : vector<8x128xf32>
    %509 = arith.addf %506, %508 : vector<8x128xf32>
    %510 = math.tanh %509 : vector<8x128xf32>
    %cst_116 = arith.constant 1.000000e+00 : f32
    %511 = vector.broadcast %cst_116 : f32 to vector<8x128xf32>
    %512 = arith.subf %511, %505 : vector<8x128xf32>
    %513 = arith.mulf %512, %510 : vector<8x128xf32>
    %514 = arith.mulf %505, %435 : vector<8x128xf32>
    %515 = arith.addf %513, %514 : vector<8x128xf32>
    %516 = vector.broadcast %c5_i32 : i32 to vector<8x1xi32>
    %517 = arith.cmpi slt, %516, %15 : vector<8x1xi32>
    %cst_117 = arith.constant 0.000000e+00 : f32
    %518 = vector.shape_cast %517 : vector<8x1xi1> to vector<8x1xi1>
    %519 = vector.broadcast %518 : vector<8x1xi1> to vector<8x128xi1>
    %520 = vector.broadcast %cst_117 : f32 to vector<8x128xf32>
    %521 = arith.select %519, %515, %520 : vector<8x128xi1>, vector<8x128xf32>
    %522 = arith.index_cast %c5_i32 : i32 to index
    %c0_118 = arith.constant 0 : index
    %c0_119 = arith.constant 0 : index
    %523 = vector.load %arg8[%522, %c0_118, %c0_119] : memref<8x8x128xf32, #tpu.memory_space<vmem>>, vector<1x8x128xf32>
    %524 = vector.shape_cast %523 : vector<1x8x128xf32> to vector<8x128xf32>
    %525 = vector.shape_cast %521 : vector<8x128xf32> to vector<1x8x128xf32>
    tpu.vector_store %arg8[%522, %c0_118, %c0_119], %525 {strides = array<i32>} : memref<8x8x128xf32, #tpu.memory_space<vmem>>, vector<1x8x128xf32>,
    %526 = vector.shape_cast %517 : vector<8x1xi1> to vector<8x1xi1>
    %527 = vector.broadcast %526 : vector<8x1xi1> to vector<8x128xi1>
    %528 = arith.select %527, %515, %435 : vector<8x128xi1>, vector<8x128xf32>
    %c8_i32_120 = arith.constant 8 : i32
    %529 = arith.muli %482, %c8_i32_120 : i32
    %530 = tpu.assume_multiple %529, 8 : i32
    %531 = arith.index_cast %530 : i32 to index
    %c384_121 = arith.constant 384 : index
    %532 = vector.load %arg11[%531, %c384_121] : memref<64x768xf32, #tpu.memory_space<vmem>>, vector<8x384xf32>
    %533 = arith.truncf %481 : vector<8x128xf32> to vector<8x128xbf16>
    %cst_122 = arith.constant dense<0.000000e+00> : vector<8x384xf32>
    %534 = tpu.matmul %533, %8, %cst_122 {dimension_numbers = #tpu.dot_dimension_numbers<[1], [0], [0], [1], [0, 0, 1, 1], [], []>} : vector<8x128xbf16>, vector<128x384xbf16>, vector<8x384xf32> -> vector<8x384xf32>
    %535 = arith.addf %534, %14 : vector<8x384xf32>
    %536 = vector.extract_strided_slice %532 {offsets = [0, 0], sizes = [8, 128], strides = [1, 1]} : vector<8x384xf32> to vector<8x128xf32>
    %537 = vector.extract_strided_slice %535 {offsets = [0, 0], sizes = [8, 128], strides = [1, 1]} : vector<8x384xf32> to vector<8x128xf32>
    %538 = arith.addf %536, %537 : vector<8x128xf32>
    %539 = arith.negf %538 : vector<8x128xf32>
    %540 = math.exp %539 : vector<8x128xf32>
    %cst_123 = arith.constant 1.000000e+00 : f32
    %541 = vector.broadcast %cst_123 : f32 to vector<8x128xf32>
    %542 = arith.addf %541, %540 : vector<8x128xf32>
    %543 = arith.divf %541, %542 : vector<8x128xf32>
    %544 = vector.extract_strided_slice %532 {offsets = [0, 128], sizes = [8, 128], strides = [1, 1]} : vector<8x384xf32> to vector<8x128xf32>
    %545 = vector.extract_strided_slice %535 {offsets = [0, 128], sizes = [8, 128], strides = [1, 1]} : vector<8x384xf32> to vector<8x128xf32>
    %546 = arith.addf %544, %545 : vector<8x128xf32>
    %547 = arith.negf %546 : vector<8x128xf32>
    %548 = math.exp %547 : vector<8x128xf32>
    %cst_124 = arith.constant 1.000000e+00 : f32
    %549 = vector.broadcast %cst_124 : f32 to vector<8x128xf32>
    %550 = arith.addf %549, %548 : vector<8x128xf32>
    %551 = arith.divf %549, %550 : vector<8x128xf32>
    %552 = vector.extract_strided_slice %532 {offsets = [0, 256], sizes = [8, 128], strides = [1, 1]} : vector<8x384xf32> to vector<8x128xf32>
    %553 = vector.extract_strided_slice %535 {offsets = [0, 256], sizes = [8, 128], strides = [1, 1]} : vector<8x384xf32> to vector<8x128xf32>
    %554 = arith.mulf %543, %553 : vector<8x128xf32>
    %555 = arith.addf %552, %554 : vector<8x128xf32>
    %556 = math.tanh %555 : vector<8x128xf32>
    %cst_125 = arith.constant 1.000000e+00 : f32
    %557 = vector.broadcast %cst_125 : f32 to vector<8x128xf32>
    %558 = arith.subf %557, %551 : vector<8x128xf32>
    %559 = arith.mulf %558, %556 : vector<8x128xf32>
    %560 = arith.mulf %551, %481 : vector<8x128xf32>
    %561 = arith.addf %559, %560 : vector<8x128xf32>
    %562 = vector.broadcast %482 : i32 to vector<8x1xi32>
    %563 = arith.cmpi slt, %562, %15 : vector<8x1xi32>
    %cst_126 = arith.constant 0.000000e+00 : f32
    %564 = vector.shape_cast %563 : vector<8x1xi1> to vector<8x1xi1>
    %565 = vector.broadcast %564 : vector<8x1xi1> to vector<8x128xi1>
    %566 = vector.broadcast %cst_126 : f32 to vector<8x128xf32>
    %567 = arith.select %565, %561, %566 : vector<8x128xi1>, vector<8x128xf32>
    %568 = arith.index_cast %482 : i32 to index
    %c0_127 = arith.constant 0 : index
    %c0_128 = arith.constant 0 : index
    %569 = vector.load %arg9[%568, %c0_127, %c0_128] : memref<8x8x128xf32, #tpu.memory_space<vmem>>, vector<1x8x128xf32>
    %570 = vector.shape_cast %569 : vector<1x8x128xf32> to vector<8x128xf32>
    %571 = vector.shape_cast %567 : vector<8x128xf32> to vector<1x8x128xf32>
    tpu.vector_store %arg9[%568, %c0_127, %c0_128], %571 {strides = array<i32>} : memref<8x8x128xf32, #tpu.memory_space<vmem>>, vector<1x8x128xf32>,
    %572 = vector.shape_cast %563 : vector<8x1xi1> to vector<8x1xi1>
    %573 = vector.broadcast %572 : vector<8x1xi1> to vector<8x128xi1>
    %574 = arith.select %573, %561, %481 : vector<8x128xi1>, vector<8x128xf32>
    %c6_i32 = arith.constant 6 : i32
    %c7_i32_129 = arith.constant 7 : i32
    %575 = arith.subi %c7_i32_129, %c6_i32 : i32
    %c8_i32_130 = arith.constant 8 : i32
    %576 = arith.muli %c6_i32, %c8_i32_130 : i32
    %577 = tpu.assume_multiple %576, 8 : i32
    %578 = arith.index_cast %577 : i32 to index
    %c0_131 = arith.constant 0 : index
    %579 = vector.load %arg11[%578, %c0_131] : memref<64x768xf32, #tpu.memory_space<vmem>>, vector<8x384xf32>
    %580 = arith.truncf %528 : vector<8x128xf32> to vector<8x128xbf16>
    %cst_132 = arith.constant dense<0.000000e+00> : vector<8x384xf32>
    %581 = tpu.matmul %580, %7, %cst_132 {dimension_numbers = #tpu.dot_dimension_numbers<[1], [0], [0], [1], [0, 0, 1, 1], [], []>} : vector<8x128xbf16>, vector<128x384xbf16>, vector<8x384xf32> -> vector<8x384xf32>
    %582 = arith.addf %581, %11 : vector<8x384xf32>
    %583 = vector.extract_strided_slice %579 {offsets = [0, 0], sizes = [8, 128], strides = [1, 1]} : vector<8x384xf32> to vector<8x128xf32>
    %584 = vector.extract_strided_slice %582 {offsets = [0, 0], sizes = [8, 128], strides = [1, 1]} : vector<8x384xf32> to vector<8x128xf32>
    %585 = arith.addf %583, %584 : vector<8x128xf32>
    %586 = arith.negf %585 : vector<8x128xf32>
    %587 = math.exp %586 : vector<8x128xf32>
    %cst_133 = arith.constant 1.000000e+00 : f32
    %588 = vector.broadcast %cst_133 : f32 to vector<8x128xf32>
    %589 = arith.addf %588, %587 : vector<8x128xf32>
    %590 = arith.divf %588, %589 : vector<8x128xf32>
    %591 = vector.extract_strided_slice %579 {offsets = [0, 128], sizes = [8, 128], strides = [1, 1]} : vector<8x384xf32> to vector<8x128xf32>
    %592 = vector.extract_strided_slice %582 {offsets = [0, 128], sizes = [8, 128], strides = [1, 1]} : vector<8x384xf32> to vector<8x128xf32>
    %593 = arith.addf %591, %592 : vector<8x128xf32>
    %594 = arith.negf %593 : vector<8x128xf32>
    %595 = math.exp %594 : vector<8x128xf32>
    %cst_134 = arith.constant 1.000000e+00 : f32
    %596 = vector.broadcast %cst_134 : f32 to vector<8x128xf32>
    %597 = arith.addf %596, %595 : vector<8x128xf32>
    %598 = arith.divf %596, %597 : vector<8x128xf32>
    %599 = vector.extract_strided_slice %579 {offsets = [0, 256], sizes = [8, 128], strides = [1, 1]} : vector<8x384xf32> to vector<8x128xf32>
    %600 = vector.extract_strided_slice %582 {offsets = [0, 256], sizes = [8, 128], strides = [1, 1]} : vector<8x384xf32> to vector<8x128xf32>
    %601 = arith.mulf %590, %600 : vector<8x128xf32>
    %602 = arith.addf %599, %601 : vector<8x128xf32>
    %603 = math.tanh %602 : vector<8x128xf32>
    %cst_135 = arith.constant 1.000000e+00 : f32
    %604 = vector.broadcast %cst_135 : f32 to vector<8x128xf32>
    %605 = arith.subf %604, %598 : vector<8x128xf32>
    %606 = arith.mulf %605, %603 : vector<8x128xf32>
    %607 = arith.mulf %598, %528 : vector<8x128xf32>
    %608 = arith.addf %606, %607 : vector<8x128xf32>
    %609 = vector.broadcast %c6_i32 : i32 to vector<8x1xi32>
    %610 = arith.cmpi slt, %609, %15 : vector<8x1xi32>
    %cst_136 = arith.constant 0.000000e+00 : f32
    %611 = vector.shape_cast %610 : vector<8x1xi1> to vector<8x1xi1>
    %612 = vector.broadcast %611 : vector<8x1xi1> to vector<8x128xi1>
    %613 = vector.broadcast %cst_136 : f32 to vector<8x128xf32>
    %614 = arith.select %612, %608, %613 : vector<8x128xi1>, vector<8x128xf32>
    %615 = arith.index_cast %c6_i32 : i32 to index
    %c0_137 = arith.constant 0 : index
    %c0_138 = arith.constant 0 : index
    %616 = vector.load %arg8[%615, %c0_137, %c0_138] : memref<8x8x128xf32, #tpu.memory_space<vmem>>, vector<1x8x128xf32>
    %617 = vector.shape_cast %616 : vector<1x8x128xf32> to vector<8x128xf32>
    %618 = vector.shape_cast %614 : vector<8x128xf32> to vector<1x8x128xf32>
    tpu.vector_store %arg8[%615, %c0_137, %c0_138], %618 {strides = array<i32>} : memref<8x8x128xf32, #tpu.memory_space<vmem>>, vector<1x8x128xf32>,
    %619 = vector.shape_cast %610 : vector<8x1xi1> to vector<8x1xi1>
    %620 = vector.broadcast %619 : vector<8x1xi1> to vector<8x128xi1>
    %621 = arith.select %620, %608, %528 : vector<8x128xi1>, vector<8x128xf32>
    %c8_i32_139 = arith.constant 8 : i32
    %622 = arith.muli %575, %c8_i32_139 : i32
    %623 = tpu.assume_multiple %622, 8 : i32
    %624 = arith.index_cast %623 : i32 to index
    %c384_140 = arith.constant 384 : index
    %625 = vector.load %arg11[%624, %c384_140] : memref<64x768xf32, #tpu.memory_space<vmem>>, vector<8x384xf32>
    %626 = arith.truncf %574 : vector<8x128xf32> to vector<8x128xbf16>
    %cst_141 = arith.constant dense<0.000000e+00> : vector<8x384xf32>
    %627 = tpu.matmul %626, %8, %cst_141 {dimension_numbers = #tpu.dot_dimension_numbers<[1], [0], [0], [1], [0, 0, 1, 1], [], []>} : vector<8x128xbf16>, vector<128x384xbf16>, vector<8x384xf32> -> vector<8x384xf32>
    %628 = arith.addf %627, %14 : vector<8x384xf32>
    %629 = vector.extract_strided_slice %625 {offsets = [0, 0], sizes = [8, 128], strides = [1, 1]} : vector<8x384xf32> to vector<8x128xf32>
    %630 = vector.extract_strided_slice %628 {offsets = [0, 0], sizes = [8, 128], strides = [1, 1]} : vector<8x384xf32> to vector<8x128xf32>
    %631 = arith.addf %629, %630 : vector<8x128xf32>
    %632 = arith.negf %631 : vector<8x128xf32>
    %633 = math.exp %632 : vector<8x128xf32>
    %cst_142 = arith.constant 1.000000e+00 : f32
    %634 = vector.broadcast %cst_142 : f32 to vector<8x128xf32>
    %635 = arith.addf %634, %633 : vector<8x128xf32>
    %636 = arith.divf %634, %635 : vector<8x128xf32>
    %637 = vector.extract_strided_slice %625 {offsets = [0, 128], sizes = [8, 128], strides = [1, 1]} : vector<8x384xf32> to vector<8x128xf32>
    %638 = vector.extract_strided_slice %628 {offsets = [0, 128], sizes = [8, 128], strides = [1, 1]} : vector<8x384xf32> to vector<8x128xf32>
    %639 = arith.addf %637, %638 : vector<8x128xf32>
    %640 = arith.negf %639 : vector<8x128xf32>
    %641 = math.exp %640 : vector<8x128xf32>
    %cst_143 = arith.constant 1.000000e+00 : f32
    %642 = vector.broadcast %cst_143 : f32 to vector<8x128xf32>
    %643 = arith.addf %642, %641 : vector<8x128xf32>
    %644 = arith.divf %642, %643 : vector<8x128xf32>
    %645 = vector.extract_strided_slice %625 {offsets = [0, 256], sizes = [8, 128], strides = [1, 1]} : vector<8x384xf32> to vector<8x128xf32>
    %646 = vector.extract_strided_slice %628 {offsets = [0, 256], sizes = [8, 128], strides = [1, 1]} : vector<8x384xf32> to vector<8x128xf32>
    %647 = arith.mulf %636, %646 : vector<8x128xf32>
    %648 = arith.addf %645, %647 : vector<8x128xf32>
    %649 = math.tanh %648 : vector<8x128xf32>
    %cst_144 = arith.constant 1.000000e+00 : f32
    %650 = vector.broadcast %cst_144 : f32 to vector<8x128xf32>
    %651 = arith.subf %650, %644 : vector<8x128xf32>
    %652 = arith.mulf %651, %649 : vector<8x128xf32>
    %653 = arith.mulf %644, %574 : vector<8x128xf32>
    %654 = arith.addf %652, %653 : vector<8x128xf32>
    %655 = vector.broadcast %575 : i32 to vector<8x1xi32>
    %656 = arith.cmpi slt, %655, %15 : vector<8x1xi32>
    %cst_145 = arith.constant 0.000000e+00 : f32
    %657 = vector.shape_cast %656 : vector<8x1xi1> to vector<8x1xi1>
    %658 = vector.broadcast %657 : vector<8x1xi1> to vector<8x128xi1>
    %659 = vector.broadcast %cst_145 : f32 to vector<8x128xf32>
    %660 = arith.select %658, %654, %659 : vector<8x128xi1>, vector<8x128xf32>
    %661 = arith.index_cast %575 : i32 to index
    %c0_146 = arith.constant 0 : index
    %c0_147 = arith.constant 0 : index
    %662 = vector.load %arg9[%661, %c0_146, %c0_147] : memref<8x8x128xf32, #tpu.memory_space<vmem>>, vector<1x8x128xf32>
    %663 = vector.shape_cast %662 : vector<1x8x128xf32> to vector<8x128xf32>
    %664 = vector.shape_cast %660 : vector<8x128xf32> to vector<1x8x128xf32>
    tpu.vector_store %arg9[%661, %c0_146, %c0_147], %664 {strides = array<i32>} : memref<8x8x128xf32, #tpu.memory_space<vmem>>, vector<1x8x128xf32>,
    %665 = vector.shape_cast %656 : vector<8x1xi1> to vector<8x1xi1>
    %666 = vector.broadcast %665 : vector<8x1xi1> to vector<8x128xi1>
    %667 = arith.select %666, %654, %574 : vector<8x128xi1>, vector<8x128xf32>
    %c7_i32_148 = arith.constant 7 : i32
    %c7_i32_149 = arith.constant 7 : i32
    %668 = arith.subi %c7_i32_149, %c7_i32_148 : i32
    %c8_i32_150 = arith.constant 8 : i32
    %669 = arith.muli %c7_i32_148, %c8_i32_150 : i32
    %670 = tpu.assume_multiple %669, 8 : i32
    %671 = arith.index_cast %670 : i32 to index
    %c0_151 = arith.constant 0 : index
    %672 = vector.load %arg11[%671, %c0_151] : memref<64x768xf32, #tpu.memory_space<vmem>>, vector<8x384xf32>
    %673 = arith.truncf %621 : vector<8x128xf32> to vector<8x128xbf16>
    %cst_152 = arith.constant dense<0.000000e+00> : vector<8x384xf32>
    %674 = tpu.matmul %673, %7, %cst_152 {dimension_numbers = #tpu.dot_dimension_numbers<[1], [0], [0], [1], [0, 0, 1, 1], [], []>} : vector<8x128xbf16>, vector<128x384xbf16>, vector<8x384xf32> -> vector<8x384xf32>
    %675 = arith.addf %674, %11 : vector<8x384xf32>
    %676 = vector.extract_strided_slice %672 {offsets = [0, 0], sizes = [8, 128], strides = [1, 1]} : vector<8x384xf32> to vector<8x128xf32>
    %677 = vector.extract_strided_slice %675 {offsets = [0, 0], sizes = [8, 128], strides = [1, 1]} : vector<8x384xf32> to vector<8x128xf32>
    %678 = arith.addf %676, %677 : vector<8x128xf32>
    %679 = arith.negf %678 : vector<8x128xf32>
    %680 = math.exp %679 : vector<8x128xf32>
    %cst_153 = arith.constant 1.000000e+00 : f32
    %681 = vector.broadcast %cst_153 : f32 to vector<8x128xf32>
    %682 = arith.addf %681, %680 : vector<8x128xf32>
    %683 = arith.divf %681, %682 : vector<8x128xf32>
    %684 = vector.extract_strided_slice %672 {offsets = [0, 128], sizes = [8, 128], strides = [1, 1]} : vector<8x384xf32> to vector<8x128xf32>
    %685 = vector.extract_strided_slice %675 {offsets = [0, 128], sizes = [8, 128], strides = [1, 1]} : vector<8x384xf32> to vector<8x128xf32>
    %686 = arith.addf %684, %685 : vector<8x128xf32>
    %687 = arith.negf %686 : vector<8x128xf32>
    %688 = math.exp %687 : vector<8x128xf32>
    %cst_154 = arith.constant 1.000000e+00 : f32
    %689 = vector.broadcast %cst_154 : f32 to vector<8x128xf32>
    %690 = arith.addf %689, %688 : vector<8x128xf32>
    %691 = arith.divf %689, %690 : vector<8x128xf32>
    %692 = vector.extract_strided_slice %672 {offsets = [0, 256], sizes = [8, 128], strides = [1, 1]} : vector<8x384xf32> to vector<8x128xf32>
    %693 = vector.extract_strided_slice %675 {offsets = [0, 256], sizes = [8, 128], strides = [1, 1]} : vector<8x384xf32> to vector<8x128xf32>
    %694 = arith.mulf %683, %693 : vector<8x128xf32>
    %695 = arith.addf %692, %694 : vector<8x128xf32>
    %696 = math.tanh %695 : vector<8x128xf32>
    %cst_155 = arith.constant 1.000000e+00 : f32
    %697 = vector.broadcast %cst_155 : f32 to vector<8x128xf32>
    %698 = arith.subf %697, %691 : vector<8x128xf32>
    %699 = arith.mulf %698, %696 : vector<8x128xf32>
    %700 = arith.mulf %691, %621 : vector<8x128xf32>
    %701 = arith.addf %699, %700 : vector<8x128xf32>
    %702 = vector.broadcast %c7_i32_148 : i32 to vector<8x1xi32>
    %703 = arith.cmpi slt, %702, %15 : vector<8x1xi32>
    %cst_156 = arith.constant 0.000000e+00 : f32
    %704 = vector.shape_cast %703 : vector<8x1xi1> to vector<8x1xi1>
    %705 = vector.broadcast %704 : vector<8x1xi1> to vector<8x128xi1>
    %706 = vector.broadcast %cst_156 : f32 to vector<8x128xf32>
    %707 = arith.select %705, %701, %706 : vector<8x128xi1>, vector<8x128xf32>
    %708 = arith.index_cast %c7_i32_148 : i32 to index
    %c0_157 = arith.constant 0 : index
    %c0_158 = arith.constant 0 : index
    %709 = vector.load %arg8[%708, %c0_157, %c0_158] : memref<8x8x128xf32, #tpu.memory_space<vmem>>, vector<1x8x128xf32>
    %710 = vector.shape_cast %709 : vector<1x8x128xf32> to vector<8x128xf32>
    %711 = vector.shape_cast %707 : vector<8x128xf32> to vector<1x8x128xf32>
    tpu.vector_store %arg8[%708, %c0_157, %c0_158], %711 {strides = array<i32>} : memref<8x8x128xf32, #tpu.memory_space<vmem>>, vector<1x8x128xf32>,
    %712 = vector.shape_cast %703 : vector<8x1xi1> to vector<8x1xi1>
    %713 = vector.broadcast %712 : vector<8x1xi1> to vector<8x128xi1>
    %714 = arith.select %713, %701, %621 : vector<8x128xi1>, vector<8x128xf32>
    %c8_i32_159 = arith.constant 8 : i32
    %715 = arith.muli %668, %c8_i32_159 : i32
    %716 = tpu.assume_multiple %715, 8 : i32
    %717 = arith.index_cast %716 : i32 to index
    %c384_160 = arith.constant 384 : index
    %718 = vector.load %arg11[%717, %c384_160] : memref<64x768xf32, #tpu.memory_space<vmem>>, vector<8x384xf32>
    %719 = arith.truncf %667 : vector<8x128xf32> to vector<8x128xbf16>
    %cst_161 = arith.constant dense<0.000000e+00> : vector<8x384xf32>
    %720 = tpu.matmul %719, %8, %cst_161 {dimension_numbers = #tpu.dot_dimension_numbers<[1], [0], [0], [1], [0, 0, 1, 1], [], []>} : vector<8x128xbf16>, vector<128x384xbf16>, vector<8x384xf32> -> vector<8x384xf32>
    %721 = arith.addf %720, %14 : vector<8x384xf32>
    %722 = vector.extract_strided_slice %718 {offsets = [0, 0], sizes = [8, 128], strides = [1, 1]} : vector<8x384xf32> to vector<8x128xf32>
    %723 = vector.extract_strided_slice %721 {offsets = [0, 0], sizes = [8, 128], strides = [1, 1]} : vector<8x384xf32> to vector<8x128xf32>
    %724 = arith.addf %722, %723 : vector<8x128xf32>
    %725 = arith.negf %724 : vector<8x128xf32>
    %726 = math.exp %725 : vector<8x128xf32>
    %cst_162 = arith.constant 1.000000e+00 : f32
    %727 = vector.broadcast %cst_162 : f32 to vector<8x128xf32>
    %728 = arith.addf %727, %726 : vector<8x128xf32>
    %729 = arith.divf %727, %728 : vector<8x128xf32>
    %730 = vector.extract_strided_slice %718 {offsets = [0, 128], sizes = [8, 128], strides = [1, 1]} : vector<8x384xf32> to vector<8x128xf32>
    %731 = vector.extract_strided_slice %721 {offsets = [0, 128], sizes = [8, 128], strides = [1, 1]} : vector<8x384xf32> to vector<8x128xf32>
    %732 = arith.addf %730, %731 : vector<8x128xf32>
    %733 = arith.negf %732 : vector<8x128xf32>
    %734 = math.exp %733 : vector<8x128xf32>
    %cst_163 = arith.constant 1.000000e+00 : f32
    %735 = vector.broadcast %cst_163 : f32 to vector<8x128xf32>
    %736 = arith.addf %735, %734 : vector<8x128xf32>
    %737 = arith.divf %735, %736 : vector<8x128xf32>
    %738 = vector.extract_strided_slice %718 {offsets = [0, 256], sizes = [8, 128], strides = [1, 1]} : vector<8x384xf32> to vector<8x128xf32>
    %739 = vector.extract_strided_slice %721 {offsets = [0, 256], sizes = [8, 128], strides = [1, 1]} : vector<8x384xf32> to vector<8x128xf32>
    %740 = arith.mulf %729, %739 : vector<8x128xf32>
    %741 = arith.addf %738, %740 : vector<8x128xf32>
    %742 = math.tanh %741 : vector<8x128xf32>
    %cst_164 = arith.constant 1.000000e+00 : f32
    %743 = vector.broadcast %cst_164 : f32 to vector<8x128xf32>
    %744 = arith.subf %743, %737 : vector<8x128xf32>
    %745 = arith.mulf %744, %742 : vector<8x128xf32>
    %746 = arith.mulf %737, %667 : vector<8x128xf32>
    %747 = arith.addf %745, %746 : vector<8x128xf32>
    %748 = vector.broadcast %668 : i32 to vector<8x1xi32>
    %749 = arith.cmpi slt, %748, %15 : vector<8x1xi32>
    %cst_165 = arith.constant 0.000000e+00 : f32
    %750 = vector.shape_cast %749 : vector<8x1xi1> to vector<8x1xi1>
    %751 = vector.broadcast %750 : vector<8x1xi1> to vector<8x128xi1>
    %752 = vector.broadcast %cst_165 : f32 to vector<8x128xf32>
    %753 = arith.select %751, %747, %752 : vector<8x128xi1>, vector<8x128xf32>
    %754 = arith.index_cast %668 : i32 to index
    %c0_166 = arith.constant 0 : index
    %c0_167 = arith.constant 0 : index
    %755 = vector.load %arg9[%754, %c0_166, %c0_167] : memref<8x8x128xf32, #tpu.memory_space<vmem>>, vector<1x8x128xf32>
    %756 = vector.shape_cast %755 : vector<1x8x128xf32> to vector<8x128xf32>
    %757 = vector.shape_cast %753 : vector<8x128xf32> to vector<1x8x128xf32>
    tpu.vector_store %arg9[%754, %c0_166, %c0_167], %757 {strides = array<i32>} : memref<8x8x128xf32, #tpu.memory_space<vmem>>, vector<1x8x128xf32>,
    %758 = vector.shape_cast %749 : vector<8x1xi1> to vector<8x1xi1>
    %759 = vector.broadcast %758 : vector<8x1xi1> to vector<8x128xi1>
    %760 = arith.select %759, %747, %667 : vector<8x128xi1>, vector<8x128xf32>
    %c8_i32_168 = arith.constant 8 : i32
    %c0_169 = arith.constant 0 : index
    %c0_170 = arith.constant 0 : index
    %c0_171 = arith.constant 0 : index
    %761 = vector.load %arg10[%c0_169, %c0_170, %c0_171] : memref<2x8x128xf32, #tpu.memory_space<vmem>>, vector<1x8x128xf32>
    %762 = vector.shape_cast %761 : vector<1x8x128xf32> to vector<8x128xf32>
    %763 = vector.shape_cast %714 : vector<8x128xf32> to vector<1x8x128xf32>
    tpu.vector_store %arg10[%c0_169, %c0_170, %c0_171], %763 {strides = array<i32>} : memref<2x8x128xf32, #tpu.memory_space<vmem>>, vector<1x8x128xf32>,
    %c1 = arith.constant 1 : index
    %c0_172 = arith.constant 0 : index
    %c0_173 = arith.constant 0 : index
    %764 = vector.load %arg10[%c1, %c0_172, %c0_173] : memref<2x8x128xf32, #tpu.memory_space<vmem>>, vector<1x8x128xf32>
    %765 = vector.shape_cast %764 : vector<1x8x128xf32> to vector<8x128xf32>
    %766 = vector.shape_cast %760 : vector<8x128xf32> to vector<1x8x128xf32>
    tpu.vector_store %arg10[%c1, %c0_172, %c0_173], %766 {strides = array<i32>} : memref<2x8x128xf32, #tpu.memory_space<vmem>>, vector<1x8x128xf32>,
    return
  }
}

</mosaic_0001>

<bundles_post_ra>
// kernel: tpu_custom_call.1
= control target key start
LH: loop header
LB: loop body
LE: loop exit
PB: predicated region body
PF: predicated region fallthrough
CT: control target
= control target key end

     0   :  { %16 = vsyncpa [#allocation4], 0  ;;  %s5565_s0 = inlined_call_operand.hbm [shape: bf16[64,128], index: 0, kind: input, shape index: {}]   ;;  %s5566_s1 = inlined_call_operand.vmem [shape: s32[8,1], index: 1, kind: input, shape index: {}]   ;;  %s5567_s2 = inlined_call_operand.hbm [shape: bf16[128,768], index: 2, kind: input, shape index: {}]   ;;  %s5568_s3 = inlined_call_operand.vmem [shape: f32[1,768], index: 3, kind: input, shape index: {}]   ;;  %s5569_s4 = inlined_call_operand.hbm [shape: bf16[128,384], index: 4, kind: input, shape index: {}]   ;;  %s5570_s5 = inlined_call_operand.vmem [shape: f32[1,384], index: 5, kind: input, shape index: {}]   ;;  %s5571_s6 = inlined_call_operand.hbm [shape: bf16[128,384], index: 6, kind: input, shape index: {}]   ;;  %s5572_s7 = inlined_call_operand.vmem [shape: f32[1,384], index: 7, kind: input, shape index: {}]   ;;  %s5573_s8 = inlined_call_operand.hbm [shape: f32[8,8,128], index: 8, kind: output, shape index: {0}]   ;;  %s5574_s9 = inlined_call_operand.hbm [shape: f32[8,8,128], index: 9, kind: output, shape index: {1}]   ;;  %s5575_s10 = inlined_call_operand.hbm [shape: f32[2,8,128], index: 10, kind: output, shape index: {2}]  }
   0x1   :  { %17 = vsyncpa [#allocation7], 0 }
   0x2   :  { %18 = vsyncpa [#allocation10], 0 }
   0x3   :  { %19 = vsyncpa [#allocation5], 0 }
   0x4   :  { %20 = vsyncpa [#allocation13], 0  ;;  %s4136_s13 = smov [#allocation6]   ;;  %s3972_s17 = scalar_lea.hbm %s5567_s2, 6144 }
   0x5   :  { %s40_s14 = sshll.u32 %s4136_s13, 4  ;;  %p3973_p0 = scmp.ne.s32.totalorder %s5567_s2, %s3972_s17  ;;  %s41_s14 = int_to_ptr.vmem [resolvable:$true] %s40_s14 }
   0x6   :  { %p3976_p1 = scmp.lt.u32.totalorder %s3972_s17, %s5567_s2 }
   0x8   :  { %p3978_p2 = pnand %p3976_p1, %p3973_p0 }
   0xa   :  { %3981 = shalt.err (!%p3978_p2)
}
   0xb   :  { %s3982_s22 = scalar_lea.vmem %s41_s14, 6144  ;;  %p3987_p4 = scmp.lt.s32.totalorder %s41_s14, %s41_s14 }
   0xc   :  { %p3983_p3 = scmp.ne.s32.totalorder %s41_s14, %s3982_s22  ;;  %p3988_p5 = scmp.lt.s32.totalorder %s3982_s22, %s3982_s22 }
   0xe   :  { %p3989_p6 = por %p3988_p5, %p3987_p4 }
  0x10   :  { %p3990_p7 = pnand %p3989_p6, %p3983_p3 }
  0x12   :  { %3993 = shalt.err (!%p3990_p7)
}
  0x13   :  { %s4137_s23 = smov 384   ;;  %s4138_s24 = smov 24  }
  0x14   :  { %46 = dma.hbm_to_vmem [thread:$0]  %s5567_s2, 6144, %s41_s14, [#allocation7], %s4137_s23, %s4137_s23, %s4138_s24  }
  0x15   :  { %s4139_s27 = smov [#allocation3]   ;;  %s3994_s11 = scalar_lea.hbm %s5565_s0, 512 }
  0x16   :  { %s26_s28 = sshll.u32 %s4139_s27, 4  ;;  %p3995_p8 = scmp.ne.s32.totalorder %s5565_s0, %s3994_s11  ;;  %s27_s28 = int_to_ptr.vmem [resolvable:$true] %s26_s28 }
  0x17   :  { %p3998_p9 = scmp.lt.u32.totalorder %s3994_s11, %s5565_s0 }
  0x19   :  { %p4000_p10 = pnand %p3998_p9, %p3995_p8 }
  0x1b   :  { %4003 = shalt.err (!%p4000_p10)
}
  0x1c   :  { %s4004_s17 = scalar_lea.vmem %s27_s28, 512  ;;  %p4009_p12 = scmp.lt.s32.totalorder %s27_s28, %s27_s28 }
  0x1d   :  { %p4005_p11 = scmp.ne.s32.totalorder %s27_s28, %s4004_s17  ;;  %p4010_p13 = scmp.lt.s32.totalorder %s4004_s17, %s4004_s17 }
  0x1f   :  { %p4011_p0 = por %p4010_p13, %p4009_p12 }
  0x21   :  { %p4012_p1 = pnand %p4011_p0, %p4005_p11 }
  0x23   :  { %4015 = shalt.err (!%p4012_p1)
}
  0x24   :  { %s4140_s2 = smov 64   ;;  %s4141_s14 = smov 4  }
  0x25   :  { %32 = dma.hbm_to_vmem [thread:$0]  %s5565_s0, 512, %s27_s28, [#allocation4], %s4140_s2, %s4140_s2, %s4141_s14  }
  0x26   :  { %s4142_s20 = smov [#allocation8]   ;;  %s4016_s24 = scalar_lea.hbm %s5569_s4, 3072 }
  0x27   :  { %s54_s21 = sshll.u32 %s4142_s20, 4  ;;  %p4017_p2 = scmp.ne.s32.totalorder %s5569_s4, %s4016_s24  ;;  %s55_s21 = int_to_ptr.vmem [resolvable:$true] %s54_s21 }
  0x28   :  { %p4020_p3 = scmp.lt.u32.totalorder %s4016_s24, %s5569_s4 }
  0x2a   :  { %p4022_p4 = pnand %p4020_p3, %p4017_p2 }
  0x2c   :  { %4025 = shalt.err (!%p4022_p4)
}
  0x2d   :  { %s4026_s30 = scalar_lea.vmem %s55_s21, 3072  ;;  %p4031_p6 = scmp.lt.s32.totalorder %s55_s21, %s55_s21 }
  0x2e   :  { %p4027_p5 = scmp.ne.s32.totalorder %s55_s21, %s4026_s30  ;;  %p4032_p7 = scmp.lt.s32.totalorder %s4026_s30, %s4026_s30 }
  0x30   :  { %p4033_p8 = por %p4032_p7, %p4031_p6 }
  0x32   :  { %p4034_p9 = pnand %p4033_p8, %p4027_p5 }
  0x34   :  { %4037 = shalt.err (!%p4034_p9)
}
  0x35   :  { %s4143_s0 = smov 192   ;;  %s4144_s28 = smov 12  }
  0x36   :  { %60 = dma.hbm_to_vmem [thread:$0]  %s5569_s4, 3072, %s55_s21, [#allocation7], %s4143_s0, %s4143_s0, %s4144_s28  }
  0x37   :  { %s4145_s13 = smov [#allocation9]   ;;  %s4038_s2 = scalar_lea.hbm %s5571_s6, 3072 }
  0x38   :  { %s68_s15 = sshll.u32 %s4145_s13, 4  ;;  %p4039_p10 = scmp.ne.s32.totalorder %s5571_s6, %s4038_s2  ;;  %s69_s15 = int_to_ptr.vmem [resolvable:$true] %s68_s15 }
  0x39   :  { %p4042_p11 = scmp.lt.u32.totalorder %s4038_s2, %s5571_s6 }
  0x3b   :  { %p4044_p12 = pnand %p4042_p11, %p4039_p10 }
  0x3d   :  { %4047 = shalt.err (!%p4044_p12)
}
  0x3e   :  { %s4048_s22 = scalar_lea.vmem %s69_s15, 3072  ;;  %p4053_p0 = scmp.lt.s32.totalorder %s69_s15, %s69_s15 }
  0x3f   :  { %p4049_p13 = scmp.ne.s32.totalorder %s69_s15, %s4048_s22  ;;  %p4054_p1 = scmp.lt.s32.totalorder %s4048_s22, %s4048_s22 }
  0x41   :  { %p4055_p2 = por %p4054_p1, %p4053_p0 }
  0x43   :  { %p4056_p3 = pnand %p4055_p2, %p4049_p13 }
  0x45   :  { %4059 = shalt.err (!%p4056_p3)
}
  0x46   :  { %74 = dma.hbm_to_vmem [thread:$0]  %s5571_s6, 3072, %s69_s15, [#allocation10], %s4143_s0, %s4143_s0, %s4144_s28  }
  0x47   :  { %4126 = dma.done.wait [#allocation4], 512  }
  0x48   :  { %4127 = vsyncadd [#allocation4], 4294966784 }
  0x49   :  { %4128 = dma.done.wait [#allocation7], 9216  }
  0x4a   :  { %4129 = vsyncadd [#allocation7], 4294958080 }
  0x4b   :  { %4130 = dma.done.wait [#allocation10], 3072  }
  0x4c   :  { %4131 = vsyncadd [#allocation10], 4294964224  ;;  %v5581_v0 = vmov 0   ;;  %v3578_v1 = vld [vmem:[#allocation6 + $0x4] ss:$24 sps:$4 sm:$0xff]   ;;  %v4280_v44 = vld [vmem:[#allocation3 + $0x8] sm:$0xff]  }
  0x4d   :  { %474 = vmatprep.mubr.bf16.mxu0 %v5581_v0  ;;  %547 = vmatprep.mubr.bf16.mxu1 %v5581_v0  ;;  %v3580_v2 = vld [vmem:[#allocation6 + $0xc] ss:$24 sps:$4 sm:$0xff]   ;;  %v3582_v3 = vld [vmem:[#allocation6] ss:$24 sps:$4 sm:$0xff]   ;;  %v3586_v6 = vld [vmem:[#allocation6 + $0x3c] ss:$24 sps:$4 sm:$0xff]  }
  0x4e   :  { %3576 = vset.pattern.permute.xlu0 %v5581_v0  ;;  %3577 = vset.pattern.permute.xlu1 %v5581_v0  ;;  %v3583_v4 = vld [vmem:[#allocation6 + $0x8] ss:$24 sps:$4 sm:$0xff]   ;;  %v3584_v5 = vld [vmem:[#allocation6 + $0x34] ss:$24 sps:$4 sm:$0xff]   ;;  %v3589_v8 = vld [vmem:[#allocation6 + $0x38] ss:$24 sps:$4 sm:$0xff]  }
  0x4f   :  { %442 = vmatprep.subr.bf16.mxu0 %v3578_v1  ;;  %515 = vmatprep.subr.bf16.mxu1 %v3580_v2  ;;  %v3588_v7 = vld [vmem:[#allocation6 + $0x30] ss:$24 sps:$4 sm:$0xff]   ;;  %v3590_v9 = vld [vmem:[#allocation6 + $0x64] ss:$24 sps:$4 sm:$0xff]   ;;  %v3594_v11 = vld [vmem:[#allocation6 + $0x60] ss:$24 sps:$4 sm:$0xff]  }
  0x50   :  { %443 = vmatpush1.bf16.msra.mxu0 %v3582_v3  ;;  %516 = vmatpush1.bf16.msra.mxu1 %v3583_v4  ;;  %v3592_v10 = vld [vmem:[#allocation6 + $0x6c] ss:$24 sps:$4 sm:$0xff]   ;;  %v3595_v12 = vld [vmem:[#allocation6 + $0x68] ss:$24 sps:$4 sm:$0xff]   ;;  %v3598_v14 = vld [vmem:[#allocation6 + $0x9c] ss:$24 sps:$4 sm:$0xff]  }
  0x51   :  { %444 = vmatprep.subr.bf16.mxu0 %v3584_v5  ;;  %517 = vmatprep.subr.bf16.mxu1 %v3586_v6  ;;  %v3596_v13 = vld [vmem:[#allocation6 + $0x94] ss:$24 sps:$4 sm:$0xff]   ;;  %v3600_v15 = vld [vmem:[#allocation6 + $0x90] ss:$24 sps:$4 sm:$0xff]   ;;  %v3602_v17 = vld [vmem:[#allocation6 + $0xc4] ss:$24 sps:$4 sm:$0xff]  }
  0x52   :  { %v3601_v16 = vld [vmem:[#allocation6 + $0x98] ss:$24 sps:$4 sm:$0xff]   ;;  %v3604_v18 = vld [vmem:[#allocation6 + $0xcc] ss:$24 sps:$4 sm:$0xff]   ;;  %v3607_v20 = vld [vmem:[#allocation6 + $0xc8] ss:$24 sps:$4 sm:$0xff]  }
  0x53   :  { %v3606_v19 = vld [vmem:[#allocation6 + $0xc0] ss:$24 sps:$4 sm:$0xff]   ;;  %v3608_v21 = vld [vmem:[#allocation6 + $0xf4] ss:$24 sps:$4 sm:$0xff]   ;;  %v3612_v23 = vld [vmem:[#allocation6 + $0xf0] ss:$24 sps:$4 sm:$0xff]  }
  0x54   :  { %445 = vmatpush1.bf16.msra.mxu0 %v3588_v7  ;;  %518 = vmatpush1.bf16.msra.mxu1 %v3589_v8  ;;  %v3610_v22 = vld [vmem:[#allocation6 + $0xfc] ss:$24 sps:$4 sm:$0xff]   ;;  %v3613_v24 = vld [vmem:[#allocation6 + $0xf8] ss:$24 sps:$4 sm:$0xff]   ;;  %v3616_v26 = vld [vmem:[#allocation6 + $0x12c] ss:$24 sps:$4 sm:$0xff]  }
  0x55   :  { %446 = vmatprep.subr.bf16.mxu0 %v3590_v9  ;;  %519 = vmatprep.subr.bf16.mxu1 %v3592_v10  ;;  %v3614_v25 = vld [vmem:[#allocation6 + $0x124] ss:$24 sps:$4 sm:$0xff]   ;;  %v3618_v27 = vld [vmem:[#allocation6 + $0x120] ss:$24 sps:$4 sm:$0xff]   ;;  %v3620_v29 = vld [vmem:[#allocation6 + $0x154] ss:$24 sps:$4 sm:$0xff]  }
  0x56   :  { %v3619_v28 = vld [vmem:[#allocation6 + $0x128] ss:$24 sps:$4 sm:$0xff]   ;;  %v3622_v30 = vld [vmem:[#allocation6 + $0x15c] ss:$24 sps:$4 sm:$0xff]   ;;  %v3625_v32 = vld [vmem:[#allocation6 + $0x158] ss:$24 sps:$4 sm:$0xff]  }
  0x57   :  { %v3624_v31 = vld [vmem:[#allocation6 + $0x150] ss:$24 sps:$4 sm:$0xff]   ;;  %v3629_v33 = vld [vmem:[#allocation6 + $0x14] ss:$24 sps:$4 sm:$0xff]   ;;  %v4263_v35 = vld [vmem:[#allocation3] sm:$0xff]   ;;  %v5576_v9 = vmov 0.0  }
  0x58   :  { %447 = vmatpush1.bf16.msra.mxu0 %v3594_v11  ;;  %520 = vmatpush1.bf16.msra.mxu1 %v3595_v12  ;;  %v4261_v34 = vld [vmem:[#allocation8 + $0x4] ss:$12 sps:$4 sm:$0xff]   ;;  %v4265_v37 = vld [vmem:[#allocation8] ss:$12 sps:$4 sm:$0xff]   ;;  %v4268_v39 = vld [vmem:[#allocation8 + $0x1c] ss:$12 sps:$4 sm:$0xff]  }
  0x59   :  { %448 = vmatprep.subr.bf16.mxu0 %v3596_v13  ;;  %521 = vmatprep.subr.bf16.mxu1 %v3598_v14  ;;  %v3627_v36 = vld [vmem:[#allocation6 + $0x10] ss:$24 sps:$4 sm:$0xff]   ;;  %v3635_v38 = vld [vmem:[#allocation6 + $0x44] ss:$24 sps:$4 sm:$0xff]   ;;  %v3633_v40 = vld [vmem:[#allocation6 + $0x40] ss:$24 sps:$4 sm:$0xff]  }
  0x5a   :  { %v4273_v41 = vld [vmem:[#allocation8 + $0x18] ss:$12 sps:$4 sm:$0xff]   ;;  %v3642_v42 = vld [vmem:[#allocation6 + $0x74] ss:$24 sps:$4 sm:$0xff]   ;;  %v3640_v45 = vld [vmem:[#allocation6 + $0x70] ss:$24 sps:$4 sm:$0xff]  }
  0x5b   :  { %v4276_v43 = vld [vmem:[#allocation8 + $0x34] ss:$12 sps:$4 sm:$0xff]   ;;  %v4282_v46 = vld [vmem:[#allocation8 + $0x30] ss:$12 sps:$4 sm:$0xff]   ;;  %v4286_v48 = vld [vmem:[#allocation8 + $0x4c] ss:$12 sps:$4 sm:$0xff]  }
  0x5c   :  { %449 = vmatpush1.bf16.msra.mxu0 %v3600_v15  ;;  %522 = vmatpush1.bf16.msra.mxu1 %v3601_v16  ;;  %v3648_v47 = vld [vmem:[#allocation6 + $0xa4] ss:$24 sps:$4 sm:$0xff]   ;;  %v3646_v49 = vld [vmem:[#allocation6 + $0xa0] ss:$24 sps:$4 sm:$0xff]   ;;  %v4290_v50 = vld [vmem:[#allocation8 + $0x48] ss:$12 sps:$4 sm:$0xff]  }
  0x5d   :  { %450 = vmatprep.subr.bf16.mxu0 %v3602_v17  ;;  %523 = vmatprep.subr.bf16.mxu1 %v3604_v18  ;;  %v3655_v51 = vld [vmem:[#allocation6 + $0xd4] ss:$24 sps:$4 sm:$0xff]   ;;  %v4294_v52 = vld [vmem:[#allocation8 + $0x64] ss:$12 sps:$4 sm:$0xff]   ;;  %v4304_v57 = vld [vmem:[#allocation8 + $0x7c] ss:$12 sps:$4 sm:$0xff]  }
  0x5e   :  { %v4298_v53 = vld [vmem:[#allocation3 + $0x10] sm:$0xff]   ;;  %v4301_v55 = vld [vmem:[#allocation8 + $0x60] ss:$12 sps:$4 sm:$0xff]   ;;  %v3661_v56 = vld [vmem:[#allocation6 + $0x104] ss:$24 sps:$4 sm:$0xff]   ;;  %vm4148_vm4 = vmmov 0  }
  0x5f   :  { %v3653_v54 = vld [vmem:[#allocation6 + $0xd0] ss:$24 sps:$4 sm:$0xff]   ;;  %v3659_v58 = vld [vmem:[#allocation6 + $0x100] ss:$24 sps:$4 sm:$0xff]   ;;  %v3668_v60 = vld [vmem:[#allocation6 + $0x134] ss:$24 sps:$4 sm:$0xff]  }
  0x60   :  { %451 = vmatpush1.bf16.msra.mxu0 %v3606_v19  ;;  %524 = vmatpush1.bf16.msra.mxu1 %v3607_v20  ;;  %v4309_v59 = vld [vmem:[#allocation8 + $0x78] ss:$12 sps:$4 sm:$0xff]   ;;  %v4312_v61 = vld [vmem:[#allocation8 + $0x94] ss:$12 sps:$4 sm:$0xff]   ;;  %v3666_v63 = vld [vmem:[#allocation6 + $0x130] ss:$24 sps:$4 sm:$0xff]  }
  0x61   :  { %452 = vmatprep.subr.bf16.mxu0 %v3608_v21  ;;  %525 = vmatprep.subr.bf16.mxu1 %v3610_v22  ;;  %v4316_v62 = vld [vmem:[#allocation3 + $0x18] sm:$0xff]   ;;  %v4327_v5 = vld [vmem:[#allocation8 + $0xa8] ss:$12 sps:$4 sm:$0xff]   ;;  %v4330_v6 = vld [vmem:[#allocation9 + $0x4] ss:$12 sps:$4 sm:$0xff]  }
  0x62   :  { %v4318_v1 = vld [vmem:[#allocation8 + $0x90] ss:$12 sps:$4 sm:$0xff]   ;;  %v4322_v3 = vld [vmem:[#allocation8 + $0xac] ss:$12 sps:$4 sm:$0xff]   ;;  %5636 = vst [vmem:[#allocation22_spill] sm:$0xff] %v4327_v5  ;;  %5637 = vst [vmem:[#allocation23_spill] sm:$0xff] %v4330_v6 }
  0x63   :  { %5634 = vst [vmem:[#allocation20_spill] sm:$0xff] %v4318_v1  ;;  %v3674_v2 = vld [vmem:[#allocation6 + $0x164] ss:$24 sps:$4 sm:$0xff]   ;;  %5635 = vst [vmem:[#allocation21_spill] sm:$0xff] %v4322_v3  ;;  %v3672_v4 = vld [vmem:[#allocation6 + $0x160] ss:$24 sps:$4 sm:$0xff]  }
  0x64   :  { %453 = vmatpush1.bf16.msra.mxu0 %v3612_v23  ;;  %526 = vmatpush1.bf16.msra.mxu1 %v3613_v24  ;;  %v4334_v7 = vld [vmem:[#allocation8 + $0x8] ss:$12 sps:$4 sm:$0xff]   ;;  %v4337_v8 = vld [vmem:[#allocation9] ss:$12 sps:$4 sm:$0xff]   ;;  %v4349_v12 = vld [vmem:[#allocation9 + $0x18] ss:$12 sps:$4 sm:$0xff]  }
  0x65   :  { %454 = vmatprep.subr.bf16.mxu0 %v3614_v25  ;;  %527 = vmatprep.subr.bf16.mxu1 %v3616_v26  ;;  %v4341_v10 = vld [vmem:[#allocation9 + $0x1c] ss:$12 sps:$4 sm:$0xff]   ;;  %v4345_v11 = vld [vmem:[#allocation8 + $0x20] ss:$12 sps:$4 sm:$0xff]   ;;  %v4357_v14 = vld [vmem:[#allocation8 + $0x38] ss:$12 sps:$4 sm:$0xff]  }
  0x66   :  { %v4353_v13 = vld [vmem:[#allocation9 + $0x34] ss:$12 sps:$4 sm:$0xff]   ;;  %v4361_v15 = vld [vmem:[#allocation9 + $0x30] ss:$12 sps:$4 sm:$0xff]   ;;  %v4365_v16 = vld [vmem:[#allocation9 + $0x4c] ss:$12 sps:$4 sm:$0xff]  }
  0x67   :  { %v4370_v17 = vld [vmem:[%s5566_s1] sm:$0xff]  ;;  %v4377_v19 = vld [vmem:[#allocation8 + $0x50] ss:$12 sps:$4 sm:$0xff]   ;;  %v4379_v20 = vld [vmem:[#allocation9 + $0x48] ss:$12 sps:$4 sm:$0xff]  }
  0x68   :  { %455 = vmatpush1.bf16.msra.mxu0 %v3618_v27  ;;  %528 = vmatpush1.bf16.msra.mxu1 %v3619_v28  ;;  %vm1044_vm0 = vcmp.gt.s32.totalorder %v4370_v17, 0  ;;  %vm1288_vm1 = vcmp.gt.s32.totalorder %v4370_v17, 7  ;;  %v4384_v21 = vld [vmem:[#allocation9 + $0x64] ss:$12 sps:$4 sm:$0xff]   ;;  %v4390_v23 = vld [vmem:[#allocation8 + $0x68] ss:$12 sps:$4 sm:$0xff]  }
  0x69   :  { %456 = vmatprep.subr.bf16.mxu0 %v3620_v29  ;;  %529 = vmatprep.subr.bf16.mxu1 %v3622_v30  ;;  %v1045_v18 = vsel %vm1044_vm0, 1, %v5581_v0  ;;  %v1289_v22 = vsel %vm1288_vm1, 1, %v5581_v0  ;;  %v4392_v24 = vld [vmem:[#allocation9 + $0x60] ss:$12 sps:$4 sm:$0xff]   ;;  %vm1644_vm2 = vcmp.gt.s32.totalorder %v4370_v17, 2  ;;  %vm1882_vm3 = vcmp.gt.s32.totalorder %v4370_v17, 3 }
  0x6a   :  { %1047 = vperm.xlu0 %3576, %v1045_v18   ;;  %v4397_v25 = vld [vmem:[#allocation9 + $0x7c] ss:$12 sps:$4 sm:$0xff]   ;;  %v1645_v26 = vsel %vm1644_vm2, 1, %v5581_v0  ;;  %v4403_v27 = vld [vmem:[#allocation8 + $0x80] ss:$12 sps:$4 sm:$0xff]   ;;  %v1883_v30 = vsel %vm1882_vm3, 1, %v5581_v0 }
  0x6b   :  { %v4405_v28 = vld [vmem:[#allocation9 + $0x78] ss:$12 sps:$4 sm:$0xff]   ;;  %v4410_v29 = vld [vmem:[#allocation9 + $0x94] ss:$12 sps:$4 sm:$0xff]   ;;  %vm1406_vm5 = vcmp.gt.s32.totalorder %v4370_v17, 1  ;;  %vm1525_vm6 = vcmp.gt.s32.totalorder %v4370_v17, 6 }
  0x6c   :  { %457 = vmatpush1.bf16.msra.mxu0 %v3624_v31  ;;  %530 = vmatpush1.bf16.msra.mxu1 %v3625_v32  ;;  %v4416_v31 = vld [vmem:[#allocation8 + $0x98] ss:$12 sps:$4 sm:$0xff]   ;;  %v4418_v32 = vld [vmem:[#allocation9 + $0x90] ss:$12 sps:$4 sm:$0xff]   ;;  %vm1763_vm7 = vcmp.gt.s32.totalorder %v4370_v17, 5  ;;  %vm2001_vm8 = vcmp.gt.s32.totalorder %v4370_v17, 4 }
  0x6d   :  { %588 = vmatprep.subr.bf16.mxu0 %v3629_v33  ;;  %942 = vmatprep.subr.bf16.mxu1 %v4261_v34  ;;  %5638 = vst [vmem:[#allocation24_spill] sm:$0xff] %v4416_v31  ;;  %v4422_v33 = vld [vmem:[#allocation9 + $0xac] ss:$12 sps:$4 sm:$0xff]  }
  0x6e   :  { %1291 = vperm.xlu0 %3576, %v1289_v22  }
  0x6f   :  { %475 = vmatmul.mubr.bf16.vlgmr.msra.gmra.mrb[0].mxu0 %v4263_v35  ;;  %548 = vmatmul.mubr.bf16.vlgmr.msra.gmra.mrb[0].mxu1 %v4263_v35 }
  0x70   :  { %589 = vmatpush1.bf16.msra.mxu0 %v3627_v36  ;;  %943 = vmatpush1.bf16.msra.mxu1 %v4265_v37  ;;  %v4429_v36 = vld [vmem:[#allocation9 + $0xa8] ss:$12 sps:$4 sm:$0xff]  }
  0x71   :  { %590 = vmatprep.subr.bf16.mxu0 %v3635_v38  ;;  %944 = vmatprep.subr.bf16.mxu1 %v4268_v39  ;;  %v4437_v38 = vld [vmem:[#allocation9 + $0x8] ss:$12 sps:$4 sm:$0xff]  }
  0x72   :  { %484 = vmatprep.mubr.bf16.mxu0 %v5581_v0  ;;  %557 = vmatprep.mubr.bf16.mxu1 %v5581_v0 }
  0x73   :  { %1647 = vperm.xlu0 %3576, %v1645_v26  }
  0x74   :  { %591 = vmatpush1.bf16.msra.mxu0 %v3633_v40  ;;  %945 = vmatpush1.bf16.msra.mxu1 %v4273_v41  ;;  %v4444_v40 = vld [vmem:[#allocation9 + $0x20] ss:$12 sps:$4 sm:$0xff]  }
  0x75   :  { %592 = vmatprep.subr.bf16.mxu0 %v3642_v42  ;;  %946 = vmatprep.subr.bf16.mxu1 %v4276_v43  ;;  %v4459_v42 = vld [vmem:[#allocation9 + $0x50] ss:$12 sps:$4 sm:$0xff]  }
  0x77   :  { %485 = vmatmul.mubr.bf16.gmra.mrb[4].mxu0 %v4280_v44  ;;  %558 = vmatmul.mubr.bf16.gmra.mrb[4].mxu1 %v4280_v44 }
  0x78   :  { %593 = vmatpush1.bf16.msra.mxu0 %v3640_v45  ;;  %947 = vmatpush1.bf16.msra.mxu1 %v4282_v46 }
  0x79   :  { %594 = vmatprep.subr.bf16.mxu0 %v3648_v47  ;;  %948 = vmatprep.subr.bf16.mxu1 %v4286_v48 }
  0x7a   :  { %494 = vmatprep.mubr.bf16.mxu0 %v5581_v0  ;;  %567 = vmatprep.mubr.bf16.mxu1 %v5581_v0 }
  0x7b   :  { %1885 = vperm.xlu0 %3576, %v1883_v30  }
  0x7c   :  { %595 = vmatpush1.bf16.msra.mxu0 %v3646_v49  ;;  %949 = vmatpush1.bf16.msra.mxu1 %v4290_v50 }
  0x7d   :  { %596 = vmatprep.subr.bf16.mxu0 %v3655_v51  ;;  %950 = vmatprep.subr.bf16.mxu1 %v4294_v52  ;;  %v1526_v51 = vsel %vm1525_vm6, 1, %v5581_v0 }
  0x7f   :  { %495 = vmatmul.mubr.bf16.gmra.mrb[8].mxu0 %v4298_v53  ;;  %568 = vmatmul.mubr.bf16.gmra.mrb[8].mxu1 %v4298_v53 }
  0x80   :  { %597 = vmatpush1.bf16.msra.mxu0 %v3653_v54  ;;  %951 = vmatpush1.bf16.msra.mxu1 %v4301_v55 }
  0x81   :  { %598 = vmatprep.subr.bf16.mxu0 %v3661_v56  ;;  %952 = vmatprep.subr.bf16.mxu1 %v4304_v57 }
  0x82   :  { %504 = vmatprep.mubr.bf16.mxu0 %v5581_v0  ;;  %577 = vmatprep.mubr.bf16.mxu1 %v5581_v0 }
  0x84   :  { %599 = vmatpush1.bf16.msra.mxu0 %v3659_v58  ;;  %953 = vmatpush1.bf16.msra.mxu1 %v4309_v59 }
  0x85   :  { %600 = vmatprep.subr.bf16.mxu0 %v3668_v60  ;;  %954 = vmatprep.subr.bf16.mxu1 %v4312_v61 }
  0x87   :  { %505 = vmatmul.mubr.bf16.gmra.mrb[12].mxu0 %v4316_v62  ;;  %578 = vmatmul.mubr.bf16.gmra.mrb[12].mxu1 %v4316_v62 }
  0x88   :  { %601 = vmatpush1.bf16.msra.mxu0 %v3666_v63  ;;  %955 = vmatpush1.bf16.msra.mxu1 %v4318_v1 }
  0x89   :  { %602 = vmatprep.subr.bf16.mxu0 %v3674_v2  ;;  %956 = vmatprep.subr.bf16.mxu1 %v4322_v3 }
  0x8a   :  { %620 = vmatprep.mubr.bf16.mxu0 %v5581_v0  ;;  %974 = vmatprep.mubr.bf16.mxu1 %v5581_v0 }
  0x8c   :  { %603 = vmatpush1.bf16.msra.mxu0 %v3672_v4  ;;  %957 = vmatpush1.bf16.msra.mxu1 %v4327_v5 }
  0x8d   :  { %3238 = vmatprep.subr.bf16.mxu0 %v5576_v9  ;;  %1186 = vmatprep.subr.bf16.mxu1 %v4330_v6 }
  0x8f   :  { %621 = vmatmul.mubr.bf16.vlgmr.msra.gmra.mrb[16].mxu0 %v4263_v35  ;;  %975 = vmatmul.mubr.bf16.vlgmr.msra.gmra.mrb[16].mxu1 %v5581_v0  ;;  %v4427_v35 = vld [vmem:[#allocation8 + $0xb0] ss:$12 sps:$4 sm:$0xff]  }
  0x90   :  { %3239 = vmatpush3.bf16.msra.mxu0 %v4334_v7  ;;  %1187 = vmatpush1.bf16.msra.mxu1 %v4337_v8  ;;  %5639 = vst [vmem:[#allocation25_spill] sm:$0xff] %v4427_v35 }
  0x91   :  { %3240 = vmatprep.subr.bf16.mxu0 %v5576_v9  ;;  %1188 = vmatprep.subr.bf16.mxu1 %v4341_v10 }
  0x92   :  { %630 = vmatprep.mubr.bf16.mxu0 %v5581_v0  ;;  %1218 = vmatprep.mubr.bf16.mxu1 %v5581_v0 }
  0x94   :  { %3241 = vmatpush3.bf16.msra.mxu0 %v4345_v11  ;;  %1189 = vmatpush1.bf16.msra.mxu1 %v4349_v12 }
  0x95   :  { %3242 = vmatprep.subr.bf16.mxu0 %v5576_v9  ;;  %1190 = vmatprep.subr.bf16.mxu1 %v4353_v13 }
  0x97   :  { %631 = vmatmul.mubr.bf16.gmra.mrb[20].mxu0 %v4280_v44  ;;  %v148_v44 = vlaneseq }
  0x98   :  { %3243 = vmatpush3.bf16.msra.mxu0 %v4357_v14  ;;  %1191 = vmatpush1.bf16.msra.mxu1 %v4361_v15 }
  0x99   :  { %3244 = vmatprep.subr.bf16.mxu0 %v5576_v9  ;;  %1192 = vmatprep.subr.bf16.mxu1 %v4365_v16  ;;  %v4511_v45 = vshrl.u32 %v148_v44, 7 }
  0x9a   :  { %640 = vmatprep.mubr.bf16.mxu0 %v5581_v0 }
  0x9b   :  { %v162_v47 = vsub.s32 3, %v4511_v45  ;;  %v4521_v49 = vsub.s32 2, %v4511_v45  ;;  %v4531_v54 = vsub.s32 1, %v4511_v45 }
  0x9c   :  { %3245 = vmatpush3.bf16.msra.mxu0 %v4377_v19  ;;  %1193 = vmatpush1.bf16.msra.mxu1 %v4379_v20 }
  0x9d   :  { %3246 = vmatprep.subr.bf16.mxu0 %v5576_v9  ;;  %1194 = vmatprep.subr.bf16.mxu1 %v4384_v21 }
  0x9f   :  { %641 = vmatmul.mubr.bf16.gmra.mrb[24].mxu0 %v4298_v53  ;;  %v4527_v53 = vld [vmem:[%s5568_s3] sm:$0x3f] }
  0xa0   :  { %3247 = vmatpush3.bf16.msra.mxu0 %v4390_v23  ;;  %1195 = vmatpush1.bf16.msra.mxu1 %v4392_v24  ;;  %v4534_v56 = vrot.slane %v4527_v53, %v162_v47  ;;  %v4542_v60 = vrot.slane %v4527_v53, %v4521_v49  ;;  %v4554_v22 = vrot.slane %v4527_v53, %v4531_v54 }
  0xa1   :  { %3248 = vmatprep.subr.bf16.mxu0 %v5576_v9  ;;  %1196 = vmatprep.subr.bf16.mxu1 %v4397_v25 }
  0xa2   :  { %650 = vmatprep.mubr.bf16.mxu0 %v5581_v0 }
  0xa4   :  { %3249 = vmatpush3.bf16.msra.mxu0 %v4403_v27  ;;  %1197 = vmatpush1.bf16.msra.mxu1 %v4405_v28 }
  0xa5   :  { %3250 = vmatprep.subr.bf16.mxu0 %v5576_v9  ;;  %1198 = vmatprep.subr.bf16.mxu1 %v4410_v29 }
  0xa7   :  { %651 = vmatmul.mubr.bf16.gmra.mrb[28].mxu0 %v4316_v62  ;;  %v1764_v62 = vsel %vm1763_vm7, 1, %v5581_v0 }
  0xa8   :  { %3251 = vmatpush3.bf16.msra.mxu0 %v4416_v31  ;;  %1199 = vmatpush1.bf16.msra.mxu1 %v4418_v32 }
  0xa9   :  { %3252 = vmatprep.subr.bf16.mxu0 %v5576_v9  ;;  %1200 = vmatprep.subr.bf16.mxu1 %v4422_v33 }
  0xaa   :  { %3254 = vmatprep.mubr.msk.bf16.mxu0 %vm4148_vm4, %v5576_v9 }
  0xac   :  { %3253 = vmatpush3.bf16.msra.mxu0 %v4427_v35  ;;  %1201 = vmatpush1.bf16.msra.mxu1 %v4429_v36 }
  0xad   :  { %3258 = vmatprep.subr.bf16.mxu0 %v5576_v9  ;;  %1304 = vmatprep.subr.bf16.mxu1 %v4261_v34  ;;  %v4453_v34 = vld [vmem:[#allocation9 + $0x38] ss:$12 sps:$4 sm:$0xff]  }
  0xaf   :  { %3255 = vmatmul.mubr.bf16.vlgmr.msra.gmra.mrb[32].mxu0 %v5581_v0  ;;  %1219 = vmatmul.mubr.bf16.vlgmr.msra.gmra.mrb[20].mxu1 %v5581_v0 }
  0xb0   :  { %3259 = vmatpush3.bf16.msra.mxu0 %v4437_v38  ;;  %3274 = vmatprep.mubr.msk.bf16.mxu0 %vm4148_vm4, %v5576_v9 }
  0xb1   :  { %3260 = vmatprep.subr.bf16.mxu0 %v5576_v9  ;;  %1305 = vmatpush1.bf16.msra.mxu1 %v4265_v37  ;;  %v4465_v37 = vld [vmem:[#allocation9 + $0x68] ss:$12 sps:$4 sm:$0xff]  }
  0xb2   :  { %1306 = vmatprep.subr.bf16.mxu1 %v4268_v39  ;;  %1336 = vmatprep.mubr.bf16.mxu1 %v5581_v0  ;;  %v4471_v39 = vld [vmem:[#allocation9 + $0x80] ss:$12 sps:$4 sm:$0xff]  }
  0xb4   :  { %3261 = vmatpush3.bf16.msra.mxu0 %v4444_v40 }
  0xb5   :  { %3262 = vmatprep.subr.bf16.mxu0 %v5576_v9  ;;  %1307 = vmatpush1.bf16.msra.mxu1 %v4273_v41  ;;  %v4477_v41 = vld [vmem:[#allocation9 + $0x98] ss:$12 sps:$4 sm:$0xff]  }
  0xb6   :  { %1308 = vmatprep.subr.bf16.mxu1 %v4276_v43  ;;  %v4483_v43 = vld [vmem:[#allocation9 + $0xb0] ss:$12 sps:$4 sm:$0xff]  }
  0xb8   :  { %3263 = vmatpush3.bf16.msra.mxu0 %v4453_v34 }
  0xb9   :  { %3264 = vmatprep.subr.bf16.mxu0 %v5576_v9  ;;  %1309 = vmatpush1.bf16.msra.mxu1 %v4282_v46  ;;  %v1407_v46 = vsel %vm1406_vm5, 1, %v5581_v0 }
  0xba   :  { %1310 = vmatprep.subr.bf16.mxu1 %v4286_v48  ;;  %1409 = vperm.xlu1 %3577, %v1407_v46   ;;  %v4518_v48 = vsub.s32 0, %v4511_v45 }
  0xbc   :  { %3265 = vmatpush3.bf16.msra.mxu0 %v4459_v42  ;;  %v4538_v58 = vrot.slane %v4527_v53, %v4518_v48 }
  0xbd   :  { %3266 = vmatprep.subr.bf16.mxu0 %v5576_v9  ;;  %1311 = vmatpush1.bf16.msra.mxu1 %v4290_v50 }
  0xbe   :  { %1312 = vmatprep.subr.bf16.mxu1 %v4294_v52  ;;  %1528 = vperm.xlu1 %3577, %v1526_v51  }
  0xc0   :  { %3267 = vmatpush3.bf16.msra.mxu0 %v4465_v37 }
  0xc1   :  { %3268 = vmatprep.subr.bf16.mxu0 %v5576_v9  ;;  %1313 = vmatpush1.bf16.msra.mxu1 %v4301_v55 }
  0xc2   :  { %1314 = vmatprep.subr.bf16.mxu1 %v4304_v57  ;;  %1766 = vperm.xlu1 %3577, %v1764_v62  }
  0xc4   :  { %3269 = vmatpush3.bf16.msra.mxu0 %v4471_v39 }
  0xc5   :  { %3270 = vmatprep.subr.bf16.mxu0 %v5576_v9  ;;  %1315 = vmatpush1.bf16.msra.mxu1 %v4309_v59 }
  0xc6   :  { %1316 = vmatprep.subr.bf16.mxu1 %v4312_v61 }
  0xc8   :  { %3271 = vmatpush3.bf16.msra.mxu0 %v4477_v41 }
  0xc9   :  { %3272 = vmatprep.subr.bf16.mxu0 %v5576_v9  ;;  %1317 = vmatpush1.bf16.msra.mxu1 %v4318_v1 }
  0xca   :  { %1318 = vmatprep.subr.bf16.mxu1 %v4322_v3 }
  0xcc   :  { %3273 = vmatpush3.bf16.msra.mxu0 %v4483_v43 }
  0xcd   :  { %3278 = vmatprep.subr.bf16.mxu0 %v5576_v9  ;;  %1319 = vmatpush1.bf16.msra.mxu1 %v4327_v5 }
  0xce   :  { %1423 = vmatprep.subr.bf16.mxu1 %v4330_v6 }
  0xcf   :  { %3275 = vmatmul.mubr.bf16.vlgmr.msra.gmra.mrb[36].mxu0 %v5581_v0 }
  0xd0   :  { %3279 = vmatpush3.bf16.msra.mxu0 %v4334_v7  ;;  %3294 = vmatprep.mubr.msk.bf16.mxu0 %vm4148_vm4, %v5576_v9 }
  0xd1   :  { %3280 = vmatprep.subr.bf16.mxu0 %v5576_v9 }
  0xd4   :  { %3281 = vmatpush3.bf16.msra.mxu0 %v4345_v11 }
  0xd5   :  { %3282 = vmatprep.subr.bf16.mxu0 %v5576_v9 }
  0xd8   :  { %3283 = vmatpush3.bf16.msra.mxu0 %v4357_v14 }
  0xd9   :  { %3284 = vmatprep.subr.bf16.mxu0 %v5576_v9 }
  0xdc   :  { %3285 = vmatpush3.bf16.msra.mxu0 %v4377_v19 }
  0xdd   :  { %3286 = vmatprep.subr.bf16.mxu0 %v5576_v9 }
  0xe0   :  { %3287 = vmatpush3.bf16.msra.mxu0 %v4390_v23 }
  0xe1   :  { %3288 = vmatprep.subr.bf16.mxu0 %v5576_v9 }
  0xe4   :  { %3289 = vmatpush3.bf16.msra.mxu0 %v4403_v27 }
  0xe5   :  { %3290 = vmatprep.subr.bf16.mxu0 %v5576_v9 }
  0xe8   :  { %3291 = vmatpush3.bf16.msra.mxu0 %v4416_v31 }
  0xe9   :  { %3292 = vmatprep.subr.bf16.mxu0 %v5576_v9 }
  0xec   :  { %3293 = vmatpush3.bf16.msra.mxu0 %v4427_v35 }
  0xed   :  { %3298 = vmatprep.subr.bf16.mxu0 %v5576_v9  ;;  %v2002_v9 = vsel %vm2001_vm8, 1, %v5581_v0 }
  0xee   :  { %2004 = vperm.xlu1 %3577, %v2002_v9  }
 0x142   :  { %v4545_v63 = vpop.f32.mrb[0].mxu0  ;;  %v4547_v2 = vpop.f32.mrb[0].mxu1 }
 0x143   :  { %v4550_v4 = vpop.f32.mrb[1].mxu0  ;;  %v551_v18 = vpop.f32.mrb[1].mxu1 }
 0x144   :  { %v480_v26 = vpop.f32.mrb[2].mxu0  ;;  %v4557_v30 = vadd.f32 %v551_v18, %v4534_v56  ;;  %v553_v44 = vpop.f32.mrb[2].mxu1  ;;  %v479_v5 = vadd.f32 %v4550_v4, %v4554_v22 }
 0x145   :  { %v4560_v46 = vadd.f32 %v480_v26, %v4538_v58  ;;  %v482_v47 = vpop.f32.mrb[3].mxu0  ;;  %v4563_v51 = vadd.f32 %v553_v44, %v4542_v60  ;;  %v555_v17 = vpop.f32.mrb[3].mxu1 }
 0x146   :  { %5640 = vst [vmem:[#allocation26_spill] sm:$0xff] %v4557_v30  ;;  %v4567_v6 = vadd.f32 %v482_v47, %v4554_v22  ;;  %v4570_v35 = vadd.f32 %v555_v17, %v4534_v56 }
 0x147   :  { %5641 = vst [vmem:[#allocation27_spill] sm:$0xff] %v4560_v46  ;;  %5642 = vst [vmem:[#allocation28_spill] sm:$0xff] %v4563_v51 }
 0x148   :  { %5643 = vst [vmem:[#allocation29_spill] sm:$0xff] %v4567_v6  ;;  %5644 = vst [vmem:[#allocation30_spill] sm:$0xff] %v4570_v35 }
 0x14a   :  { %v486_v18 = vpop.f32.mrb[4].mxu0  ;;  %v559_v30 = vpop.f32.mrb[4].mxu1 }
 0x14b   :  { %v4573_v62 = vadd.f32 %v486_v18, %v4538_v58  ;;  %v488_v26 = vpop.f32.mrb[5].mxu0  ;;  %v4576_v46 = vadd.f32 %v559_v30, %v4542_v60  ;;  %v561_v44 = vpop.f32.mrb[5].mxu1 }
 0x14c   :  { %v4579_v51 = vadd.f32 %v488_v26, %v4554_v22  ;;  %v490_v0 = vpop.f32.mrb[6].mxu0  ;;  %v4582_v47 = vadd.f32 %v561_v44, %v4534_v56  ;;  %v563_v17 = vpop.f32.mrb[6].mxu1 }
 0x14d   :  { %5645 = vst [vmem:[#allocation31_spill] sm:$0xff] %v4573_v62  ;;  %5646 = vst [vmem:[#allocation32_spill] sm:$0xff] %v4576_v46  ;;  %v4585_v9 = vadd.f32 %v490_v0, %v4538_v58  ;;  %v492_v35 = vpop.f32.mrb[7].mxu0  ;;  %v4588_v18 = vadd.f32 %v563_v17, %v4542_v60  ;;  %v565_v62 = vpop.f32.mrb[7].mxu1 }
 0x14e   :  { %5647 = vst [vmem:[#allocation33_spill] sm:$0xff] %v4579_v51  ;;  %5648 = vst [vmem:[#allocation34_spill] sm:$0xff] %v4582_v47  ;;  %v4591_v30 = vadd.f32 %v492_v35, %v4554_v22  ;;  %v4594_v46 = vadd.f32 %v565_v62, %v4534_v56 }
 0x14f   :  { %5649 = vst [vmem:[#allocation35_spill] sm:$0xff] %v4585_v9  ;;  %5650 = vst [vmem:[#allocation36_spill] sm:$0xff] %v4588_v18 }
 0x150   :  { %5651 = vst [vmem:[#allocation37_spill] sm:$0xff] %v4591_v30  ;;  %5652 = vst [vmem:[#allocation38_spill] sm:$0xff] %v4594_v46 }
 0x152   :  { %v496_v26 = vpop.f32.mrb[8].mxu0  ;;  %v569_v51 = vpop.f32.mrb[8].mxu1 }
 0x153   :  { %v4597_v44 = vadd.f32 %v496_v26, %v4538_v58  ;;  %v498_v47 = vpop.f32.mrb[9].mxu0  ;;  %v4600_v0 = vadd.f32 %v569_v51, %v4542_v60  ;;  %v571_v9 = vpop.f32.mrb[9].mxu1 }
 0x154   :  { %v4603_v17 = vadd.f32 %v498_v47, %v4554_v22  ;;  %v500_v18 = vpop.f32.mrb[10].mxu0  ;;  %v4606_v35 = vadd.f32 %v571_v9, %v4534_v56  ;;  %v573_v30 = vpop.f32.mrb[10].mxu1 }
 0x155   :  { %5653 = vst [vmem:[#allocation39_spill] sm:$0xff] %v4597_v44  ;;  %5654 = vst [vmem:[#allocation40_spill] sm:$0xff] %v4600_v0  ;;  %v4609_v62 = vadd.f32 %v500_v18, %v4538_v58  ;;  %v502_v46 = vpop.f32.mrb[11].mxu0  ;;  %v4612_v26 = vadd.f32 %v573_v30, %v4542_v60  ;;  %v575_v44 = vpop.f32.mrb[11].mxu1  ;;  %v166_v30 = vsub.s32 4, %v4511_v45 }
 0x156   :  { %5655 = vst [vmem:[#allocation41_spill] sm:$0xff] %v4603_v17  ;;  %5656 = vst [vmem:[#allocation42_spill] sm:$0xff] %v4606_v35  ;;  %v4615_v51 = vadd.f32 %v502_v46, %v4554_v22  ;;  %v4618_v0 = vadd.f32 %v575_v44, %v4534_v56 }
 0x157   :  { %5657 = vst [vmem:[#allocation43_spill] sm:$0xff] %v4609_v62  ;;  %5658 = vst [vmem:[#allocation44_spill] sm:$0xff] %v4612_v26 }
 0x158   :  { %5659 = vst [vmem:[#allocation45_spill] sm:$0xff] %v4615_v51  ;;  %5660 = vst [vmem:[#allocation46_spill] sm:$0xff] %v4618_v0 }
 0x15a   :  { %v506_v47 = vpop.f32.mrb[12].mxu0  ;;  %v579_v17 = vpop.f32.mrb[12].mxu1 }
 0x15b   :  { %v4621_v9 = vadd.f32 %v506_v47, %v4538_v58  ;;  %v508_v35 = vpop.f32.mrb[13].mxu0  ;;  %v4624_v18 = vadd.f32 %v579_v17, %v4542_v60  ;;  %v581_v62 = vpop.f32.mrb[13].mxu1  ;;  %v773_v47 = vld [vmem:[%s5570_s5] sm:$0x7] }
 0x15c   :  { %v4628_v26 = vadd.f32 %v508_v35, %v4554_v22  ;;  %v510_v46 = vpop.f32.mrb[14].mxu0  ;;  %v4631_v51 = vadd.f32 %v581_v62, %v4534_v56  ;;  %v583_v44 = vpop.f32.mrb[14].mxu1  ;;  %v4647_v62 = vrot.slane %v4527_v53, %v166_v30 }
 0x15d   :  { %5661 = vst [vmem:[#allocation47_spill] sm:$0xff] %v4621_v9  ;;  %5662 = vst [vmem:[#allocation48_spill] sm:$0xff] %v4624_v18  ;;  %v170_v9 = vsub.s32 5, %v4511_v45  ;;  %v4638_v17 = vadd.f32 %v510_v46, %v4538_v58  ;;  %v512_v18 = vpop.f32.mrb[15].mxu0  ;;  %v4641_v0 = vadd.f32 %v583_v44, %v4542_v60  ;;  %v585_v35 = vpop.f32.mrb[15].mxu1  ;;  %v4656_v45 = vrot.slane %v773_v47, %v4531_v54 }
 0x15e   :  { %5663 = vst [vmem:[#allocation49_spill] sm:$0xff] %v4628_v26  ;;  %5664 = vst [vmem:[#allocation50_spill] sm:$0xff] %v4631_v51  ;;  %v4644_v26 = vadd.f32 %v512_v18, %v4554_v22  ;;  %v4650_v51 = vrot.slane %v773_v47, %v4518_v48  ;;  %v477_v44 = vadd.f32 %v4545_v63, %v4538_v58 }
 0x15f   :  { %5665 = vst [vmem:[#allocation51_spill] sm:$0xff] %v4638_v17  ;;  %5666 = vst [vmem:[#allocation52_spill] sm:$0xff] %v4641_v0  ;;  %v4653_v6 = vrot.slane %v4527_v53, %v170_v9 }
 0x160   :  { %5667 = vst [vmem:[#allocation53_spill] sm:$0xff] %v4644_v26  ;;  %5668 = vst [vmem:[#allocation54_spill] sm:$0xff] %v4650_v51 }
 0x161   :  { %5669 = vst [vmem:[#allocation55_spill] sm:$0xff] %v4656_v45 }
 0x162   :  { %v622_v46 = vpop.f32.mrb[16].mxu0  ;;  %v976_v17 = vpop.f32.mrb[16].mxu1 }
 0x163   :  { %v4661_v18 = vadd.f32 %v622_v46, %v4647_v62  ;;  %v977_v30 = vadd.f32 %v976_v17, %v4650_v51  ;;  %v624_v0 = vpop.f32.mrb[17].mxu0  ;;  %v978_v26 = vpop.f32.mrb[17].mxu1 }
 0x164   :  { %v4667_v53 = vadd.f32 %v624_v0, %v4653_v6  ;;  %v979_v9 = vadd.f32 %v978_v26, %v4656_v45  ;;  %v626_v3 = vpop.f32.mrb[18].mxu0  ;;  %v980_v31 = vpop.f32.mrb[18].mxu1 }
 0x165   :  { %5670 = vst [vmem:[#allocation56_spill] sm:$0xff] %v4661_v18  ;;  %v1023_v1 = vadd.f32 %v977_v30, %v477_v44  ;;  %v4671_v58 = vadd.f32 %v626_v3, %v4647_v62  ;;  %v628_v63 = vpop.f32.mrb[19].mxu0  ;;  %v981_v46 = vpop.f32.mrb[19].mxu1 }
 0x166   :  { %5671 = vst [vmem:[#allocation57_spill] sm:$0xff] %v4667_v53  ;;  %v1030_v18 = vadd.f32 %v979_v9, %v479_v5  ;;  %v4674_v17 = vadd.f32 %v628_v63, %v4653_v6 }
 0x167   :  { %5672 = vst [vmem:[#allocation58_spill] sm:$0xff] %v4671_v58  ;;  %v3026_v51 = vmul.f32 -1.442695, %v1023_v1 }
 0x168   :  { %5673 = vst [vmem:[#allocation59_spill] sm:$0xff] %v4674_v17  ;;  %v3027_v30 = vmul.f32 -1.442695, %v1030_v18 }
 0x169   :  { %3718 = vpow2.f32 %v3026_v51 }
 0x16a   :  { %v632_v4 = vpop.f32.mrb[20].mxu0  ;;  %3720 = vpow2.f32 %v3027_v30 }
 0x16b   :  { %v4677_v22 = vadd.f32 %v632_v4, %v4647_v62  ;;  %v634_v0 = vpop.f32.mrb[21].mxu0 }
 0x16c   :  { %v4680_v26 = vadd.f32 %v634_v0, %v4653_v6  ;;  %v636_v31 = vpop.f32.mrb[22].mxu0 }
 0x16d   :  { %5674 = vst [vmem:[#allocation60_spill] sm:$0xff] %v4677_v22  ;;  %v4683_v3 = vadd.f32 %v636_v31, %v4647_v62  ;;  %v638_v44 = vpop.f32.mrb[23].mxu0 }
 0x16e   :  { %5675 = vst [vmem:[#allocation61_spill] sm:$0xff] %v4680_v26  ;;  %v4686_v5 = vadd.f32 %v638_v44, %v4653_v6 }
 0x16f   :  { %5676 = vst [vmem:[#allocation62_spill] sm:$0xff] %v4683_v3 }
 0x170   :  { %5677 = vst [vmem:[#allocation63_spill] sm:$0xff] %v4686_v5  ;;  %v586_v5 = vadd.f32 %v585_v35, %v4534_v56 }
 0x172   :  { %v642_v9 = vpop.f32.mrb[24].mxu0 }
 0x173   :  { %v3719_v1 = vpop.eup %3718  ;;  %v4689_v51 = vadd.f32 %v642_v9, %v4647_v62  ;;  %v644_v63 = vpop.f32.mrb[25].mxu0 }
 0x174   :  { %v4692_v46 = vadd.f32 %v644_v63, %v4653_v6  ;;  %v646_v4 = vpop.f32.mrb[26].mxu0  ;;  %v1027_v53 = vadd.f32 1.0, %v3719_v1  ;;  %v3721_v1 = vpop.eup %3720 }
 0x175   :  { %5678 = vst [vmem:[#allocation64_spill] sm:$0xff] %v4689_v51  ;;  %v4695_v0 = vadd.f32 %v646_v4, %v4647_v62  ;;  %v648_v31 = vpop.f32.mrb[27].mxu0  ;;  %v790_v4 = vld [vmem:[%s5572_s7] sm:$0x7]  ;;  %v1034_v26 = vadd.f32 1.0, %v3721_v1  ;;  %s4149_s7 = smov [#allocation11]  }
 0x176   :  { %5679 = vst [vmem:[#allocation65_spill] sm:$0xff] %v4692_v46  ;;  %v4698_v44 = vadd.f32 %v648_v31, %v4653_v6  ;;  %3722 = vrcp.f32 %v1027_v53  ;;  %v4712_v31 = vrot.slane %v773_v47, %v4521_v49  ;;  %v4715_v53 = vrot.slane %v790_v4, %v4518_v48  ;;  %s2898_s27 = sshll.u32 %s4149_s7, 4  ;;  %s2899_s27 = int_to_ptr.vmem [resolvable:$true] %s2898_s27 }
 0x177   :  { %5680 = vst [vmem:[#allocation66_spill] sm:$0xff] %v4695_v0  ;;  %3724 = vrcp.f32 %v1034_v26  ;;  %s4060_s29 = scalar_lea.vmem %s2899_s27, 1024  ;;  %p4065_p5 = scmp.lt.s32.totalorder %s2899_s27, %s2899_s27 }
 0x178   :  { %5681 = vst [vmem:[#allocation67_spill] sm:$0xff] %v4698_v44  ;;  %5684 = vst [vmem:[#allocation70_spill] sm:$0xff] %v4712_v31  ;;  %p4061_p4 = scmp.ne.s32.totalorder %s2899_s27, %s4060_s29  ;;  %p4066_p6 = scmp.lt.s32.totalorder %s4060_s29, %s4060_s29 }
 0x179   :  { %5685 = vst [vmem:[#allocation71_spill] sm:$0xff] %v4715_v53 }
 0x17a   :  { %v652_v18 = vpop.f32.mrb[28].mxu0  ;;  %p4067_p7 = por %p4066_p6, %p4065_p5 }
 0x17b   :  { %v4701_v17 = vadd.f32 %v652_v18, %v4647_v62  ;;  %v654_v9 = vpop.f32.mrb[29].mxu0  ;;  %v4718_v18 = vrot.slane %v790_v4, %v4531_v54  ;;  %v550_v54 = vadd.f32 %v4547_v2, %v4542_v60 }
 0x17c   :  { %v4704_v30 = vadd.f32 %v654_v9, %v4653_v6  ;;  %v656_v63 = vpop.f32.mrb[30].mxu0  ;;  %p4068_p8 = pnand %p4067_p7, %p4061_p4 }
 0x17d   :  { %5682 = vst [vmem:[#allocation68_spill] sm:$0xff] %v4701_v17  ;;  %v4709_v58 = vpop.f32.mrb[31].mxu0  ;;  %v657_v47 = vadd.f32 %v656_v63, %v4647_v62 }
 0x17e   :  { %5683 = vst [vmem:[#allocation69_spill] sm:$0xff] %v4704_v30 }
 0x180   :  { %v3723_v0 = vpop.eup %3722 }
 0x182   :  { %v1017_v9 = vpop.f32.mrb[32].mxu0  ;;  %v1220_v22 = vpop.f32.mrb[20].mxu1 }
 0x183   :  { %v1018_v3 = vadd.f32 %v1017_v9, %v4712_v31  ;;  %v1221_v46 = vadd.f32 %v1220_v22, %v4715_v53  ;;  %v3256_v51 = vpop.f32.mrb[33].mxu0  ;;  %v1222_v44 = vpop.f32.mrb[21].mxu1 }
 0x184   :  { %v1223_v48 = vadd.f32 %v1222_v44, %v4718_v18  ;;  %v1020_v30 = vpop.f32.mrb[34].mxu0  ;;  %v1224_v17 = vpop.f32.mrb[22].mxu1 }
 0x185   :  { %v1037_v1 = vmul.f32 %v3723_v0, %v1018_v3  ;;  %v1267_v45 = vadd.f32 %v1221_v46, %v586_v5  ;;  %v3257_v56 = vpop.f32.mrb[35].mxu0  ;;  %v1225_v35 = vpop.f32.mrb[23].mxu1  ;;  %v5687_v5 = vmov 0.0   ;;  %v5688_v46 = vmov 0  }
 0x186   :  { %v1274_v9 = vadd.f32 %v1223_v48, %v657_v47  ;;  %v3725_v51 = vpop.eup %3724  ;;  %v4727_v44 = vpop.permute.xlu0 %1047 }
 0x187   :  { %v1038_v31 = vadd.f32 %v1037_v1, %v550_v54  ;;  %v3052_v22 = vmul.f32 -1.442695, %v1267_v45  ;;  %v1040_v62 = vsub.f32 1.0, %v3725_v51  ;;  %5686 = vst [vmem:[#allocation72_spill] sm:$0xff] %v4727_v44  ;;  %v1042_v60 = vmul.f32 0.0, %v3725_v51 }
 0x188   :  { %v3053_v53 = vmul.f32 -1.442695, %v1274_v9  ;;  %vm1049_vm9 = vcmp.eq.s32.totalorder %v4727_v44, 1 }
 0x189   :  { %3726 = vtanh.f32 %v1038_v31  ;;  %vm3054_vm10 = vmpackc.low %vm1049_vm9, %vm1049_vm9  ;;  %v4748_v31 = vrot.slane %v790_v4, %v4521_v49  ;;  %v659_v49 = vadd.f32 %v4709_v58, %v4653_v6 }
 0x18a   :  { %3728 = vpow2.f32 %v3052_v22 }
 0x18b   :  { %3730 = vpow2.f32 %v3053_v53 }
 0x193   :  { %v3727_v63 = vpop.eup %3726 }
 0x194   :  { %v3729_v17 = vpop.eup %3728  ;;  %v1041_v30 = vmul.f32 %v3727_v63, %v1040_v62  ;;  %v4775_v63 = vpop.permute.xlu0 %1291 }
 0x195   :  { %v1271_v2 = vadd.f32 1.0, %v3729_v17  ;;  %v3731_v0 = vpop.eup %3730  ;;  %5689 = vst [vmem:[#allocation73_spill] sm:$0xff] %v4775_v63  ;;  %vm1293_vm11 = vcmp.eq.s32.totalorder %v4775_v63, 1 }
 0x196   :  { %v1043_v26 = vadd.f32 %v1042_v60, %v1041_v30  ;;  %v1278_v53 = vadd.f32 1.0, %v3731_v0  ;;  %v4780_v60 = vld [vmem:[#allocation8 + $0x4] ss:$12 sps:$4 sm:$0xff]   ;;  %vm3062_vm12 = vmpackc.low %vm1293_vm11, %vm1293_vm11 }
 0x197   :  { %3732 = vrcp.f32 %v1271_v2  ;;  %v4803_v0 = vld [vmem:[#allocation8 + $0x18] ss:$12 sps:$4 sm:$0xff]  }
 0x198   :  { %v4735_v45 = vsel %vm1049_vm9, %v1043_v26, 0.0  ;;  %v3055_v3 = vpack.c.bf16 %v1043_v26, %v1043_v26  ;;  %3734 = vrcp.f32 %v1278_v53  ;;  %v4792_v26 = vld [vmem:[#allocation8] ss:$12 sps:$4 sm:$0xff]  }
 0x199   :  { %1051 = vst [vmem:[#allocation11] sm:$0xff] %v4735_v45  ;;  %v4807_v53 = vld [vmem:[#allocation8 + $0x34] ss:$12 sps:$4 sm:$0xff]  }
 0x19a   :  { %3056 = vmatmul.mubr.msk.bf16.vlgmr.msra.gmra.mrb[24].mxu1 %vm3054_vm10, %v3055_v3  ;;  %3295 = vmatmul.mubr.msk.bf16.vlgmr.msra.gmra.mrb[40].mxu0 %vm3054_vm10, %v3055_v3  ;;  %v4796_v3 = vld [vmem:[#allocation8 + $0x1c] ss:$12 sps:$4 sm:$0xff]  }
 0x19b   :  { %1424 = vmatpush1.bf16.msra.mxu1 %v4337_v8  ;;  %3299 = vmatpush3.bf16.msra.mxu0 %v4437_v38 }
 0x19c   :  { %1425 = vmatprep.subr.bf16.mxu1 %v4341_v10  ;;  %3300 = vmatprep.subr.bf16.mxu0 %v5687_v5 }
 0x19d   :  { %1455 = vmatprep.mubr.bf16.mxu1 %v5688_v46  ;;  %3314 = vmatprep.mubr.msk.bf16.mxu0 %vm4148_vm4, %v5687_v5 }
 0x19f   :  { %1426 = vmatpush1.bf16.msra.mxu1 %v4349_v12  ;;  %3301 = vmatpush3.bf16.msra.mxu0 %v4444_v40 }
 0x1a0   :  { %1427 = vmatprep.subr.bf16.mxu1 %v4353_v13  ;;  %3302 = vmatprep.subr.bf16.mxu0 %v5687_v5 }
 0x1a1   :  { %v3733_v1 = vpop.eup %3732 }
 0x1a2   :  { %v1261_v47 = vpop.f32.mrb[36].mxu0  ;;  %v3735_v6 = vpop.eup %3734 }
 0x1a3   :  { %v1262_v48 = vadd.f32 %v1261_v47, %v4748_v31  ;;  %v3276_v54 = vpop.f32.mrb[37].mxu0  ;;  %1428 = vmatpush1.bf16.msra.mxu1 %v4361_v15  ;;  %3303 = vmatpush3.bf16.msra.mxu0 %v4453_v34  ;;  %v1284_v58 = vsub.f32 1.0, %v3735_v6  ;;  %v1286_v62 = vmul.f32 0.0, %v3735_v6  ;;  %v4815_v47 = vld [vmem:[#allocation8 + $0x4c] ss:$12 sps:$4 sm:$0xff]  }
 0x1a4   :  { %v1264_v56 = vpop.f32.mrb[38].mxu0  ;;  %1429 = vmatprep.subr.bf16.mxu1 %v4365_v16  ;;  %3304 = vmatprep.subr.bf16.mxu0 %v5687_v5  ;;  %v5697_v54 = vld [vmem:[#allocation55_spill] sm:$0xff] }
 0x1a5   :  { %v1281_v4 = vmul.f32 %v3733_v1, %v1262_v48  ;;  %v3277_v35 = vpop.f32.mrb[39].mxu0 }
 0x1a7   :  { %v1282_v9 = vadd.f32 %v1281_v4, %v659_v49  ;;  %1430 = vmatpush1.bf16.msra.mxu1 %v4379_v20  ;;  %3305 = vmatpush3.bf16.msra.mxu0 %v4459_v42  ;;  %v5698_v4 = vld [vmem:[#allocation27_spill] sm:$0xff] }
 0x1a8   :  { %1431 = vmatprep.subr.bf16.mxu1 %v4384_v21  ;;  %3306 = vmatprep.subr.bf16.mxu0 %v5687_v5 }
 0x1a9   :  { %3736 = vtanh.f32 %v1282_v9 }
 0x1ab   :  { %1432 = vmatpush1.bf16.msra.mxu1 %v4392_v24  ;;  %3307 = vmatpush3.bf16.msra.mxu0 %v4465_v37 }
 0x1ac   :  { %1433 = vmatprep.subr.bf16.mxu1 %v4397_v25  ;;  %3308 = vmatprep.subr.bf16.mxu0 %v5687_v5 }
 0x1af   :  { %1434 = vmatpush1.bf16.msra.mxu1 %v4405_v28  ;;  %3309 = vmatpush3.bf16.msra.mxu0 %v4471_v39 }
 0x1b0   :  { %1435 = vmatprep.subr.bf16.mxu1 %v4410_v29  ;;  %3310 = vmatprep.subr.bf16.mxu0 %v5687_v5 }
 0x1b3   :  { %v3737_v22 = vpop.eup %3736  ;;  %1436 = vmatpush1.bf16.msra.mxu1 %v4418_v32  ;;  %3311 = vmatpush3.bf16.msra.mxu0 %v4477_v41 }
 0x1b4   :  { %1437 = vmatprep.subr.bf16.mxu1 %v4422_v33  ;;  %3312 = vmatprep.subr.bf16.mxu0 %v5687_v5  ;;  %v1285_v51 = vmul.f32 %v3737_v22, %v1284_v58  ;;  %v5699_v58 = vld [vmem:[#allocation29_spill] sm:$0xff] }
 0x1b6   :  { %v1287_v17 = vadd.f32 %v1286_v62, %v1285_v51 }
 0x1b7   :  { %1438 = vmatpush1.bf16.msra.mxu1 %v4429_v36  ;;  %3313 = vmatpush3.bf16.msra.mxu0 %v4483_v43 }
 0x1b8   :  { %v3063_v30 = vpack.c.bf16 %v1287_v17, %v1287_v17  ;;  %1542 = vmatprep.subr.bf16.mxu1 %v4780_v60  ;;  %3318 = vmatprep.subr.bf16.mxu0 %v5687_v5  ;;  %v4786_v2 = vsel %vm1293_vm11, %v1287_v17, 0.0 }
 0x1b9   :  { %1296 = vst [vmem:[#allocation12 + $0x38] sm:$0xff] %v4786_v2 }
 0x1ba   :  { %3064 = vmatmul.mubr.msk.bf16.vlgmr.msra.gmra.mrb[28].mxu1 %vm3062_vm12, %v3063_v30  ;;  %3315 = vmatmul.mubr.msk.bf16.vlgmr.msra.gmra.mrb[44].mxu0 %vm3062_vm12, %v3063_v30 }
 0x1bb   :  { %1543 = vmatpush1.bf16.msra.mxu1 %v4792_v26  ;;  %3319 = vmatpush3.bf16.msra.mxu0 %v4334_v7  ;;  %v4811_v7 = vld [vmem:[#allocation8 + $0x30] ss:$12 sps:$4 sm:$0xff]  }
 0x1bc   :  { %1544 = vmatprep.subr.bf16.mxu1 %v4796_v3  ;;  %3320 = vmatprep.subr.bf16.mxu0 %v5687_v5 }
 0x1bd   :  { %1574 = vmatprep.mubr.bf16.mxu1 %v5688_v46  ;;  %3334 = vmatprep.mubr.msk.bf16.mxu0 %vm4148_vm4, %v5687_v5 }
 0x1bf   :  { %1545 = vmatpush1.bf16.msra.mxu1 %v4803_v0  ;;  %3321 = vmatpush3.bf16.msra.mxu0 %v4345_v11  ;;  %v5692_v11 = vld [vmem:[#allocation21_spill] sm:$0xff] }
 0x1c0   :  { %1546 = vmatprep.subr.bf16.mxu1 %v4807_v53  ;;  %3322 = vmatprep.subr.bf16.mxu0 %v5687_v5 }
 0x1c3   :  { %1547 = vmatpush1.bf16.msra.mxu1 %v4811_v7  ;;  %3323 = vmatpush3.bf16.msra.mxu0 %v4357_v14  ;;  %v5695_v14 = vld [vmem:[#allocation23_spill] sm:$0xff] }
 0x1c4   :  { %1548 = vmatprep.subr.bf16.mxu1 %v4815_v47  ;;  %3324 = vmatprep.subr.bf16.mxu0 %v5687_v5 }
 0x1c7   :  { %1549 = vmatpush1.bf16.msra.mxu1 %v4290_v50  ;;  %3325 = vmatpush3.bf16.msra.mxu0 %v4377_v19  ;;  %v5690_v50 = vld [vmem:[#allocation20_spill] sm:$0xff]  ;;  %v5696_v19 = vld [vmem:[#allocation54_spill] sm:$0xff] }
 0x1c8   :  { %1550 = vmatprep.subr.bf16.mxu1 %v4294_v52  ;;  %3326 = vmatprep.subr.bf16.mxu0 %v5687_v5  ;;  %v5691_v52 = vld [vmem:[#allocation24_spill] sm:$0xff] }
 0x1cb   :  { %1551 = vmatpush1.bf16.msra.mxu1 %v4301_v55  ;;  %3327 = vmatpush3.bf16.msra.mxu0 %v4390_v23  ;;  %v5693_v55 = vld [vmem:[#allocation22_spill] sm:$0xff] }
 0x1cc   :  { %1552 = vmatprep.subr.bf16.mxu1 %v4304_v57  ;;  %3328 = vmatprep.subr.bf16.mxu0 %v5687_v5  ;;  %v5694_v57 = vld [vmem:[#allocation25_spill] sm:$0xff] }
 0x1cf   :  { %1553 = vmatpush1.bf16.msra.mxu1 %v4309_v59  ;;  %3329 = vmatpush3.bf16.msra.mxu0 %v4403_v27 }
 0x1d0   :  { %1554 = vmatprep.subr.bf16.mxu1 %v4312_v61  ;;  %3330 = vmatprep.subr.bf16.mxu0 %v5687_v5 }
 0x1d3   :  { %1555 = vmatpush1.bf16.msra.mxu1 %v5690_v50  ;;  %3331 = vmatpush3.bf16.msra.mxu0 %v5691_v52 }
 0x1d4   :  { %1556 = vmatprep.subr.bf16.mxu1 %v5692_v11  ;;  %3332 = vmatprep.subr.bf16.mxu0 %v5687_v5 }
 0x1d7   :  { %1557 = vmatpush1.bf16.msra.mxu1 %v5693_v55  ;;  %3333 = vmatpush3.bf16.msra.mxu0 %v5694_v57  ;;  %v5700_v55 = vld [vmem:[#allocation70_spill] sm:$0xff] }
 0x1d8   :  { %1661 = vmatprep.subr.bf16.mxu1 %v5695_v14  ;;  %3338 = vmatprep.subr.bf16.mxu0 %v5687_v5 }
 0x26d   :  { %v1338_v59 = vpop.f32.mrb[24].mxu1  ;;  %v1379_v61 = vpop.f32.mrb[40].mxu0 }
 0x26e   :  { %v1339_v23 = vadd.f32 %v1338_v59, %v5696_v19  ;;  %v1340_v27 = vpop.f32.mrb[25].mxu1  ;;  %v3296_v48 = vpop.f32.mrb[41].mxu0  ;;  %v1380_v14 = vadd.f32 %v1379_v61, %v5700_v55 }
 0x26f   :  { %v1341_v1 = vadd.f32 %v1340_v27, %v5697_v54  ;;  %v1342_v56 = vpop.f32.mrb[26].mxu1  ;;  %v1382_v49 = vpop.f32.mrb[42].mxu0 }
 0x270   :  { %v1385_v35 = vadd.f32 %v1339_v23, %v5698_v4  ;;  %v1343_v9 = vpop.f32.mrb[27].mxu1  ;;  %v3297_v6 = vpop.f32.mrb[43].mxu0  ;;  %v5701_v56 = vld [vmem:[#allocation28_spill] sm:$0xff]  ;;  %v5702_v4 = vld [vmem:[#allocation71_spill] sm:$0xff] }
 0x271   :  { %v1392_v22 = vadd.f32 %v1341_v1, %v5699_v58 }
 0x272   :  { %v3060_v51 = vmul.f32 -1.442695, %v1385_v35 }
 0x273   :  { %v3061_v62 = vmul.f32 -1.442695, %v1392_v22 }
 0x274   :  { %3738 = vpow2.f32 %v3060_v51  ;;  %v5703_v51 = vld [vmem:[#allocation50_spill] sm:$0xff] }
 0x275   :  { %3740 = vpow2.f32 %v3061_v62 }
 0x27e   :  { %v3739_v17 = vpop.eup %3738 }
 0x27f   :  { %v1389_v30 = vadd.f32 1.0, %v3739_v17  ;;  %v3741_v50 = vpop.eup %3740 }
 0x280   :  { %v1396_v11 = vadd.f32 1.0, %v3741_v50 }
 0x281   :  { %3742 = vrcp.f32 %v1389_v30  ;;  %v5704_v30 = vld [vmem:[#allocation68_spill] sm:$0xff] }
 0x282   :  { %3744 = vrcp.f32 %v1396_v11 }
 0x28b   :  { %v3743_v59 = vpop.eup %3742 }
 0x28c   :  { %v1399_v27 = vmul.f32 %v3743_v59, %v1380_v14  ;;  %v3745_v14 = vpop.eup %3744 }
 0x28d   :  { %v1457_v48 = vpop.f32.mrb[28].mxu1  ;;  %v1498_v23 = vpop.f32.mrb[44].mxu0 }
 0x28e   :  { %v1400_v49 = vadd.f32 %v1399_v27, %v5701_v56  ;;  %v1458_v1 = vadd.f32 %v1457_v48, %v5702_v4  ;;  %v1459_v35 = vpop.f32.mrb[29].mxu1  ;;  %v3316_v9 = vpop.f32.mrb[45].mxu0  ;;  %v1402_v27 = vsub.f32 1.0, %v3745_v14 }
 0x28f   :  { %v1460_v6 = vadd.f32 %v1459_v35, %v4718_v18  ;;  %v1461_v58 = vpop.f32.mrb[30].mxu1  ;;  %v1501_v22 = vpop.f32.mrb[46].mxu0  ;;  %v1404_v35 = vmul.f32 %v3745_v14, %v4735_v45  ;;  %v4975_v14 = vld [vmem:[#allocation9 + $0x4] ss:$12 sps:$4 sm:$0xff]  }
 0x290   :  { %3746 = vtanh.f32 %v1400_v49  ;;  %v1504_v62 = vadd.f32 %v1458_v1, %v5703_v51  ;;  %v1462_v17 = vpop.f32.mrb[31].mxu1  ;;  %v3317_v61 = vpop.f32.mrb[47].mxu0  ;;  %5717 = vst [vmem:[#allocation50_spill] sm:$0xff] %v4975_v14 }
 0x291   :  { %v1511_v50 = vadd.f32 %v1460_v6, %v5704_v30  ;;  %v4849_v48 = vpop.permute.xlu1 %1409  ;;  %v4956_v17 = vld [vmem:[#allocation8 + $0x80] ss:$12 sps:$4 sm:$0xff]   ;;  %v4963_v30 = vld [vmem:[#allocation8 + $0x90] ss:$12 sps:$4 sm:$0xff]  }
 0x292   :  { %v3068_v11 = vmul.f32 -1.442695, %v1504_v62  ;;  %5705 = vst [vmem:[#allocation20_spill] sm:$0xff] %v4849_v48  ;;  %vm1411_vm13 = vcmp.eq.s32.totalorder %v4849_v48, 1  ;;  %5712 = vst [vmem:[#allocation55_spill] sm:$0xff] %v4956_v17 }
 0x293   :  { %v3069_v59 = vmul.f32 -1.442695, %v1511_v50  ;;  %v4959_v61 = vld [vmem:[#allocation8 + $0x94] ss:$12 sps:$4 sm:$0xff]   ;;  %5714 = vst [vmem:[#allocation29_spill] sm:$0xff] %v4963_v30 }
 0x294   :  { %3748 = vpow2.f32 %v3068_v11  ;;  %5713 = vst [vmem:[#allocation27_spill] sm:$0xff] %v4959_v61  ;;  %v4967_v50 = vld [vmem:[#allocation8 + $0xac] ss:$12 sps:$4 sm:$0xff]   ;;  %v4971_v11 = vld [vmem:[#allocation8 + $0xa8] ss:$12 sps:$4 sm:$0xff]  }
 0x295   :  { %3750 = vpow2.f32 %v3069_v59  ;;  %5715 = vst [vmem:[#allocation28_spill] sm:$0xff] %v4967_v50  ;;  %5716 = vst [vmem:[#allocation71_spill] sm:$0xff] %v4971_v11  ;;  %v5081_v48 = vld [vmem:[#allocation9 + $0xa8] ss:$12 sps:$4 sm:$0xff]  }
 0x29a   :  { %v3747_v56 = vpop.eup %3746 }
 0x29b   :  { %v1403_v9 = vmul.f32 %v3747_v56, %v1402_v27 }
 0x29d   :  { %v1405_v49 = vadd.f32 %v1404_v35, %v1403_v9 }
 0x29e   :  { %v3749_v1 = vpop.eup %3748 }
 0x29f   :  { %v1508_v58 = vadd.f32 1.0, %v3749_v1  ;;  %v1412_v6 = vsel %vm1411_vm13, %v1405_v49, 0.0  ;;  %v4858_v22 = vsel %vm1411_vm13, %v1405_v49, %v4735_v45  ;;  %v3751_v62 = vpop.eup %3750 }
 0x2a0   :  { %1414 = vst [vmem:[#allocation11 + $0x8] sm:$0xff] %v1412_v6  ;;  %v1541_v51 = vpack.c.bf16 %v4858_v22, %v4858_v22  ;;  %v1515_v45 = vadd.f32 1.0, %v3751_v62  ;;  %v5719_v62 = vld [vmem:[#allocation33_spill] sm:$0xff] }
 0x2a1   :  { %3752 = vrcp.f32 %v1508_v58  ;;  %v5718_v58 = vld [vmem:[#allocation31_spill] sm:$0xff] }
 0x2a2   :  { %1575 = vmatmul.mubr.bf16.vlgmr.msra.gmra.mrb[32].mxu1 %v1541_v51  ;;  %3335 = vmatmul.mubr.bf16.vlgmr.msra.gmra.mrb[48].mxu0 %v1541_v51  ;;  %3754 = vrcp.f32 %v1515_v45 }
 0x2a3   :  { %1662 = vmatpush1.bf16.msra.mxu1 %v4337_v8  ;;  %3339 = vmatpush3.bf16.msra.mxu0 %v4437_v38  ;;  %v1499_v8 = vadd.f32 %v1498_v23, %v4748_v31  ;;  %v4953_v23 = vld [vmem:[#allocation8 + $0x78] ss:$12 sps:$4 sm:$0xff]  }
 0x2a4   :  { %1663 = vmatprep.subr.bf16.mxu1 %v4341_v10  ;;  %3340 = vmatprep.subr.bf16.mxu0 %v5687_v5  ;;  %5711 = vst [vmem:[#allocation23_spill] sm:$0xff] %v4953_v23 }
 0x2a5   :  { %1693 = vmatprep.mubr.bf16.mxu1 %v5688_v46  ;;  %3354 = vmatprep.mubr.msk.bf16.mxu0 %vm4148_vm4, %v5687_v5 }
 0x2a7   :  { %1664 = vmatpush1.bf16.msra.mxu1 %v4349_v12  ;;  %3341 = vmatpush3.bf16.msra.mxu0 %v4444_v40  ;;  %v5706_v12 = vld [vmem:[#allocation69_spill] sm:$0xff] }
 0x2a8   :  { %1665 = vmatprep.subr.bf16.mxu1 %v4353_v13  ;;  %3342 = vmatprep.subr.bf16.mxu0 %v5687_v5 }
 0x2ab   :  { %v3753_v10 = vpop.eup %3752  ;;  %1666 = vmatpush1.bf16.msra.mxu1 %v4361_v15  ;;  %3343 = vmatpush3.bf16.msra.mxu0 %v4453_v34  ;;  %v4928_v34 = vld [vmem:[#allocation8 + $0x38] ss:$12 sps:$4 sm:$0xff]  }
 0x2ac   :  { %v1518_v38 = vmul.f32 %v3753_v10, %v1499_v8  ;;  %1667 = vmatprep.subr.bf16.mxu1 %v4365_v16  ;;  %3344 = vmatprep.subr.bf16.mxu0 %v5687_v5  ;;  %v3755_v13 = vpop.eup %3754 }
 0x2ad   :  { %v1521_v15 = vsub.f32 1.0, %v3755_v13 }
 0x2ae   :  { %v1519_v40 = vadd.f32 %v1518_v38, %v5706_v12 }
 0x2af   :  { %1668 = vmatpush1.bf16.msra.mxu1 %v4379_v20  ;;  %3345 = vmatpush3.bf16.msra.mxu0 %v4459_v42  ;;  %v4933_v42 = vld [vmem:[#allocation8 + $0x48] ss:$12 sps:$4 sm:$0xff]  }
 0x2b0   :  { %3756 = vtanh.f32 %v1519_v40  ;;  %1669 = vmatprep.subr.bf16.mxu1 %v4384_v21  ;;  %3346 = vmatprep.subr.bf16.mxu0 %v5687_v5  ;;  %v1523_v21 = vmul.f32 %v3755_v13, %v4786_v2 }
 0x2b3   :  { %1670 = vmatpush1.bf16.msra.mxu1 %v4392_v24  ;;  %3347 = vmatpush3.bf16.msra.mxu0 %v4465_v37  ;;  %v4896_v24 = vpop.permute.xlu1 %1528  ;;  %v4936_v37 = vld [vmem:[#allocation8 + $0x50] ss:$12 sps:$4 sm:$0xff]  }
 0x2b4   :  { %1671 = vmatprep.subr.bf16.mxu1 %v4397_v25  ;;  %3348 = vmatprep.subr.bf16.mxu0 %v5687_v5  ;;  %5707 = vst [vmem:[#allocation24_spill] sm:$0xff] %v4896_v24  ;;  %vm1530_vm14 = vcmp.eq.s32.totalorder %v4896_v24, 1  ;;  %v5084_v24 = vld [vmem:[#allocation9 + $0xb0] ss:$12 sps:$4 sm:$0xff]  }
 0x2b7   :  { %1672 = vmatpush1.bf16.msra.mxu1 %v4405_v28  ;;  %3349 = vmatpush3.bf16.msra.mxu0 %v4471_v39  ;;  %v4939_v39 = vld [vmem:[#allocation8 + $0x64] ss:$12 sps:$4 sm:$0xff]   ;;  %v5078_v44 = vpop.permute.xlu1 %1766 }
 0x2b8   :  { %1673 = vmatprep.subr.bf16.mxu1 %v4410_v29  ;;  %3350 = vmatprep.subr.bf16.mxu0 %v5687_v5  ;;  %5725 = vst [vmem:[#allocation69_spill] sm:$0xff] %v5078_v44  ;;  %vm1768_vm0 = vcmp.eq.s32.totalorder %v5078_v44, 1 }
 0x2ba   :  { %v3757_v16 = vpop.eup %3756 }
 0x2bb   :  { %v1522_v20 = vmul.f32 %v3757_v16, %v1521_v15  ;;  %1674 = vmatpush1.bf16.msra.mxu1 %v4418_v32  ;;  %3351 = vmatpush3.bf16.msra.mxu0 %v4477_v41  ;;  %v4943_v41 = vld [vmem:[#allocation8 + $0x60] ss:$12 sps:$4 sm:$0xff]  }
 0x2bc   :  { %1675 = vmatprep.subr.bf16.mxu1 %v4422_v33  ;;  %3352 = vmatprep.subr.bf16.mxu0 %v5687_v5  ;;  %v4913_v33 = vld [vmem:[#allocation8 + $0x8] ss:$12 sps:$4 sm:$0xff]   ;;  %5708 = vst [vmem:[#allocation21_spill] sm:$0xff] %v4943_v41 }
 0x2bd   :  { %v1524_v25 = vadd.f32 %v1523_v21, %v1522_v20 }
 0x2bf   :  { %v1531_v28 = vsel %vm1530_vm14, %v1524_v25, 0.0  ;;  %v4904_v29 = vsel %vm1530_vm14, %v1524_v25, %v4786_v2  ;;  %1676 = vmatpush1.bf16.msra.mxu1 %v4429_v36  ;;  %3353 = vmatpush3.bf16.msra.mxu0 %v4483_v43  ;;  %v4922_v36 = vld [vmem:[#allocation8 + $0x20] ss:$12 sps:$4 sm:$0xff]   ;;  %v4946_v43 = vld [vmem:[#allocation8 + $0x68] ss:$12 sps:$4 sm:$0xff]  }
 0x2c0   :  { %1533 = vst [vmem:[#allocation12 + $0x30] sm:$0xff] %v1531_v28  ;;  %v1660_v32 = vpack.c.bf16 %v4904_v29, %v4904_v29  ;;  %1780 = vmatprep.subr.bf16.mxu1 %v4780_v60  ;;  %3358 = vmatprep.subr.bf16.mxu0 %v5687_v5  ;;  %5709 = vst [vmem:[#allocation22_spill] sm:$0xff] %v4946_v43  ;;  %v4949_v2 = vld [vmem:[#allocation8 + $0x7c] ss:$12 sps:$4 sm:$0xff]   ;;  %v5720_v28 = vld [vmem:[#allocation32_spill] sm:$0xff] }
 0x2c1   :  { %5710 = vst [vmem:[#allocation25_spill] sm:$0xff] %v4949_v2 }
 0x2c2   :  { %1694 = vmatmul.mubr.bf16.vlgmr.msra.gmra.mrb[36].mxu1 %v1660_v32  ;;  %3355 = vmatmul.mubr.bf16.vlgmr.msra.gmra.mrb[52].mxu0 %v1660_v32 }
 0x2c3   :  { %1781 = vmatpush1.bf16.msra.mxu1 %v4792_v26  ;;  %3359 = vmatpush3.bf16.msra.mxu0 %v4913_v33 }
 0x2c4   :  { %1782 = vmatprep.subr.bf16.mxu1 %v4796_v3  ;;  %3360 = vmatprep.subr.bf16.mxu0 %v5687_v5 }
 0x2c5   :  { %1812 = vmatprep.mubr.bf16.mxu1 %v5688_v46  ;;  %3374 = vmatprep.mubr.msk.bf16.mxu0 %vm4148_vm4, %v5687_v5 }
 0x2c7   :  { %1783 = vmatpush1.bf16.msra.mxu1 %v4803_v0  ;;  %3361 = vmatpush3.bf16.msra.mxu0 %v4922_v36 }
 0x2c8   :  { %1784 = vmatprep.subr.bf16.mxu1 %v4807_v53  ;;  %3362 = vmatprep.subr.bf16.mxu0 %v5687_v5 }
 0x2cb   :  { %1785 = vmatpush1.bf16.msra.mxu1 %v4811_v7  ;;  %3363 = vmatpush3.bf16.msra.mxu0 %v4928_v34 }
 0x2cc   :  { %1786 = vmatprep.subr.bf16.mxu1 %v4815_v47  ;;  %3364 = vmatprep.subr.bf16.mxu0 %v5687_v5 }
 0x2cf   :  { %1787 = vmatpush1.bf16.msra.mxu1 %v4933_v42  ;;  %3365 = vmatpush3.bf16.msra.mxu0 %v4936_v37 }
 0x2d0   :  { %1788 = vmatprep.subr.bf16.mxu1 %v4939_v39  ;;  %3366 = vmatprep.subr.bf16.mxu0 %v5687_v5 }
 0x2d3   :  { %1789 = vmatpush1.bf16.msra.mxu1 %v4943_v41  ;;  %3367 = vmatpush3.bf16.msra.mxu0 %v4946_v43 }
 0x2d4   :  { %1790 = vmatprep.subr.bf16.mxu1 %v4949_v2  ;;  %3368 = vmatprep.subr.bf16.mxu0 %v5687_v5 }
 0x2d7   :  { %1791 = vmatpush1.bf16.msra.mxu1 %v4953_v23  ;;  %3369 = vmatpush3.bf16.msra.mxu0 %v4956_v17 }
 0x2d8   :  { %1792 = vmatprep.subr.bf16.mxu1 %v4959_v61  ;;  %3370 = vmatprep.subr.bf16.mxu0 %v5687_v5 }
 0x2db   :  { %1793 = vmatpush1.bf16.msra.mxu1 %v4963_v30  ;;  %3371 = vmatpush3.bf16.msra.mxu0 %v5691_v52 }
 0x2dc   :  { %1794 = vmatprep.subr.bf16.mxu1 %v4967_v50  ;;  %3372 = vmatprep.subr.bf16.mxu0 %v5687_v5 }
 0x2df   :  { %1795 = vmatpush1.bf16.msra.mxu1 %v4971_v11  ;;  %3373 = vmatpush3.bf16.msra.mxu0 %v5694_v57 }
 0x2e0   :  { %1899 = vmatprep.subr.bf16.mxu1 %v4975_v14  ;;  %3378 = vmatprep.subr.bf16.mxu0 %v5687_v5 }
 0x375   :  { %v1576_v59 = vpop.f32.mrb[32].mxu1  ;;  %v1617_v52 = vpop.f32.mrb[48].mxu0 }
 0x376   :  { %v1577_v27 = vadd.f32 %v1576_v59, %v5696_v19  ;;  %v1578_v56 = vpop.f32.mrb[33].mxu1  ;;  %v3336_v9 = vpop.f32.mrb[49].mxu0  ;;  %v1618_v15 = vadd.f32 %v1617_v52, %v5700_v55 }
 0x377   :  { %v1579_v35 = vadd.f32 %v1578_v56, %v5697_v54  ;;  %v1580_v49 = vpop.f32.mrb[34].mxu1  ;;  %v1620_v1 = vpop.f32.mrb[50].mxu0 }
 0x378   :  { %v1623_v6 = vadd.f32 %v1577_v27, %v5718_v58  ;;  %v1581_v51 = vpop.f32.mrb[35].mxu1  ;;  %v3337_v57 = vpop.f32.mrb[51].mxu0  ;;  %v5721_v1 = vld [vmem:[#allocation46_spill] sm:$0xff] }
 0x379   :  { %v1630_v45 = vadd.f32 %v1579_v35, %v5719_v62  ;;  %v5722_v51 = vld [vmem:[#allocation66_spill] sm:$0xff] }
 0x37a   :  { %v3070_v8 = vmul.f32 -1.442695, %v1623_v6 }
 0x37b   :  { %v3071_v10 = vmul.f32 -1.442695, %v1630_v45 }
 0x37c   :  { %3758 = vpow2.f32 %v3070_v8 }
 0x37d   :  { %3760 = vpow2.f32 %v3071_v10 }
 0x386   :  { %v3759_v38 = vpop.eup %3758 }
 0x387   :  { %v1627_v12 = vadd.f32 1.0, %v3759_v38  ;;  %v3761_v40 = vpop.eup %3760 }
 0x388   :  { %v1634_v13 = vadd.f32 1.0, %v3761_v40 }
 0x389   :  { %3762 = vrcp.f32 %v1627_v12 }
 0x38a   :  { %3764 = vrcp.f32 %v1634_v13  ;;  %v4990_v13 = vpop.permute.xlu0 %1647 }
 0x38b   :  { %5723 = vst [vmem:[#allocation68_spill] sm:$0xff] %v4990_v13  ;;  %vm1649_vm15 = vcmp.eq.s32.totalorder %v4990_v13, 1 }
 0x393   :  { %v3763_v16 = vpop.eup %3762 }
 0x394   :  { %v1637_v20 = vmul.f32 %v3763_v16, %v1618_v15  ;;  %v3765_v45 = vpop.eup %3764 }
 0x395   :  { %v1695_v21 = vpop.f32.mrb[36].mxu1  ;;  %v1736_v25 = vpop.f32.mrb[52].mxu0  ;;  %v1640_v10 = vsub.f32 1.0, %v3765_v45  ;;  %v1642_v40 = vmul.f32 %v3765_v45, %v4858_v22  ;;  %v5724_v45 = vld [vmem:[#allocation67_spill] sm:$0xff] }
 0x396   :  { %v1638_v32 = vadd.f32 %v1637_v20, %v5720_v28  ;;  %v1696_v59 = vadd.f32 %v1695_v21, %v5702_v4  ;;  %v1697_v27 = vpop.f32.mrb[37].mxu1  ;;  %v3356_v56 = vpop.f32.mrb[53].mxu0 }
 0x397   :  { %v1698_v9 = vadd.f32 %v1697_v27, %v4718_v18  ;;  %v1699_v35 = vpop.f32.mrb[38].mxu1  ;;  %v1739_v49 = vpop.f32.mrb[54].mxu0  ;;  %v5005_v27 = vld [vmem:[#allocation9 + $0x8] ss:$12 sps:$4 sm:$0xff]  }
 0x398   :  { %3766 = vtanh.f32 %v1638_v32  ;;  %v1742_v58 = vadd.f32 %v1696_v59, %v5721_v1  ;;  %v1700_v6 = vpop.f32.mrb[39].mxu1  ;;  %v3357_v52 = vpop.f32.mrb[55].mxu0  ;;  %v5002_v59 = vld [vmem:[#allocation9] ss:$12 sps:$4 sm:$0xff]   ;;  %v5008_v56 = vld [vmem:[#allocation9 + $0x1c] ss:$12 sps:$4 sm:$0xff]  }
 0x399   :  { %v1749_v57 = vadd.f32 %v1698_v9, %v5722_v51  ;;  %v5015_v9 = vld [vmem:[#allocation9 + $0x18] ss:$12 sps:$4 sm:$0xff]   ;;  %v5018_v35 = vld [vmem:[#allocation9 + $0x20] ss:$12 sps:$4 sm:$0xff]   ;;  %v5026_v52 = vld [vmem:[#allocation9 + $0x30] ss:$12 sps:$4 sm:$0xff]  }
 0x39a   :  { %v3072_v62 = vmul.f32 -1.442695, %v1742_v58  ;;  %v5021_v1 = vld [vmem:[#allocation9 + $0x34] ss:$12 sps:$4 sm:$0xff]   ;;  %v1737_v58 = vadd.f32 %v1736_v25, %v4748_v31  ;;  %v5029_v51 = vld [vmem:[#allocation9 + $0x38] ss:$12 sps:$4 sm:$0xff]  }
 0x39b   :  { %v3073_v8 = vmul.f32 -1.442695, %v1749_v57  ;;  %v5037_v25 = vld [vmem:[#allocation9 + $0x48] ss:$12 sps:$4 sm:$0xff]  }
 0x39c   :  { %3768 = vpow2.f32 %v3072_v62  ;;  %v5032_v62 = vld [vmem:[#allocation9 + $0x4c] ss:$12 sps:$4 sm:$0xff]  }
 0x39d   :  { %3770 = vpow2.f32 %v3073_v8 }
 0x3a2   :  { %v3767_v38 = vpop.eup %3766 }
 0x3a3   :  { %v1641_v12 = vmul.f32 %v3767_v38, %v1640_v10  ;;  %v5040_v10 = vld [vmem:[#allocation9 + $0x50] ss:$12 sps:$4 sm:$0xff]  }
 0x3a4   :  { %v5043_v38 = vld [vmem:[#allocation9 + $0x64] ss:$12 sps:$4 sm:$0xff]  }
 0x3a5   :  { %v1643_v15 = vadd.f32 %v1642_v40, %v1641_v12  ;;  %v5047_v12 = vld [vmem:[#allocation9 + $0x60] ss:$12 sps:$4 sm:$0xff]   ;;  %v5050_v40 = vld [vmem:[#allocation9 + $0x68] ss:$12 sps:$4 sm:$0xff]  }
 0x3a6   :  { %v3769_v16 = vpop.eup %3768 }
 0x3a7   :  { %v1746_v20 = vadd.f32 1.0, %v3769_v16  ;;  %v1650_v21 = vsel %vm1649_vm15, %v1643_v15, 0.0  ;;  %v4998_v28 = vsel %vm1649_vm15, %v1643_v15, %v4858_v22  ;;  %v3771_v22 = vpop.eup %3770  ;;  %v5053_v15 = vld [vmem:[#allocation9 + $0x7c] ss:$12 sps:$4 sm:$0xff]  }
 0x3a8   :  { %1652 = vst [vmem:[#allocation11 + $0x10] sm:$0xff] %v1650_v21  ;;  %v1779_v32 = vpack.c.bf16 %v4998_v28, %v4998_v28  ;;  %v1753_v49 = vadd.f32 1.0, %v3771_v22  ;;  %v5060_v21 = vld [vmem:[#allocation9 + $0x80] ss:$12 sps:$4 sm:$0xff]  }
 0x3a9   :  { %3772 = vrcp.f32 %v1746_v20  ;;  %v5057_v20 = vld [vmem:[#allocation9 + $0x78] ss:$12 sps:$4 sm:$0xff]  }
 0x3aa   :  { %1813 = vmatmul.mubr.bf16.vlgmr.msra.gmra.mrb[40].mxu1 %v1779_v32  ;;  %3375 = vmatmul.mubr.bf16.vlgmr.msra.gmra.mrb[56].mxu0 %v1779_v32  ;;  %3774 = vrcp.f32 %v1753_v49  ;;  %v5063_v32 = vld [vmem:[#allocation9 + $0x94] ss:$12 sps:$4 sm:$0xff]  }
 0x3ab   :  { %1900 = vmatpush1.bf16.msra.mxu1 %v5002_v59  ;;  %3379 = vmatpush3.bf16.msra.mxu0 %v5005_v27 }
 0x3ac   :  { %1901 = vmatprep.subr.bf16.mxu1 %v5008_v56  ;;  %3380 = vmatprep.subr.bf16.mxu0 %v5687_v5 }
 0x3ad   :  { %1931 = vmatprep.mubr.bf16.mxu1 %v5688_v46  ;;  %3394 = vmatprep.mubr.msk.bf16.mxu0 %vm4148_vm4, %v5687_v5 }
 0x3af   :  { %1902 = vmatpush1.bf16.msra.mxu1 %v5015_v9  ;;  %3381 = vmatpush3.bf16.msra.mxu0 %v5018_v35 }
 0x3b0   :  { %1903 = vmatprep.subr.bf16.mxu1 %v5021_v1  ;;  %3382 = vmatprep.subr.bf16.mxu0 %v5687_v5 }
 0x3b3   :  { %v3773_v6 = vpop.eup %3772  ;;  %1904 = vmatpush1.bf16.msra.mxu1 %v5026_v52  ;;  %3383 = vmatpush3.bf16.msra.mxu0 %v5029_v51 }
 0x3b4   :  { %v1756_v57 = vmul.f32 %v3773_v6, %v1737_v58  ;;  %1905 = vmatprep.subr.bf16.mxu1 %v5032_v62  ;;  %3384 = vmatprep.subr.bf16.mxu0 %v5687_v5  ;;  %v3775_v16 = vpop.eup %3774  ;;  %v5067_v58 = vld [vmem:[#allocation9 + $0x90] ss:$12 sps:$4 sm:$0xff]   ;;  %v5070_v6 = vld [vmem:[#allocation9 + $0x98] ss:$12 sps:$4 sm:$0xff]  }
 0x3b5   :  { %v1759_v22 = vsub.f32 1.0, %v3775_v16 }
 0x3b6   :  { %v1757_v8 = vadd.f32 %v1756_v57, %v5724_v45  ;;  %v1761_v45 = vmul.f32 %v3775_v16, %v4904_v29 }
 0x3b7   :  { %1906 = vmatpush1.bf16.msra.mxu1 %v5037_v25  ;;  %3385 = vmatpush3.bf16.msra.mxu0 %v5040_v10 }
 0x3b8   :  { %3776 = vtanh.f32 %v1757_v8  ;;  %1907 = vmatprep.subr.bf16.mxu1 %v5043_v38  ;;  %3386 = vmatprep.subr.bf16.mxu0 %v5687_v5  ;;  %v5074_v8 = vld [vmem:[#allocation9 + $0xac] ss:$12 sps:$4 sm:$0xff]  }
 0x3bb   :  { %1908 = vmatpush1.bf16.msra.mxu1 %v5047_v12  ;;  %3387 = vmatpush3.bf16.msra.mxu0 %v5050_v40 }
 0x3bc   :  { %1909 = vmatprep.subr.bf16.mxu1 %v5053_v15  ;;  %3388 = vmatprep.subr.bf16.mxu0 %v5687_v5 }
 0x3bf   :  { %1910 = vmatpush1.bf16.msra.mxu1 %v5057_v20  ;;  %3389 = vmatpush3.bf16.msra.mxu0 %v5060_v21 }
 0x3c0   :  { %1911 = vmatprep.subr.bf16.mxu1 %v5063_v32  ;;  %3390 = vmatprep.subr.bf16.mxu0 %v5687_v5 }
 0x3c2   :  { %v3777_v49 = vpop.eup %3776 }
 0x3c3   :  { %1912 = vmatpush1.bf16.msra.mxu1 %v5067_v58  ;;  %3391 = vmatpush3.bf16.msra.mxu0 %v5070_v6  ;;  %v1760_v57 = vmul.f32 %v3777_v49, %v1759_v22 }
 0x3c4   :  { %1913 = vmatprep.subr.bf16.mxu1 %v5074_v8  ;;  %3392 = vmatprep.subr.bf16.mxu0 %v5687_v5 }
 0x3c5   :  { %v1762_v63 = vadd.f32 %v1761_v45, %v1760_v57 }
 0x3c7   :  { %1914 = vmatpush1.bf16.msra.mxu1 %v5081_v48  ;;  %3393 = vmatpush3.bf16.msra.mxu0 %v5084_v24  ;;  %v1769_v16 = vsel %vm1768_vm0, %v1762_v63, 0.0  ;;  %v5092_v22 = vsel %vm1768_vm0, %v1762_v63, %v4904_v29  ;;  %v5126_v63 = vld [vmem:[#allocation8 + $0x98] ss:$12 sps:$4 sm:$0xff]   ;;  %v5132_v29 = vld [vmem:[#allocation8 + $0xb0] ss:$12 sps:$4 sm:$0xff]  }
 0x3c8   :  { %1771 = vst [vmem:[#allocation12 + $0x28] sm:$0xff] %v1769_v16  ;;  %v1898_v49 = vpack.c.bf16 %v5092_v22, %v5092_v22  ;;  %2015 = vmatprep.subr.bf16.mxu1 %v4780_v60  ;;  %3398 = vmatprep.subr.bf16.mxu0 %v5687_v5  ;;  %5726 = vst [vmem:[#allocation31_spill] sm:$0xff] %v5126_v63 }
 0x3c9   :  { %5727 = vst [vmem:[#allocation33_spill] sm:$0xff] %v5132_v29 }
 0x3ca   :  { %1932 = vmatmul.mubr.bf16.vlgmr.msra.gmra.mrb[44].mxu1 %v1898_v49  ;;  %3395 = vmatmul.mubr.bf16.vlgmr.msra.gmra.mrb[60].mxu0 %v1898_v49 }
 0x3cb   :  { %2016 = vmatpush1.bf16.msra.mxu1 %v4792_v26  ;;  %3399 = vmatpush3.bf16.msra.mxu0 %v4913_v33 }
 0x3cc   :  { %2017 = vmatprep.subr.bf16.mxu1 %v4796_v3  ;;  %3400 = vmatprep.subr.bf16.mxu0 %v5687_v5 }
 0x3cd   :  { %2047 = vmatprep.mubr.bf16.mxu1 %v5688_v46  ;;  %3414 = vmatprep.mubr.msk.bf16.mxu0 %vm4148_vm4, %v5687_v5 }
 0x3cf   :  { %2018 = vmatpush1.bf16.msra.mxu1 %v4803_v0  ;;  %3401 = vmatpush3.bf16.msra.mxu0 %v4922_v36 }
 0x3d0   :  { %2019 = vmatprep.subr.bf16.mxu1 %v4807_v53  ;;  %3402 = vmatprep.subr.bf16.mxu0 %v5687_v5 }
 0x3d3   :  { %2020 = vmatpush1.bf16.msra.mxu1 %v4811_v7  ;;  %3403 = vmatpush3.bf16.msra.mxu0 %v4928_v34 }
 0x3d4   :  { %2021 = vmatprep.subr.bf16.mxu1 %v4815_v47  ;;  %3404 = vmatprep.subr.bf16.mxu0 %v5687_v5 }
 0x3d7   :  { %2022 = vmatpush1.bf16.msra.mxu1 %v4933_v42  ;;  %3405 = vmatpush3.bf16.msra.mxu0 %v4936_v37 }
 0x3d8   :  { %2023 = vmatprep.subr.bf16.mxu1 %v4939_v39  ;;  %3406 = vmatprep.subr.bf16.mxu0 %v5687_v5 }
 0x3db   :  { %2024 = vmatpush1.bf16.msra.mxu1 %v4943_v41  ;;  %3407 = vmatpush3.bf16.msra.mxu0 %v4946_v43 }
 0x3dc   :  { %2025 = vmatprep.subr.bf16.mxu1 %v4949_v2  ;;  %3408 = vmatprep.subr.bf16.mxu0 %v5687_v5 }
 0x3df   :  { %2026 = vmatpush1.bf16.msra.mxu1 %v4953_v23  ;;  %3409 = vmatpush3.bf16.msra.mxu0 %v4956_v17  ;;  %v5729_v23 = vld [vmem:[#allocation37_spill] sm:$0xff] }
 0x3e0   :  { %2027 = vmatprep.subr.bf16.mxu1 %v4959_v61  ;;  %3410 = vmatprep.subr.bf16.mxu0 %v5687_v5 }
 0x3e3   :  { %2028 = vmatpush1.bf16.msra.mxu1 %v4963_v30  ;;  %3411 = vmatpush3.bf16.msra.mxu0 %v5126_v63  ;;  %v5728_v30 = vld [vmem:[#allocation35_spill] sm:$0xff] }
 0x3e4   :  { %2029 = vmatprep.subr.bf16.mxu1 %v4967_v50  ;;  %3412 = vmatprep.subr.bf16.mxu0 %v5687_v5 }
 0x3e7   :  { %2030 = vmatpush1.bf16.msra.mxu1 %v4971_v11  ;;  %3413 = vmatpush3.bf16.msra.mxu0 %v5132_v29 }
 0x3e8   :  { %2125 = vmatprep.subr.bf16.mxu1 %v4975_v14  ;;  %3418 = vmatprep.subr.bf16.mxu0 %v5687_v5 }
 0x47d   :  { %v1814_v57 = vpop.f32.mrb[40].mxu1  ;;  %v1855_v45 = vpop.f32.mrb[56].mxu0 }
 0x47e   :  { %v1815_v16 = vadd.f32 %v1814_v57, %v5696_v19  ;;  %v1816_v49 = vpop.f32.mrb[41].mxu1  ;;  %v3376_v13 = vpop.f32.mrb[57].mxu0 }
 0x47f   :  { %v1817_v44 = vadd.f32 %v1816_v49, %v5697_v54  ;;  %v1818_v50 = vpop.f32.mrb[42].mxu1  ;;  %v1858_v63 = vpop.f32.mrb[58].mxu0  ;;  %v1856_v13 = vadd.f32 %v1855_v45, %v5700_v55 }
 0x480   :  { %v1861_v11 = vadd.f32 %v1815_v16, %v5728_v30  ;;  %v1819_v61 = vpop.f32.mrb[43].mxu1  ;;  %v3377_v17 = vpop.f32.mrb[59].mxu0 }
 0x481   :  { %v1868_v29 = vadd.f32 %v1817_v44, %v5729_v23  ;;  %v5730_v61 = vld [vmem:[#allocation36_spill] sm:$0xff] }
 0x482   :  { %v3074_v2 = vmul.f32 -1.442695, %v1861_v11 }
 0x483   :  { %v3075_v14 = vmul.f32 -1.442695, %v1868_v29 }
 0x484   :  { %3778 = vpow2.f32 %v3074_v2 }
 0x485   :  { %3780 = vpow2.f32 %v3075_v14 }
 0x48e   :  { %v3779_v43 = vpop.eup %3778 }
 0x48f   :  { %v1865_v41 = vadd.f32 1.0, %v3779_v43  ;;  %v3781_v57 = vpop.eup %3780 }
 0x490   :  { %v1872_v19 = vadd.f32 1.0, %v3781_v57  ;;  %v5732_v57 = vld [vmem:[#allocation64_spill] sm:$0xff] }
 0x491   :  { %3782 = vrcp.f32 %v1865_v41  ;;  %v5731_v41 = vld [vmem:[#allocation42_spill] sm:$0xff] }
 0x492   :  { %3784 = vrcp.f32 %v1872_v19 }
 0x49b   :  { %v3783_v49 = vpop.eup %3782 }
 0x49c   :  { %v1875_v50 = vmul.f32 %v3783_v49, %v1856_v13  ;;  %v3785_v49 = vpop.eup %3784 }
 0x49d   :  { %v1933_v63 = vpop.f32.mrb[44].mxu1  ;;  %v1974_v30 = vpop.f32.mrb[60].mxu0 }
 0x49e   :  { %v1876_v17 = vadd.f32 %v1875_v50, %v5730_v61  ;;  %v1934_v44 = vadd.f32 %v1933_v63, %v5702_v4  ;;  %v1935_v23 = vpop.f32.mrb[45].mxu1  ;;  %v3396_v2 = vpop.f32.mrb[61].mxu0  ;;  %v1878_v50 = vsub.f32 1.0, %v3785_v49 }
 0x49f   :  { %v1936_v11 = vadd.f32 %v1935_v23, %v4718_v18  ;;  %v1937_v14 = vpop.f32.mrb[46].mxu1  ;;  %v1977_v43 = vpop.f32.mrb[62].mxu0  ;;  %v1880_v23 = vmul.f32 %v3785_v49, %v4998_v28 }
 0x4a0   :  { %3786 = vtanh.f32 %v1876_v17  ;;  %v1980_v29 = vadd.f32 %v1934_v44, %v5731_v41  ;;  %v1938_v16 = vpop.f32.mrb[47].mxu1  ;;  %v3397_v45 = vpop.f32.mrb[63].mxu0 }
 0x4a1   :  { %v1987_v13 = vadd.f32 %v1936_v11, %v5732_v57  ;;  %v5147_v63 = vpop.permute.xlu0 %1885  ;;  %v5733_v57 = vld [vmem:[#allocation65_spill] sm:$0xff] }
 0x4a2   :  { %v3076_v19 = vmul.f32 -1.442695, %v1980_v29  ;;  %vm1887_vm1 = vcmp.eq.s32.totalorder %v5147_v63, 1  ;;  %v1975_v29 = vadd.f32 %v1974_v30, %v4748_v31  ;;  %v5318_v63 = vld [vmem:[#allocation8 + $0x1c] ss:$12 sps:$4 sm:$0xff]  }
 0x4a3   :  { %v3077_v55 = vmul.f32 -1.442695, %v1987_v13 }
 0x4a4   :  { %3788 = vpow2.f32 %v3076_v19 }
 0x4a5   :  { %3790 = vpow2.f32 %v3077_v55 }
 0x4aa   :  { %v3787_v61 = vpop.eup %3786 }
 0x4ab   :  { %v1879_v2 = vmul.f32 %v3787_v61, %v1878_v50  ;;  %v5189_v50 = vpop.permute.xlu1 %2004 }
 0x4ac   :  { %vm2006_vm2 = vcmp.eq.s32.totalorder %v5189_v50, 1 }
 0x4ad   :  { %v1881_v14 = vadd.f32 %v1880_v23, %v1879_v2 }
 0x4ae   :  { %v3789_v17 = vpop.eup %3788 }
 0x4af   :  { %v1984_v44 = vadd.f32 1.0, %v3789_v17  ;;  %v1888_v11 = vsel %vm1887_vm1, %v1881_v14, 0.0  ;;  %v5156_v43 = vsel %vm1887_vm1, %v1881_v14, %v4998_v28  ;;  %v3791_v41 = vpop.eup %3790 }
 0x4b0   :  { %1890 = vst [vmem:[#allocation11 + $0x18] sm:$0xff] %v1888_v11  ;;  %v2014_v55 = vpack.c.bf16 %v5156_v43, %v5156_v43  ;;  %v1991_v28 = vadd.f32 1.0, %v3791_v41  ;;  %v5742_v11 = vld [vmem:[#allocation28_spill] sm:$0xff]  ;;  %v5744_v41 = vld [vmem:[#allocation33_spill] sm:$0xff] }
 0x4b1   :  { %3792 = vrcp.f32 %v1984_v44 }
 0x4b2   :  { %2048 = vmatmul.mubr.bf16.vlgmr.msra.gmra.mrb[48].mxu1 %v2014_v55  ;;  %3415 = vmatmul.mubr.bf16.vlgmr.msra.gmra.mrb[64].mxu0 %v2014_v55  ;;  %3794 = vrcp.f32 %v1991_v28  ;;  %v5743_v55 = vld [vmem:[#allocation71_spill] sm:$0xff]  ;;  %v5745_v28 = vld [vmem:[#allocation50_spill] sm:$0xff] }
 0x4b3   :  { %2126 = vmatpush1.bf16.msra.mxu1 %v5002_v59  ;;  %3419 = vmatpush3.bf16.msra.mxu0 %v5005_v27 }
 0x4b4   :  { %2127 = vmatprep.subr.bf16.mxu1 %v5008_v56  ;;  %3420 = vmatprep.subr.bf16.mxu0 %v5687_v5 }
 0x4b5   :  { %2157 = vmatprep.mubr.bf16.mxu1 %v5688_v46  ;;  %3434 = vmatprep.mubr.msk.bf16.mxu0 %vm4148_vm4, %v5687_v5 }
 0x4b7   :  { %2128 = vmatpush1.bf16.msra.mxu1 %v5015_v9  ;;  %3421 = vmatpush3.bf16.msra.mxu0 %v5018_v35 }
 0x4b8   :  { %2129 = vmatprep.subr.bf16.mxu1 %v5021_v1  ;;  %3422 = vmatprep.subr.bf16.mxu0 %v5687_v5 }
 0x4bb   :  { %v3793_v16 = vpop.eup %3792  ;;  %2130 = vmatpush1.bf16.msra.mxu1 %v5026_v52  ;;  %3423 = vmatpush3.bf16.msra.mxu0 %v5029_v51 }
 0x4bc   :  { %v1994_v45 = vmul.f32 %v3793_v16, %v1975_v29  ;;  %2131 = vmatprep.subr.bf16.mxu1 %v5032_v62  ;;  %3424 = vmatprep.subr.bf16.mxu0 %v5687_v5  ;;  %v3795_v30 = vpop.eup %3794 }
 0x4bd   :  { %v1997_v19 = vsub.f32 1.0, %v3795_v30  ;;  %v1999_v2 = vmul.f32 %v3795_v30, %v5092_v22 }
 0x4be   :  { %v1995_v13 = vadd.f32 %v1994_v45, %v5733_v57  ;;  %v5746_v45 = vld [vmem:[#allocation54_spill] sm:$0xff] }
 0x4bf   :  { %2132 = vmatpush1.bf16.msra.mxu1 %v5037_v25  ;;  %3425 = vmatpush3.bf16.msra.mxu0 %v5040_v10 }
 0x4c0   :  { %3796 = vtanh.f32 %v1995_v13  ;;  %2133 = vmatprep.subr.bf16.mxu1 %v5043_v38  ;;  %3426 = vmatprep.subr.bf16.mxu0 %v5687_v5 }
 0x4c3   :  { %2134 = vmatpush1.bf16.msra.mxu1 %v5047_v12  ;;  %3427 = vmatpush3.bf16.msra.mxu0 %v5050_v40 }
 0x4c4   :  { %2135 = vmatprep.subr.bf16.mxu1 %v5053_v15  ;;  %3428 = vmatprep.subr.bf16.mxu0 %v5687_v5 }
 0x4c7   :  { %2136 = vmatpush1.bf16.msra.mxu1 %v5057_v20  ;;  %3429 = vmatpush3.bf16.msra.mxu0 %v5060_v21 }
 0x4c8   :  { %2137 = vmatprep.subr.bf16.mxu1 %v5063_v32  ;;  %3430 = vmatprep.subr.bf16.mxu0 %v5687_v5 }
 0x4ca   :  { %v3797_v49 = vpop.eup %3796 }
 0x4cb   :  { %2138 = vmatpush1.bf16.msra.mxu1 %v5067_v58  ;;  %3431 = vmatpush3.bf16.msra.mxu0 %v5070_v6  ;;  %v1998_v61 = vmul.f32 %v3797_v49, %v1997_v19 }
 0x4cc   :  { %2139 = vmatprep.subr.bf16.mxu1 %v5074_v8  ;;  %3432 = vmatprep.subr.bf16.mxu0 %v5687_v5 }
 0x4cd   :  { %v2000_v23 = vadd.f32 %v1999_v2, %v1998_v61  ;;  %v5747_v2 = vld [vmem:[#allocation39_spill] sm:$0xff] }
 0x4cf   :  { %2140 = vmatpush1.bf16.msra.mxu1 %v5081_v48  ;;  %3433 = vmatpush3.bf16.msra.mxu0 %v5084_v24  ;;  %v2007_v14 = vsel %vm2006_vm2, %v2000_v23, 0.0  ;;  %v5204_v17 = vsel %vm2006_vm2, %v2000_v23, %v5092_v22  ;;  %v5741_v22 = vld [vmem:[#allocation31_spill] sm:$0xff] }
 0x4d0   :  { %2009 = vst [vmem:[#allocation12 + $0x20] sm:$0xff] %v2007_v14  ;;  %v2124_v44 = vpack.c.bf16 %v5204_v17, %v5204_v17  ;;  %2235 = vmatprep.subr.bf16.mxu1 %v4780_v60  ;;  %3438 = vmatprep.subr.bf16.mxu0 %v5687_v5  ;;  %v5734_v60 = vld [vmem:[#allocation21_spill] sm:$0xff] }
 0x4d2   :  { %2158 = vmatmul.mubr.bf16.vlgmr.msra.gmra.mrb[52].mxu1 %v2124_v44  ;;  %3435 = vmatmul.mubr.bf16.vlgmr.msra.gmra.mrb[68].mxu0 %v2124_v44 }
 0x4d3   :  { %2236 = vmatpush1.bf16.msra.mxu1 %v4792_v26  ;;  %3439 = vmatpush3.bf16.msra.mxu0 %v4913_v33  ;;  %v5735_v26 = vld [vmem:[#allocation22_spill] sm:$0xff] }
 0x4d4   :  { %2237 = vmatprep.subr.bf16.mxu1 %v4796_v3  ;;  %3440 = vmatprep.subr.bf16.mxu0 %v5687_v5  ;;  %v5736_v3 = vld [vmem:[#allocation25_spill] sm:$0xff] }
 0x4d5   :  { %2267 = vmatprep.mubr.bf16.mxu1 %v5688_v46  ;;  %3454 = vmatprep.mubr.msk.bf16.mxu0 %vm4148_vm4, %v5687_v5 }
 0x4d7   :  { %2238 = vmatpush1.bf16.msra.mxu1 %v4803_v0  ;;  %3441 = vmatpush3.bf16.msra.mxu0 %v4922_v36  ;;  %v5737_v0 = vld [vmem:[#allocation23_spill] sm:$0xff] }
 0x4d8   :  { %2239 = vmatprep.subr.bf16.mxu1 %v4807_v53  ;;  %3442 = vmatprep.subr.bf16.mxu0 %v5687_v5  ;;  %v5738_v53 = vld [vmem:[#allocation55_spill] sm:$0xff] }
 0x4db   :  { %2240 = vmatpush1.bf16.msra.mxu1 %v4811_v7  ;;  %3443 = vmatpush3.bf16.msra.mxu0 %v4928_v34  ;;  %v5739_v7 = vld [vmem:[#allocation27_spill] sm:$0xff] }
 0x4dc   :  { %2241 = vmatprep.subr.bf16.mxu1 %v4815_v47  ;;  %3444 = vmatprep.subr.bf16.mxu0 %v5687_v5  ;;  %v5740_v47 = vld [vmem:[#allocation29_spill] sm:$0xff] }
 0x4df   :  { %2242 = vmatpush1.bf16.msra.mxu1 %v4933_v42  ;;  %3445 = vmatpush3.bf16.msra.mxu0 %v4936_v37 }
 0x4e0   :  { %2243 = vmatprep.subr.bf16.mxu1 %v4939_v39  ;;  %3446 = vmatprep.subr.bf16.mxu0 %v5687_v5 }
 0x4e3   :  { %2244 = vmatpush1.bf16.msra.mxu1 %v5734_v60  ;;  %3447 = vmatpush3.bf16.msra.mxu0 %v5735_v26 }
 0x4e4   :  { %2245 = vmatprep.subr.bf16.mxu1 %v5736_v3  ;;  %3448 = vmatprep.subr.bf16.mxu0 %v5687_v5 }
 0x4e7   :  { %2246 = vmatpush1.bf16.msra.mxu1 %v5737_v0  ;;  %3449 = vmatpush3.bf16.msra.mxu0 %v5738_v53 }
 0x4e8   :  { %2247 = vmatprep.subr.bf16.mxu1 %v5739_v7  ;;  %3450 = vmatprep.subr.bf16.mxu0 %v5687_v5 }
 0x4eb   :  { %2248 = vmatpush1.bf16.msra.mxu1 %v5740_v47  ;;  %3451 = vmatpush3.bf16.msra.mxu0 %v5741_v22 }
 0x4ec   :  { %2249 = vmatprep.subr.bf16.mxu1 %v5742_v11  ;;  %3452 = vmatprep.subr.bf16.mxu0 %v5687_v5 }
 0x4ef   :  { %2250 = vmatpush1.bf16.msra.mxu1 %v5743_v55  ;;  %3453 = vmatpush3.bf16.msra.mxu0 %v5744_v41  ;;  %v5748_v55 = vld [vmem:[#allocation41_spill] sm:$0xff] }
 0x4f0   :  { %2345 = vmatprep.subr.bf16.mxu1 %v5745_v28  ;;  %3458 = vmatprep.subr.bf16.mxu0 %v5687_v5 }
 0x585   :  { %v2049_v29 = vpop.f32.mrb[48].mxu1  ;;  %v2090_v16 = vpop.f32.mrb[64].mxu0 }
 0x586   :  { %v2050_v57 = vadd.f32 %v2049_v29, %v5746_v45  ;;  %v2051_v13 = vpop.f32.mrb[49].mxu1  ;;  %v3416_v30 = vpop.f32.mrb[65].mxu0 }
 0x587   :  { %v2052_v19 = vadd.f32 %v2051_v13, %v5697_v54  ;;  %v2053_v49 = vpop.f32.mrb[50].mxu1  ;;  %v2093_v61 = vpop.f32.mrb[66].mxu0  ;;  %v5749_v30 = vld [vmem:[#allocation70_spill] sm:$0xff] }
 0x588   :  { %v2096_v23 = vadd.f32 %v2050_v57, %v5747_v2  ;;  %v2054_v14 = vpop.f32.mrb[51].mxu1  ;;  %v3417_v44 = vpop.f32.mrb[67].mxu0  ;;  %v2091_v7 = vadd.f32 %v2090_v16, %v5749_v30  ;;  %v5750_v2 = vld [vmem:[#allocation40_spill] sm:$0xff] }
 0x589   :  { %v2103_v41 = vadd.f32 %v2052_v19, %v5748_v55 }
 0x58a   :  { %v3078_v11 = vmul.f32 -1.442695, %v2096_v23 }
 0x58b   :  { %v3079_v28 = vmul.f32 -1.442695, %v2103_v41 }
 0x58c   :  { %3798 = vpow2.f32 %v3078_v11 }
 0x58d   :  { %3800 = vpow2.f32 %v3079_v28 }
 0x596   :  { %v3799_v22 = vpop.eup %3798 }
 0x597   :  { %v2100_v47 = vadd.f32 1.0, %v3799_v22  ;;  %v3801_v29 = vpop.eup %3800 }
 0x598   :  { %v2107_v45 = vadd.f32 1.0, %v3801_v29  ;;  %v5752_v29 = vld [vmem:[#allocation62_spill] sm:$0xff] }
 0x599   :  { %3802 = vrcp.f32 %v2100_v47  ;;  %v5751_v47 = vld [vmem:[#allocation38_spill] sm:$0xff] }
 0x59a   :  { %3804 = vrcp.f32 %v2107_v45 }
 0x5a3   :  { %v3803_v13 = vpop.eup %3802 }
 0x5a4   :  { %v2110_v49 = vmul.f32 %v3803_v13, %v2091_v7  ;;  %v3805_v13 = vpop.eup %3804 }
 0x5a5   :  { %v2159_v61 = vpop.f32.mrb[52].mxu1  ;;  %v2200_v57 = vpop.f32.mrb[68].mxu0 }
 0x5a6   :  { %v2111_v14 = vadd.f32 %v2110_v49, %v5750_v2  ;;  %v2160_v55 = vadd.f32 %v2159_v61, %v5702_v4  ;;  %v2161_v19 = vpop.f32.mrb[53].mxu1  ;;  %v3436_v11 = vpop.f32.mrb[69].mxu0  ;;  %v2113_v49 = vsub.f32 1.0, %v3805_v13  ;;  %v2201_v50 = vadd.f32 %v2200_v57, %v4748_v31 }
 0x5a7   :  { %v2162_v41 = vadd.f32 %v2161_v19, %v4718_v18  ;;  %v2163_v28 = vpop.f32.mrb[54].mxu1  ;;  %v2203_v22 = vpop.f32.mrb[70].mxu0  ;;  %v2115_v11 = vmul.f32 %v3805_v13, %v5156_v43 }
 0x5a8   :  { %3806 = vtanh.f32 %v2111_v14  ;;  %v2206_v23 = vadd.f32 %v2160_v55, %v5751_v47  ;;  %v2164_v44 = vpop.f32.mrb[55].mxu1  ;;  %v3437_v16 = vpop.f32.mrb[71].mxu0 }
 0x5a9   :  { %v2213_v7 = vadd.f32 %v2162_v41, %v5752_v29  ;;  %v5753_v44 = vld [vmem:[#allocation63_spill] sm:$0xff] }
 0x5aa   :  { %v3080_v45 = vmul.f32 -1.442695, %v2206_v23 }
 0x5ab   :  { %v3081_v30 = vmul.f32 -1.442695, %v2213_v7 }
 0x5ac   :  { %3808 = vpow2.f32 %v3080_v45 }
 0x5ad   :  { %3810 = vpow2.f32 %v3081_v30 }
 0x5b2   :  { %v3807_v2 = vpop.eup %3806 }
 0x5b3   :  { %v2114_v61 = vmul.f32 %v3807_v2, %v2113_v49 }
 0x5b5   :  { %v2116_v19 = vadd.f32 %v2115_v11, %v2114_v61 }
 0x5b6   :  { %v3809_v28 = vpop.eup %3808 }
 0x5b7   :  { %v2210_v22 = vadd.f32 1.0, %v3809_v28  ;;  %v2117_v14 = vsel %vm2006_vm2, %v2116_v19, 0.0  ;;  %v5261_v55 = vsel %vm2006_vm2, %v2116_v19, %v5156_v43  ;;  %v3811_v30 = vpop.eup %3810  ;;  %v5310_v19 = vld [vmem:[#allocation8 + $0x4] ss:$12 sps:$4 sm:$0xff]   ;;  %v5314_v28 = vld [vmem:[#allocation8] ss:$12 sps:$4 sm:$0xff]  }
 0x5b8   :  { %2119 = vst [vmem:[#allocation11 + $0x20] sm:$0xff] %v2117_v14  ;;  %v2234_v41 = vpack.c.bf16 %v5261_v55, %v5261_v55  ;;  %v2217_v43 = vadd.f32 1.0, %v3811_v30  ;;  %v5337_v14 = vld [vmem:[#allocation8 + $0x4c] ss:$12 sps:$4 sm:$0xff]  }
 0x5b9   :  { %3812 = vrcp.f32 %v2210_v22  ;;  %v5329_v22 = vld [vmem:[#allocation8 + $0x34] ss:$12 sps:$4 sm:$0xff]  }
 0x5ba   :  { %2268 = vmatmul.mubr.bf16.vlgmr.msra.gmra.mrb[56].mxu1 %v2234_v41  ;;  %3455 = vmatmul.mubr.bf16.vlgmr.msra.gmra.mrb[72].mxu0 %v2234_v41  ;;  %3814 = vrcp.f32 %v2217_v43 }
 0x5bb   :  { %2346 = vmatpush1.bf16.msra.mxu1 %v5002_v59  ;;  %3459 = vmatpush3.bf16.msra.mxu0 %v5005_v27 }
 0x5bc   :  { %2347 = vmatprep.subr.bf16.mxu1 %v5008_v56  ;;  %3460 = vmatprep.subr.bf16.mxu0 %v5687_v5 }
 0x5bd   :  { %2377 = vmatprep.mubr.bf16.mxu1 %v5688_v46  ;;  %3474 = vmatprep.mubr.msk.bf16.mxu0 %vm4148_vm4, %v5687_v5 }
 0x5bf   :  { %2348 = vmatpush1.bf16.msra.mxu1 %v5015_v9  ;;  %3461 = vmatpush3.bf16.msra.mxu0 %v5018_v35 }
 0x5c0   :  { %2349 = vmatprep.subr.bf16.mxu1 %v5021_v1  ;;  %3462 = vmatprep.subr.bf16.mxu0 %v5687_v5 }
 0x5c3   :  { %v3813_v47 = vpop.eup %3812  ;;  %2350 = vmatpush1.bf16.msra.mxu1 %v5026_v52  ;;  %3463 = vmatpush3.bf16.msra.mxu0 %v5029_v51 }
 0x5c4   :  { %v2220_v23 = vmul.f32 %v3813_v47, %v2201_v50  ;;  %2351 = vmatprep.subr.bf16.mxu1 %v5032_v62  ;;  %3464 = vmatprep.subr.bf16.mxu0 %v5687_v5  ;;  %v3815_v57 = vpop.eup %3814 }
 0x5c5   :  { %v2223_v29 = vsub.f32 1.0, %v3815_v57  ;;  %v2225_v13 = vmul.f32 %v3815_v57, %v5204_v17 }
 0x5c6   :  { %v2221_v16 = vadd.f32 %v2220_v23, %v5753_v44  ;;  %v5762_v44 = vld [vmem:[#allocation43_spill] sm:$0xff] }
 0x5c7   :  { %2352 = vmatpush1.bf16.msra.mxu1 %v5037_v25  ;;  %3465 = vmatpush3.bf16.msra.mxu0 %v5040_v10 }
 0x5c8   :  { %3816 = vtanh.f32 %v2221_v16  ;;  %2353 = vmatprep.subr.bf16.mxu1 %v5043_v38  ;;  %3466 = vmatprep.subr.bf16.mxu0 %v5687_v5 }
 0x5cb   :  { %2354 = vmatpush1.bf16.msra.mxu1 %v5047_v12  ;;  %3467 = vmatpush3.bf16.msra.mxu0 %v5050_v40 }
 0x5cc   :  { %2355 = vmatprep.subr.bf16.mxu1 %v5053_v15  ;;  %3468 = vmatprep.subr.bf16.mxu0 %v5687_v5 }
 0x5cf   :  { %2356 = vmatpush1.bf16.msra.mxu1 %v5057_v20  ;;  %3469 = vmatpush3.bf16.msra.mxu0 %v5060_v21 }
 0x5d0   :  { %2357 = vmatprep.subr.bf16.mxu1 %v5063_v32  ;;  %3470 = vmatprep.subr.bf16.mxu0 %v5687_v5 }
 0x5d2   :  { %v3817_v7 = vpop.eup %3816 }
 0x5d3   :  { %2358 = vmatpush1.bf16.msra.mxu1 %v5067_v58  ;;  %3471 = vmatpush3.bf16.msra.mxu0 %v5070_v6  ;;  %v2224_v45 = vmul.f32 %v3817_v7, %v2223_v29  ;;  %v5763_v7 = vld [vmem:[#allocation45_spill] sm:$0xff] }
 0x5d4   :  { %2359 = vmatprep.subr.bf16.mxu1 %v5074_v8  ;;  %3472 = vmatprep.subr.bf16.mxu0 %v5687_v5 }
 0x5d5   :  { %v2226_v49 = vadd.f32 %v2225_v13, %v2224_v45 }
 0x5d7   :  { %2360 = vmatpush1.bf16.msra.mxu1 %v5081_v48  ;;  %3473 = vmatpush3.bf16.msra.mxu0 %v5084_v24  ;;  %v2227_v2 = vsel %vm1887_vm1, %v2226_v49, 0.0  ;;  %v5306_v61 = vsel %vm1887_vm1, %v2226_v49, %v5204_v17  ;;  %v5325_v17 = vld [vmem:[#allocation8 + $0x18] ss:$12 sps:$4 sm:$0xff]  }
 0x5d8   :  { %2229 = vst [vmem:[#allocation12 + $0x18] sm:$0xff] %v2227_v2  ;;  %v2344_v11 = vpack.c.bf16 %v5306_v61, %v5306_v61  ;;  %2455 = vmatprep.subr.bf16.mxu1 %v5310_v19  ;;  %3478 = vmatprep.subr.bf16.mxu0 %v5687_v5 }
 0x5da   :  { %2378 = vmatmul.mubr.bf16.vlgmr.msra.gmra.mrb[60].mxu1 %v2344_v11  ;;  %3475 = vmatmul.mubr.bf16.vlgmr.msra.gmra.mrb[76].mxu0 %v2344_v11 }
 0x5db   :  { %2456 = vmatpush1.bf16.msra.mxu1 %v5314_v28  ;;  %3479 = vmatpush3.bf16.msra.mxu0 %v4913_v33  ;;  %v5333_v33 = vld [vmem:[#allocation8 + $0x30] ss:$12 sps:$4 sm:$0xff]  }
 0x5dc   :  { %2457 = vmatprep.subr.bf16.mxu1 %v5318_v63  ;;  %3480 = vmatprep.subr.bf16.mxu0 %v5687_v5 }
 0x5dd   :  { %2487 = vmatprep.mubr.bf16.mxu1 %v5688_v46  ;;  %3494 = vmatprep.mubr.msk.bf16.mxu0 %vm4148_vm4, %v5687_v5 }
 0x5df   :  { %2458 = vmatpush1.bf16.msra.mxu1 %v5325_v17  ;;  %3481 = vmatpush3.bf16.msra.mxu0 %v4922_v36  ;;  %v5754_v36 = vld [vmem:[#allocation27_spill] sm:$0xff] }
 0x5e0   :  { %2459 = vmatprep.subr.bf16.mxu1 %v5329_v22  ;;  %3482 = vmatprep.subr.bf16.mxu0 %v5687_v5 }
 0x5e3   :  { %2460 = vmatpush1.bf16.msra.mxu1 %v5333_v33  ;;  %3483 = vmatpush3.bf16.msra.mxu0 %v4928_v34  ;;  %v5755_v34 = vld [vmem:[#allocation29_spill] sm:$0xff] }
 0x5e4   :  { %2461 = vmatprep.subr.bf16.mxu1 %v5337_v14  ;;  %3484 = vmatprep.subr.bf16.mxu0 %v5687_v5 }
 0x5e7   :  { %2462 = vmatpush1.bf16.msra.mxu1 %v4933_v42  ;;  %3485 = vmatpush3.bf16.msra.mxu0 %v4936_v37  ;;  %v5756_v42 = vld [vmem:[#allocation31_spill] sm:$0xff]  ;;  %v5757_v37 = vld [vmem:[#allocation28_spill] sm:$0xff] }
 0x5e8   :  { %2463 = vmatprep.subr.bf16.mxu1 %v4939_v39  ;;  %3486 = vmatprep.subr.bf16.mxu0 %v5687_v5  ;;  %v5758_v39 = vld [vmem:[#allocation71_spill] sm:$0xff] }
 0x5eb   :  { %2464 = vmatpush1.bf16.msra.mxu1 %v5734_v60  ;;  %3487 = vmatpush3.bf16.msra.mxu0 %v5735_v26  ;;  %v5759_v60 = vld [vmem:[#allocation33_spill] sm:$0xff]  ;;  %v5760_v26 = vld [vmem:[#allocation50_spill] sm:$0xff] }
 0x5ec   :  { %2465 = vmatprep.subr.bf16.mxu1 %v5736_v3  ;;  %3488 = vmatprep.subr.bf16.mxu0 %v5687_v5 }
 0x5ef   :  { %2466 = vmatpush1.bf16.msra.mxu1 %v5737_v0  ;;  %3489 = vmatpush3.bf16.msra.mxu0 %v5738_v53  ;;  %v5761_v53 = vld [vmem:[#allocation54_spill] sm:$0xff] }
 0x5f0   :  { %2467 = vmatprep.subr.bf16.mxu1 %v5754_v36  ;;  %3490 = vmatprep.subr.bf16.mxu0 %v5687_v5 }
 0x5f3   :  { %2468 = vmatpush1.bf16.msra.mxu1 %v5755_v34  ;;  %3491 = vmatpush3.bf16.msra.mxu0 %v5756_v42 }
 0x5f4   :  { %2469 = vmatprep.subr.bf16.mxu1 %v5757_v37  ;;  %3492 = vmatprep.subr.bf16.mxu0 %v5687_v5  ;;  %v5764_v37 = vld [vmem:[#allocation70_spill] sm:$0xff] }
 0x5f7   :  { %2470 = vmatpush1.bf16.msra.mxu1 %v5758_v39  ;;  %3493 = vmatpush3.bf16.msra.mxu0 %v5759_v60 }
 0x5f8   :  { %2565 = vmatprep.subr.bf16.mxu1 %v5760_v26  ;;  %3498 = vmatprep.subr.bf16.mxu0 %v5687_v5 }
 0x68d   :  { %v2269_v3 = vpop.f32.mrb[56].mxu1  ;;  %v2310_v0 = vpop.f32.mrb[72].mxu0 }
 0x68e   :  { %v2270_v41 = vadd.f32 %v2269_v3, %v5761_v53  ;;  %v2271_v30 = vpop.f32.mrb[57].mxu1  ;;  %v3456_v43 = vpop.f32.mrb[73].mxu0  ;;  %v2311_v39 = vadd.f32 %v2310_v0, %v5764_v37 }
 0x68f   :  { %v2272_v50 = vadd.f32 %v2271_v30, %v5697_v54  ;;  %v2273_v47 = vpop.f32.mrb[58].mxu1  ;;  %v2313_v23 = vpop.f32.mrb[74].mxu0  ;;  %v5765_v43 = vld [vmem:[#allocation44_spill] sm:$0xff] }
 0x690   :  { %v2316_v16 = vadd.f32 %v2270_v41, %v5762_v44  ;;  %v2274_v57 = vpop.f32.mrb[59].mxu1  ;;  %v3457_v29 = vpop.f32.mrb[75].mxu0 }
 0x691   :  { %v2323_v45 = vadd.f32 %v2272_v50, %v5763_v7  ;;  %v5766_v7 = vld [vmem:[#allocation34_spill] sm:$0xff] }
 0x692   :  { %v3082_v13 = vmul.f32 -1.442695, %v2316_v16 }
 0x693   :  { %v3083_v49 = vmul.f32 -1.442695, %v2323_v45 }
 0x694   :  { %3818 = vpow2.f32 %v3082_v13 }
 0x695   :  { %3820 = vpow2.f32 %v3083_v49  ;;  %v5767_v49 = vld [vmem:[#allocation60_spill] sm:$0xff] }
 0x69e   :  { %v3819_v2 = vpop.eup %3818 }
 0x69f   :  { %v2320_v11 = vadd.f32 1.0, %v3819_v2  ;;  %v3821_v36 = vpop.eup %3820 }
 0x6a0   :  { %v2327_v34 = vadd.f32 1.0, %v3821_v36 }
 0x6a1   :  { %3822 = vrcp.f32 %v2320_v11 }
 0x6a2   :  { %3824 = vrcp.f32 %v2327_v34 }
 0x6ab   :  { %v3823_v26 = vpop.eup %3822 }
 0x6ac   :  { %v2330_v3 = vmul.f32 %v3823_v26, %v2311_v39  ;;  %v3825_v36 = vpop.eup %3824 }
 0x6ad   :  { %v2379_v30 = vpop.f32.mrb[60].mxu1  ;;  %v2420_v41 = vpop.f32.mrb[76].mxu0  ;;  %v2333_v39 = vsub.f32 1.0, %v3825_v36 }
 0x6ae   :  { %v2331_v47 = vadd.f32 %v2330_v3, %v5765_v43  ;;  %v2380_v50 = vadd.f32 %v2379_v30, %v5702_v4  ;;  %v2381_v23 = vpop.f32.mrb[61].mxu1  ;;  %v3476_v44 = vpop.f32.mrb[77].mxu0  ;;  %v2335_v30 = vmul.f32 %v3825_v36, %v5261_v55 }
 0x6af   :  { %v2382_v16 = vadd.f32 %v2381_v23, %v4718_v18  ;;  %v2383_v57 = vpop.f32.mrb[62].mxu1  ;;  %v2423_v29 = vpop.f32.mrb[78].mxu0 }
 0x6b0   :  { %3826 = vtanh.f32 %v2331_v47  ;;  %v2426_v45 = vadd.f32 %v2380_v50, %v5766_v7  ;;  %v2384_v13 = vpop.f32.mrb[63].mxu1  ;;  %v3477_v0 = vpop.f32.mrb[79].mxu0 }
 0x6b1   :  { %v2433_v2 = vadd.f32 %v2382_v16, %v5767_v49 }
 0x6b2   :  { %v3084_v11 = vmul.f32 -1.442695, %v2426_v45 }
 0x6b3   :  { %v3085_v34 = vmul.f32 -1.442695, %v2433_v2 }
 0x6b4   :  { %3828 = vpow2.f32 %v3084_v11  ;;  %v5771_v11 = vld [vmem:[#allocation47_spill] sm:$0xff] }
 0x6b5   :  { %3830 = vpow2.f32 %v3085_v34 }
 0x6ba   :  { %v3827_v26 = vpop.eup %3826 }
 0x6bb   :  { %v2334_v3 = vmul.f32 %v3827_v26, %v2333_v39  ;;  %v5772_v26 = vld [vmem:[#allocation49_spill] sm:$0xff] }
 0x6bd   :  { %v2336_v43 = vadd.f32 %v2335_v30, %v2334_v3 }
 0x6be   :  { %v3829_v23 = vpop.eup %3828 }
 0x6bf   :  { %v2430_v44 = vadd.f32 1.0, %v3829_v23  ;;  %v2337_v50 = vsel %vm1768_vm0, %v2336_v43, 0.0  ;;  %v5377_v16 = vsel %vm1768_vm0, %v2336_v43, %v5261_v55  ;;  %v3831_v29 = vpop.eup %3830 }
 0x6c0   :  { %2339 = vst [vmem:[#allocation11 + $0x28] sm:$0xff] %v2337_v50  ;;  %v2454_v57 = vpack.c.bf16 %v5377_v16, %v5377_v16  ;;  %v2437_v55 = vadd.f32 1.0, %v3831_v29 }
 0x6c1   :  { %3832 = vrcp.f32 %v2430_v44 }
 0x6c2   :  { %2488 = vmatmul.mubr.bf16.vlgmr.msra.gmra.mrb[64].mxu1 %v2454_v57  ;;  %3495 = vmatmul.mubr.bf16.vlgmr.msra.gmra.mrb[80].mxu0 %v2454_v57  ;;  %3834 = vrcp.f32 %v2437_v55 }
 0x6c3   :  { %2566 = vmatpush1.bf16.msra.mxu1 %v5002_v59  ;;  %3499 = vmatpush3.bf16.msra.mxu0 %v5005_v27  ;;  %v2421_v59 = vadd.f32 %v2420_v41, %v4748_v31 }
 0x6c4   :  { %2567 = vmatprep.subr.bf16.mxu1 %v5008_v56  ;;  %3500 = vmatprep.subr.bf16.mxu0 %v5687_v5 }
 0x6c5   :  { %2597 = vmatprep.mubr.bf16.mxu1 %v5688_v46  ;;  %3514 = vmatprep.mubr.msk.bf16.mxu0 %vm4148_vm4, %v5687_v5 }
 0x6c7   :  { %2568 = vmatpush1.bf16.msra.mxu1 %v5015_v9  ;;  %3501 = vmatpush3.bf16.msra.mxu0 %v5018_v35  ;;  %v5769_v9 = vld [vmem:[#allocation61_spill] sm:$0xff] }
 0x6c8   :  { %2569 = vmatprep.subr.bf16.mxu1 %v5021_v1  ;;  %3502 = vmatprep.subr.bf16.mxu0 %v5687_v5 }
 0x6cb   :  { %v3833_v27 = vpop.eup %3832  ;;  %2570 = vmatpush1.bf16.msra.mxu1 %v5026_v52  ;;  %3503 = vmatpush3.bf16.msra.mxu0 %v5029_v51 }
 0x6cc   :  { %v2440_v56 = vmul.f32 %v3833_v27, %v2421_v59  ;;  %2571 = vmatprep.subr.bf16.mxu1 %v5032_v62  ;;  %3504 = vmatprep.subr.bf16.mxu0 %v5687_v5  ;;  %v3835_v1 = vpop.eup %3834  ;;  %v5773_v27 = vld [vmem:[#allocation48_spill] sm:$0xff] }
 0x6cd   :  { %v2443_v52 = vsub.f32 1.0, %v3835_v1 }
 0x6ce   :  { %v2441_v35 = vadd.f32 %v2440_v56, %v5769_v9 }
 0x6cf   :  { %2572 = vmatpush1.bf16.msra.mxu1 %v5037_v25  ;;  %3505 = vmatpush3.bf16.msra.mxu0 %v5040_v10  ;;  %v2445_v25 = vmul.f32 %v3835_v1, %v5306_v61 }
 0x6d0   :  { %3836 = vtanh.f32 %v2441_v35  ;;  %2573 = vmatprep.subr.bf16.mxu1 %v5043_v38  ;;  %3506 = vmatprep.subr.bf16.mxu0 %v5687_v5 }
 0x6d3   :  { %2574 = vmatpush1.bf16.msra.mxu1 %v5047_v12  ;;  %3507 = vmatpush3.bf16.msra.mxu0 %v5050_v40 }
 0x6d4   :  { %2575 = vmatprep.subr.bf16.mxu1 %v5053_v15  ;;  %3508 = vmatprep.subr.bf16.mxu0 %v5687_v5 }
 0x6d7   :  { %2576 = vmatpush1.bf16.msra.mxu1 %v5057_v20  ;;  %3509 = vmatpush3.bf16.msra.mxu0 %v5060_v21  ;;  %v3935_v20 = vld [vmem:[#allocation8 + $0x38] ss:$12 sps:$4 sm:$0xff]   ;;  %v3936_v21 = vld [vmem:[#allocation8 + $0x48] ss:$12 sps:$4 sm:$0xff]  }
 0x6d8   :  { %2577 = vmatprep.subr.bf16.mxu1 %v5063_v32  ;;  %3510 = vmatprep.subr.bf16.mxu0 %v5687_v5  ;;  %v3937_v32 = vld [vmem:[#allocation8 + $0x50] ss:$12 sps:$4 sm:$0xff]  }
 0x6da   :  { %v3837_v51 = vpop.eup %3836 }
 0x6db   :  { %2578 = vmatpush1.bf16.msra.mxu1 %v5067_v58  ;;  %3511 = vmatpush3.bf16.msra.mxu0 %v5070_v6  ;;  %v2444_v62 = vmul.f32 %v3837_v51, %v2443_v52  ;;  %v3938_v58 = vld [vmem:[#allocation8 + $0x64] ss:$12 sps:$4 sm:$0xff]   ;;  %v3939_v6 = vld [vmem:[#allocation8 + $0x60] ss:$12 sps:$4 sm:$0xff]  }
 0x6dc   :  { %2579 = vmatprep.subr.bf16.mxu1 %v5074_v8  ;;  %3512 = vmatprep.subr.bf16.mxu0 %v5687_v5  ;;  %v3940_v8 = vld [vmem:[#allocation8 + $0x68] ss:$12 sps:$4 sm:$0xff]  }
 0x6dd   :  { %v2446_v10 = vadd.f32 %v2445_v25, %v2444_v62  ;;  %v5774_v25 = vld [vmem:[#allocation30_spill] sm:$0xff] }
 0x6df   :  { %2580 = vmatpush1.bf16.msra.mxu1 %v5081_v48  ;;  %3513 = vmatpush3.bf16.msra.mxu0 %v5084_v24  ;;  %v2447_v12 = vsel %vm1649_vm15, %v2446_v10, 0.0  ;;  %v5422_v40 = vsel %vm1649_vm15, %v2446_v10, %v5306_v61  ;;  %v3933_v48 = vld [vmem:[#allocation8 + $0x8] ss:$12 sps:$4 sm:$0xff]   ;;  %v3934_v24 = vld [vmem:[#allocation8 + $0x20] ss:$12 sps:$4 sm:$0xff]  }
 0x6e0   :  { %2449 = vst [vmem:[#allocation12 + $0x10] sm:$0xff] %v2447_v12  ;;  %v2564_v15 = vpack.c.bf16 %v5422_v40, %v5422_v40  ;;  %2675 = vmatprep.subr.bf16.mxu1 %v5310_v19  ;;  %3518 = vmatprep.subr.bf16.mxu0 %v5687_v5  ;;  %v3941_v61 = vld [vmem:[#allocation8 + $0x7c] ss:$12 sps:$4 sm:$0xff]   ;;  %v3942_v19 = vld [vmem:[#allocation8 + $0x78] ss:$12 sps:$4 sm:$0xff]  }
 0x6e2   :  { %2598 = vmatmul.mubr.bf16.vlgmr.msra.gmra.mrb[68].mxu1 %v2564_v15  ;;  %3515 = vmatmul.mubr.bf16.vlgmr.msra.gmra.mrb[84].mxu0 %v2564_v15  ;;  %v5775_v15 = vld [vmem:[#allocation58_spill] sm:$0xff] }
 0x6e3   :  { %2676 = vmatpush1.bf16.msra.mxu1 %v5314_v28  ;;  %3519 = vmatpush3.bf16.msra.mxu0 %v3933_v48  ;;  %v3943_v28 = vld [vmem:[#allocation8 + $0x80] ss:$12 sps:$4 sm:$0xff]  }
 0x6e4   :  { %2677 = vmatprep.subr.bf16.mxu1 %v5318_v63  ;;  %3520 = vmatprep.subr.bf16.mxu0 %v5687_v5  ;;  %v3944_v63 = vld [vmem:[#allocation8 + $0x94] ss:$12 sps:$4 sm:$0xff]  }
 0x6e5   :  { %2707 = vmatprep.mubr.bf16.mxu1 %v5688_v46  ;;  %3534 = vmatprep.mubr.msk.bf16.mxu0 %vm4148_vm4, %v5687_v5 }
 0x6e7   :  { %2678 = vmatpush1.bf16.msra.mxu1 %v5325_v17  ;;  %3521 = vmatpush3.bf16.msra.mxu0 %v3934_v24  ;;  %v3945_v17 = vld [vmem:[#allocation8 + $0x90] ss:$12 sps:$4 sm:$0xff]  }
 0x6e8   :  { %2679 = vmatprep.subr.bf16.mxu1 %v5329_v22  ;;  %3522 = vmatprep.subr.bf16.mxu0 %v5687_v5  ;;  %v3946_v22 = vld [vmem:[#allocation8 + $0xac] ss:$12 sps:$4 sm:$0xff]  }
 0x6eb   :  { %2680 = vmatpush1.bf16.msra.mxu1 %v5333_v33  ;;  %3523 = vmatpush3.bf16.msra.mxu0 %v3935_v20  ;;  %v3947_v33 = vld [vmem:[#allocation8 + $0xa8] ss:$12 sps:$4 sm:$0xff]  }
 0x6ec   :  { %2681 = vmatprep.subr.bf16.mxu1 %v5337_v14  ;;  %3524 = vmatprep.subr.bf16.mxu0 %v5687_v5  ;;  %v3948_v14 = vld [vmem:[#allocation9 + $0x4] ss:$12 sps:$4 sm:$0xff]  }
 0x6ef   :  { %2682 = vmatpush1.bf16.msra.mxu1 %v3936_v21  ;;  %3525 = vmatpush3.bf16.msra.mxu0 %v3937_v32 }
 0x6f0   :  { %2683 = vmatprep.subr.bf16.mxu1 %v3938_v58  ;;  %3526 = vmatprep.subr.bf16.mxu0 %v5687_v5 }
 0x6f3   :  { %2684 = vmatpush1.bf16.msra.mxu1 %v3939_v6  ;;  %3527 = vmatpush3.bf16.msra.mxu0 %v3940_v8 }
 0x6f4   :  { %2685 = vmatprep.subr.bf16.mxu1 %v3941_v61  ;;  %3528 = vmatprep.subr.bf16.mxu0 %v5687_v5 }
 0x6f7   :  { %2686 = vmatpush1.bf16.msra.mxu1 %v3942_v19  ;;  %3529 = vmatpush3.bf16.msra.mxu0 %v3943_v28 }
 0x6f8   :  { %2687 = vmatprep.subr.bf16.mxu1 %v3944_v63  ;;  %3530 = vmatprep.subr.bf16.mxu0 %v5687_v5 }
 0x6fb   :  { %2688 = vmatpush1.bf16.msra.mxu1 %v3945_v17  ;;  %3531 = vmatpush3.bf16.msra.mxu0 %v5756_v42 }
 0x6fc   :  { %2689 = vmatprep.subr.bf16.mxu1 %v3946_v22  ;;  %3532 = vmatprep.subr.bf16.mxu0 %v5687_v5 }
 0x6ff   :  { %2690 = vmatpush1.bf16.msra.mxu1 %v3947_v33  ;;  %3533 = vmatpush3.bf16.msra.mxu0 %v5759_v60 }
 0x700   :  { %2785 = vmatprep.subr.bf16.mxu1 %v3948_v14  ;;  %3538 = vmatprep.subr.bf16.mxu0 %v5687_v5  ;;  %v3949_v14 = vld [vmem:[#allocation9] ss:$12 sps:$4 sm:$0xff]  }
 0x795   :  { %v2489_v41 = vpop.f32.mrb[64].mxu1  ;;  %v2530_v7 = vpop.f32.mrb[80].mxu0 }
 0x796   :  { %v2490_v45 = vadd.f32 %v2489_v41, %v5761_v53  ;;  %v2491_v13 = vpop.f32.mrb[65].mxu1  ;;  %v3496_v0 = vpop.f32.mrb[81].mxu0  ;;  %v2531_v50 = vadd.f32 %v2530_v7, %v5764_v37  ;;  %v3950_v41 = vld [vmem:[#allocation9 + $0x8] ss:$12 sps:$4 sm:$0xff]  }
 0x797   :  { %v2492_v42 = vadd.f32 %v2491_v13, %v5697_v54  ;;  %v2493_v49 = vpop.f32.mrb[66].mxu1  ;;  %v2533_v2 = vpop.f32.mrb[82].mxu0  ;;  %v3951_v7 = vld [vmem:[#allocation9 + $0x1c] ss:$12 sps:$4 sm:$0xff]   ;;  %v3953_v13 = vld [vmem:[#allocation9 + $0x20] ss:$12 sps:$4 sm:$0xff]  }
 0x798   :  { %v2536_v36 = vadd.f32 %v2490_v45, %v5771_v11  ;;  %v2494_v34 = vpop.f32.mrb[67].mxu1  ;;  %v3497_v39 = vpop.f32.mrb[83].mxu0  ;;  %v3955_v11 = vld [vmem:[#allocation9 + $0x30] ss:$12 sps:$4 sm:$0xff]  }
 0x799   :  { %v2543_v60 = vadd.f32 %v2492_v42, %v5772_v26  ;;  %v3954_v42 = vld [vmem:[#allocation9 + $0x34] ss:$12 sps:$4 sm:$0xff]   ;;  %v3957_v34 = vld [vmem:[#allocation9 + $0x4c] ss:$12 sps:$4 sm:$0xff]  }
 0x79a   :  { %v3086_v3 = vmul.f32 -1.442695, %v2536_v36  ;;  %v3956_v36 = vld [vmem:[#allocation9 + $0x38] ss:$12 sps:$4 sm:$0xff]   ;;  %v5777_v39 = vld [vmem:[#allocation59_spill] sm:$0xff] }
 0x79b   :  { %v3087_v30 = vmul.f32 -1.442695, %v2543_v60  ;;  %v3958_v60 = vld [vmem:[#allocation9 + $0x48] ss:$12 sps:$4 sm:$0xff]  }
 0x79c   :  { %3838 = vpow2.f32 %v3086_v3  ;;  %v3959_v3 = vld [vmem:[#allocation9 + $0x50] ss:$12 sps:$4 sm:$0xff]  }
 0x79d   :  { %3840 = vpow2.f32 %v3087_v30  ;;  %v3960_v30 = vld [vmem:[#allocation9 + $0x64] ss:$12 sps:$4 sm:$0xff]  }
 0x7a6   :  { %v3839_v43 = vpop.eup %3838 }
 0x7a7   :  { %v2540_v23 = vadd.f32 1.0, %v3839_v43  ;;  %v3841_v44 = vpop.eup %3840  ;;  %v3961_v43 = vld [vmem:[#allocation9 + $0x60] ss:$12 sps:$4 sm:$0xff]  }
 0x7a8   :  { %v2547_v47 = vadd.f32 1.0, %v3841_v44  ;;  %v3963_v44 = vld [vmem:[#allocation9 + $0x7c] ss:$12 sps:$4 sm:$0xff]  }
 0x7a9   :  { %3842 = vrcp.f32 %v2540_v23  ;;  %v3962_v23 = vld [vmem:[#allocation9 + $0x68] ss:$12 sps:$4 sm:$0xff]  }
 0x7aa   :  { %3844 = vrcp.f32 %v2547_v47 }
 0x7b3   :  { %v3843_v57 = vpop.eup %3842 }
 0x7b4   :  { %v2550_v29 = vmul.f32 %v3843_v57, %v2531_v50  ;;  %v3845_v20 = vpop.eup %3844  ;;  %v3964_v50 = vld [vmem:[#allocation9 + $0x78] ss:$12 sps:$4 sm:$0xff]   ;;  %v3965_v57 = vld [vmem:[#allocation9 + $0x80] ss:$12 sps:$4 sm:$0xff]  }
 0x7b5   :  { %v2599_v55 = vpop.f32.mrb[68].mxu1  ;;  %v2640_v59 = vpop.f32.mrb[84].mxu0  ;;  %v2553_v32 = vsub.f32 1.0, %v3845_v20  ;;  %v2555_v8 = vmul.f32 %v3845_v20, %v5377_v16 }
 0x7b6   :  { %v2551_v56 = vadd.f32 %v2550_v29, %v5773_v27  ;;  %v2600_v9 = vadd.f32 %v2599_v55, %v5702_v4  ;;  %v2601_v35 = vpop.f32.mrb[69].mxu1  ;;  %v3516_v1 = vpop.f32.mrb[85].mxu0  ;;  %v2641_v49 = vadd.f32 %v2640_v59, %v4748_v31  ;;  %v3966_v29 = vld [vmem:[#allocation9 + $0x94] ss:$12 sps:$4 sm:$0xff]   ;;  %v3967_v27 = vld [vmem:[#allocation9 + $0x90] ss:$12 sps:$4 sm:$0xff]  }
 0x7b7   :  { %v2602_v52 = vadd.f32 %v2601_v35, %v4718_v18  ;;  %v2603_v51 = vpop.f32.mrb[70].mxu1  ;;  %v2643_v62 = vpop.f32.mrb[86].mxu0  ;;  %v3969_v1 = vld [vmem:[#allocation9 + $0xac] ss:$12 sps:$4 sm:$0xff]  }
 0x7b8   :  { %3846 = vtanh.f32 %v2551_v56  ;;  %v2646_v10 = vadd.f32 %v2600_v9, %v5774_v25  ;;  %v2604_v38 = vpop.f32.mrb[71].mxu1  ;;  %v3517_v12 = vpop.f32.mrb[87].mxu0  ;;  %v3968_v56 = vld [vmem:[#allocation9 + $0x98] ss:$12 sps:$4 sm:$0xff]   ;;  %v3970_v51 = vld [vmem:[#allocation9 + $0xa8] ss:$12 sps:$4 sm:$0xff]  }
 0x7b9   :  { %v2653_v48 = vadd.f32 %v2602_v52, %v5775_v15  ;;  %v3971_v62 = vld [vmem:[#allocation9 + $0xb0] ss:$12 sps:$4 sm:$0xff]  }
 0x7ba   :  { %v3088_v24 = vmul.f32 -1.442695, %v2646_v10 }
 0x7bb   :  { %v3089_v21 = vmul.f32 -1.442695, %v2653_v48 }
 0x7bc   :  { %3848 = vpow2.f32 %v3088_v24 }
 0x7bd   :  { %3850 = vpow2.f32 %v3089_v21 }
 0x7c2   :  { %v3847_v58 = vpop.eup %3846 }
 0x7c3   :  { %v2554_v6 = vmul.f32 %v3847_v58, %v2553_v32 }
 0x7c5   :  { %v2556_v61 = vadd.f32 %v2555_v8, %v2554_v6  ;;  %v5779_v6 = vld [vmem:[#allocation51_spill] sm:$0xff] }
 0x7c6   :  { %v3849_v19 = vpop.eup %3848 }
 0x7c7   :  { %v2650_v28 = vadd.f32 1.0, %v3849_v19  ;;  %v2557_v17 = vsel %vm1530_vm14, %v2556_v61, 0.0  ;;  %v5463_v22 = vsel %vm1530_vm14, %v2556_v61, %v5377_v16  ;;  %v3851_v45 = vpop.eup %3850  ;;  %v3952_v16 = vld [vmem:[#allocation9 + $0x18] ss:$12 sps:$4 sm:$0xff]  }
 0x7c8   :  { %2559 = vst [vmem:[#allocation11 + $0x30] sm:$0xff] %v2557_v17  ;;  %v2674_v33 = vpack.c.bf16 %v5463_v22, %v5463_v22  ;;  %v2657_v0 = vadd.f32 1.0, %v3851_v45  ;;  %v5780_v19 = vld [vmem:[#allocation53_spill] sm:$0xff] }
 0x7c9   :  { %3852 = vrcp.f32 %v2650_v28 }
 0x7ca   :  { %2708 = vmatmul.mubr.bf16.vlgmr.msra.gmra.mrb[72].mxu1 %v2674_v33  ;;  %3535 = vmatmul.mubr.bf16.vlgmr.msra.gmra.mrb[88].mxu0 %v2674_v33  ;;  %3854 = vrcp.f32 %v2657_v0  ;;  %v5781_v0 = vld [vmem:[#allocation52_spill] sm:$0xff] }
 0x7cb   :  { %2786 = vmatpush1.bf16.msra.mxu1 %v3949_v14  ;;  %3539 = vmatpush3.bf16.msra.mxu0 %v3950_v41 }
 0x7cc   :  { %2787 = vmatprep.subr.bf16.mxu1 %v3951_v7  ;;  %3540 = vmatprep.subr.bf16.mxu0 %v5687_v5 }
 0x7cd   :  { %2817 = vmatprep.mubr.bf16.mxu1 %v5688_v46  ;;  %3554 = vmatprep.mubr.msk.bf16.mxu0 %vm4148_vm4, %v5687_v5 }
 0x7cf   :  { %2788 = vmatpush1.bf16.msra.mxu1 %v3952_v16  ;;  %3541 = vmatpush3.bf16.msra.mxu0 %v3953_v13 }
 0x7d0   :  { %2789 = vmatprep.subr.bf16.mxu1 %v3954_v42  ;;  %3542 = vmatprep.subr.bf16.mxu0 %v5687_v5 }
 0x7d3   :  { %v3853_v2 = vpop.eup %3852  ;;  %2790 = vmatpush1.bf16.msra.mxu1 %v3955_v11  ;;  %3543 = vmatpush3.bf16.msra.mxu0 %v3956_v36 }
 0x7d4   :  { %v2660_v46 = vmul.f32 %v3853_v2, %v2641_v49  ;;  %2791 = vmatprep.subr.bf16.mxu1 %v3957_v34  ;;  %3544 = vmatprep.subr.bf16.mxu0 %v5687_v5  ;;  %v3855_v47 = vpop.eup %3854 }
 0x7d5   :  { %v2663_v55 = vsub.f32 1.0, %v3855_v47  ;;  %v2665_v35 = vmul.f32 %v3855_v47, %v5422_v40 }
 0x7d6   :  { %v2661_v26 = vadd.f32 %v2660_v46, %v5777_v39  ;;  %v5782_v39 = vld [vmem:[#allocation26_spill] sm:$0xff] }
 0x7d7   :  { %2792 = vmatpush1.bf16.msra.mxu1 %v3958_v60  ;;  %3545 = vmatpush3.bf16.msra.mxu0 %v3959_v3  ;;  %v5783_v3 = vld [vmem:[#allocation56_spill] sm:$0xff] }
 0x7d8   :  { %3856 = vtanh.f32 %v2661_v26  ;;  %2793 = vmatprep.subr.bf16.mxu1 %v3960_v30  ;;  %3546 = vmatprep.subr.bf16.mxu0 %v5687_v5 }
 0x7db   :  { %2794 = vmatpush1.bf16.msra.mxu1 %v3961_v43  ;;  %3547 = vmatpush3.bf16.msra.mxu0 %v3962_v23 }
 0x7dc   :  { %2795 = vmatprep.subr.bf16.mxu1 %v3963_v44  ;;  %3548 = vmatprep.subr.bf16.mxu0 %v5687_v5 }
 0x7df   :  { %2796 = vmatpush1.bf16.msra.mxu1 %v3964_v50  ;;  %3549 = vmatpush3.bf16.msra.mxu0 %v3965_v57 }
 0x7e0   :  { %2797 = vmatprep.subr.bf16.mxu1 %v3966_v29  ;;  %3550 = vmatprep.subr.bf16.mxu0 %v5687_v5 }
 0x7e2   :  { %v3857_v59 = vpop.eup %3856 }
 0x7e3   :  { %2798 = vmatpush1.bf16.msra.mxu1 %v3967_v27  ;;  %3551 = vmatpush3.bf16.msra.mxu0 %v3968_v56  ;;  %v2664_v9 = vmul.f32 %v3857_v59, %v2663_v55 }
 0x7e4   :  { %2799 = vmatprep.subr.bf16.mxu1 %v3969_v1  ;;  %3552 = vmatprep.subr.bf16.mxu0 %v5687_v5 }
 0x7e5   :  { %v2666_v52 = vadd.f32 %v2665_v35, %v2664_v9 }
 0x7e7   :  { %2800 = vmatpush1.bf16.msra.mxu1 %v3970_v51  ;;  %3553 = vmatpush3.bf16.msra.mxu0 %v3971_v62  ;;  %v2667_v10 = vsel %vm1411_vm13, %v2666_v52, 0.0  ;;  %v5485_v38 = vsel %vm1411_vm13, %v2666_v52, %v5422_v40 }
 0x7e8   :  { %2669 = vst [vmem:[#allocation12 + $0x8] sm:$0xff] %v2667_v10  ;;  %v2784_v12 = vpack.c.bf16 %v5485_v38, %v5485_v38 }
 0x7ea   :  { %2818 = vmatmul.mubr.bf16.vlgmr.msra.gmra.mrb[76].mxu1 %v2784_v12  ;;  %3555 = vmatmul.mubr.bf16.vlgmr.msra.gmra.mrb[92].mxu0 %v2784_v12 }
 0x89d   :  { %v2709_v5 = vpop.f32.mrb[72].mxu1  ;;  %v2750_v15 = vpop.f32.mrb[88].mxu0 }
 0x89e   :  { %v2710_v48 = vadd.f32 %v2709_v5, %v5761_v53  ;;  %v2711_v24 = vpop.f32.mrb[73].mxu1  ;;  %v3536_v20 = vpop.f32.mrb[89].mxu0  ;;  %v2751_v7 = vadd.f32 %v2750_v15, %v5764_v37 }
 0x89f   :  { %v2712_v21 = vadd.f32 %v2711_v24, %v5697_v54  ;;  %v2713_v32 = vpop.f32.mrb[74].mxu1  ;;  %v2753_v58 = vpop.f32.mrb[90].mxu0 }
 0x8a0   :  { %v2756_v8 = vadd.f32 %v2710_v48, %v5779_v6  ;;  %v2714_v40 = vpop.f32.mrb[75].mxu1  ;;  %v3537_v61 = vpop.f32.mrb[91].mxu0 }
 0x8a1   :  { %v2763_v28 = vadd.f32 %v2712_v21, %v5780_v19 }
 0x8a2   :  { %v3090_v63 = vmul.f32 -1.442695, %v2756_v8 }
 0x8a3   :  { %v3091_v17 = vmul.f32 -1.442695, %v2763_v28 }
 0x8a4   :  { %3858 = vpow2.f32 %v3090_v63 }
 0x8a5   :  { %3860 = vpow2.f32 %v3091_v17 }
 0x8ae   :  { %v3859_v33 = vpop.eup %3858 }
 0x8af   :  { %v2760_v14 = vadd.f32 1.0, %v3859_v33  ;;  %v3861_v53 = vpop.eup %3860 }
 0x8b0   :  { %v2767_v41 = vadd.f32 1.0, %v3861_v53 }
 0x8b1   :  { %3862 = vrcp.f32 %v2760_v14 }
 0x8b2   :  { %3864 = vrcp.f32 %v2767_v41 }
 0x8bb   :  { %v3863_v54 = vpop.eup %3862 }
 0x8bc   :  { %v2770_v45 = vmul.f32 %v3863_v54, %v2751_v7  ;;  %v3865_v23 = vpop.eup %3864 }
 0x8bd   :  { %v2819_v16 = vpop.f32.mrb[76].mxu1  ;;  %v2860_v13 = vpop.f32.mrb[92].mxu0  ;;  %v2773_v47 = vsub.f32 1.0, %v3865_v23  ;;  %v2775_v57 = vmul.f32 %v3865_v23, %v5463_v22 }
 0x8be   :  { %v2771_v42 = vadd.f32 %v2770_v45, %v5781_v0  ;;  %v2820_v49 = vadd.f32 %v2819_v16, %v5702_v4  ;;  %v2821_v2 = vpop.f32.mrb[77].mxu1  ;;  %v3556_v11 = vpop.f32.mrb[93].mxu0 }
 0x8bf   :  { %v2822_v36 = vadd.f32 %v2821_v2, %v4718_v18  ;;  %v2823_v46 = vpop.f32.mrb[78].mxu1  ;;  %v2863_v34 = vpop.f32.mrb[94].mxu0 }
 0x8c0   :  { %3866 = vtanh.f32 %v2771_v42  ;;  %v2866_v26 = vadd.f32 %v2820_v49, %v5782_v39  ;;  %v2824_v60 = vpop.f32.mrb[79].mxu1  ;;  %v3557_v37 = vpop.f32.mrb[95].mxu0 }
 0x8c1   :  { %v2873_v30 = vadd.f32 %v2822_v36, %v5783_v3 }
 0x8c2   :  { %v3092_v43 = vmul.f32 -1.442695, %v2866_v26 }
 0x8c3   :  { %v3093_v44 = vmul.f32 -1.442695, %v2873_v30 }
 0x8c4   :  { %3868 = vpow2.f32 %v3092_v43 }
 0x8c5   :  { %3870 = vpow2.f32 %v3093_v44 }
 0x8ca   :  { %v3867_v50 = vpop.eup %3866 }
 0x8cb   :  { %v2774_v4 = vmul.f32 %v3867_v50, %v2773_v47 }
 0x8cd   :  { %v2776_v18 = vadd.f32 %v2775_v57, %v2774_v4 }
 0x8ce   :  { %v3869_v29 = vpop.eup %3868 }
 0x8cf   :  { %v2777_v59 = vsel %vm1293_vm11, %v2776_v18, 0.0  ;;  %v2870_v27 = vadd.f32 1.0, %v3869_v29  ;;  %v2780_v56 = vsel %vm1293_vm11, %v2776_v18, %v5463_v22 }
 0x8d0   :  { %2779 = vst [vmem:[#allocation11 + $0x38] sm:$0xff] %v2777_v59  ;;  %2890 = vst [vmem:[#allocation14] sm:$0xff] %v2780_v56 }
 0x8d1   :  { %3872 = vrcp.f32 %v2870_v27 }
 0x8d2   :  { %4071 = shalt.err (!%p4068_p8)
}
 0x8d3   :  { %s4072_s28 = scalar_lea.hbm %s5573_s8, 1024 }
 0x8d4   :  { %p4073_p9 = scmp.ne.s32.totalorder %s5573_s8, %s4072_s28  ;;  %p4076_p10 = scmp.lt.u32.totalorder %s4072_s28, %s5573_s8 }
 0x8d6   :  { %p4078_p11 = pnand %p4076_p10, %p4073_p9 }
 0x8d8   :  { %4081 = shalt.err (!%p4078_p11)
}
 0x8d9   :  { %s4150_s16 = smov 128   ;;  %s4151_s17 = smov 8   ;;  %v3871_v22 = vpop.eup %3870  ;;  %v2861_v35 = vadd.f32 %v2860_v13, %v4748_v31  ;;  %v5785_v51 = vld [vmem:[#allocation57_spill] sm:$0xff] }
 0x8da   :  { %2904 = dma.vmem_to_hbm [thread:$0]  %s2899_s27, 1024, %s5573_s8, [#allocation5], %s4150_s16, %s4150_s16, %s4151_s17   ;;  %v2877_v9 = vadd.f32 1.0, %v3871_v22 }
 0x8db   :  { %v3873_v1 = vpop.eup %3872  ;;  %s4152_s18 = smov [#allocation12]   ;;  %s4153_s20 = smov [#allocation14]  }
 0x8dc   :  { %v2880_v52 = vmul.f32 %v3873_v1, %v2861_v35  ;;  %3874 = vrcp.f32 %v2877_v9  ;;  %s2910_s19 = sshll.u32 %s4152_s18, 4  ;;  %s2922_s8 = sshll.u32 %s4153_s20, 4  ;;  %s2911_s19 = int_to_ptr.vmem [resolvable:$true] %s2910_s19  ;;  %s5528_s8 = int_to_ptr.vmem [resolvable:$true] %s2922_s8 }
 0x8dd   :  { %s4082_s22 = scalar_lea.vmem %s2911_s19, 1024  ;;  %p4087_p13 = scmp.lt.s32.totalorder %s2911_s19, %s2911_s19 }
 0x8de   :  { %v2881_v62 = vadd.f32 %v2880_v52, %v5785_v51  ;;  %p4083_p12 = scmp.ne.s32.totalorder %s2911_s19, %s4082_s22  ;;  %p4088_p0 = scmp.lt.s32.totalorder %s4082_s22, %s4082_s22 }
 0x8e0   :  { %3876 = vtanh.f32 %v2881_v62  ;;  %p4089_p1 = por %p4088_p0, %p4087_p13 }
 0x8e2   :  { %p4090_p2 = pnand %p4089_p1, %p4083_p12 }
 0x8e6   :  { %v3875_v25 = vpop.eup %3874 }
 0x8e7   :  { %v2883_v10 = vsub.f32 1.0, %v3875_v25  ;;  %v2885_v15 = vmul.f32 %v3875_v25, %v5485_v38 }
 0x8ea   :  { %v3877_v12 = vpop.eup %3876 }
 0x8eb   :  { %v2884_v5 = vmul.f32 %v3877_v12, %v2883_v10 }
 0x8ed   :  { %v2886_v48 = vadd.f32 %v2885_v15, %v2884_v5 }
 0x8ef   :  { %v2887_v31 = vsel %vm1049_vm9, %v2886_v48, 0.0  ;;  %v2889_v20 = vsel %vm1049_vm9, %v2886_v48, %v5485_v38 }
 0x8f0   :  { %2888 = vst [vmem:[#allocation12] sm:$0xff] %v2887_v31  ;;  %2892 = vst [vmem:[#allocation14 + $0x8] sm:$0xff] %v2889_v20 }
 0x8f1   :  { %4093 = shalt.err (!%p4090_p2)
}
 0x8f2   :  { %s4094_s6 = scalar_lea.hbm %s5574_s9, 1024 }
 0x8f3   :  { %p4095_p3 = scmp.ne.s32.totalorder %s5574_s9, %s4094_s6  ;;  %p4098_p4 = scmp.lt.u32.totalorder %s4094_s6, %s5574_s9 }
 0x8f5   :  { %p4100_p5 = pnand %p4098_p4, %p4095_p3 }
 0x8f7   :  { %4103 = shalt.err (!%p4100_p5)
}
 0x8f8   :  { %2916 = dma.vmem_to_hbm [thread:$0]  %s2911_s19, 1024, %s5574_s9, [#allocation13], %s4150_s16, %s4150_s16, %s4151_s17  }
 0x8f9   :  { %s4104_s26 = scalar_lea.vmem %s5528_s8, 256  ;;  %p4109_p7 = scmp.lt.s32.totalorder %s5528_s8, %s5528_s8 }
 0x8fa   :  { %p4105_p6 = scmp.ne.s32.totalorder %s5528_s8, %s4104_s26  ;;  %p4110_p8 = scmp.lt.s32.totalorder %s4104_s26, %s4104_s26 }
 0x8fc   :  { %p4111_p9 = por %p4110_p8, %p4109_p7 }
 0x8fe   :  { %p4112_p10 = pnand %p4111_p9, %p4105_p6 }
 0x900   :  { %4115 = shalt.err (!%p4112_p10)
}
 0x901   :  { %s4116_s29 = scalar_lea.hbm %s5575_s10, 256 }
 0x902   :  { %p4117_p11 = scmp.ne.s32.totalorder %s5575_s10, %s4116_s29  ;;  %p4120_p12 = scmp.lt.u32.totalorder %s4116_s29, %s5575_s10 }
 0x904   :  { %p4122_p13 = pnand %p4120_p12, %p4117_p11 }
 0x906   :  { %4125 = shalt.err (!%p4122_p13)
}
 0x907   :  { %2928 = dma.vmem_to_hbm [thread:$0]  %s5528_s8, 256, %s5575_s10, [#allocation13], %s4150_s16, %s4150_s16, %s4151_s17  }
 0x908   :  { %4132 = dma.done.wait [#allocation5], 1024  }
 0x909   :  { %4133 = vsyncadd [#allocation5], 4294966272 }
 0x90a   :  { %4134 = dma.done.wait [#allocation13], 1280  }
 0x90b   :  { %4135 = vsyncadd [#allocation13], 4294966016 }
 0x90c   :  { %2938 = vsyncpa [#allocation4], 1 }
 0x90d   :  { %2939 = vsyncpa [#allocation7], 1 }
 0x90e   :  { %2940 = vsyncpa [#allocation10], 1 }
 0x90f   :  { %2941 = vsyncpa [#allocation5], 1 }
 0x910   :  { %2942 = vsyncpa [#allocation13], 1 }

</bundles_post_ra>
